<compile_context>
chip_gen: v5e
topology: v5e:2x2
jax: 0.10.0
libtpu: 0.0.40
codegen_flags: <defaults>
</compile_context>

<pallas_src>
import functools

import jax
import jax.numpy as jnp
from jax import lax
from jax.experimental import pallas as pl
from jax.experimental.pallas import tpu as pltpu


def _round_up(x, m):
    return (x + m - 1) // m * m


def _char_cnn_kernel(ids_ref, mt_ref, out_ref, *, n_time, k_taps, vocab_ext):
    # ids_ref: (WP, TN) int32 -- padded char ids; words on lanes, padded word-time on sublanes
    # mt_ref:  (Fp, KVp) f32  -- fused per-tap tables (conv_w[:,:,k] @ emb.T), bias baked into
    #                            the centre tap's real-vocab rows, zero padded to (Fp, KVp)
    # out_ref: (Fp, TN) f32   -- pooled features; filters on sublanes, words on lanes
    Fp, KVp = mt_ref.shape
    TN = ids_ref.shape[1]

    mt = mt_ref[...]                                                   # (Fp, KVp), loaded once
    kv_iota = lax.broadcasted_iota(jnp.int32, (KVp, TN), 0)            # KV index on sublanes

    pooled = None
    for w in range(n_time):                                            # static unroll (W small)
        # Fat one-hot column block for output time w: row k*Vx + ids[w+k] is 1 for each tap k.
        hit = kv_iota == ids_ref[w:w + 1, :]
        for k in range(1, k_taps):
            hit = jnp.logical_or(hit, kv_iota == (ids_ref[w + k:w + k + 1, :] + k * vocab_ext))
        onehot = hit.astype(jnp.float32)                               # (KVp, TN)

        # Fused embedding-gather + Conv1d tap-sum (+bias) at time w: one lane-dense MXU matmul.
        acc = jnp.dot(mt, onehot, preferred_element_type=jnp.float32)  # (Fp, TN)
        pooled = acc if pooled is None else jnp.maximum(pooled, acc)   # running MaxPool1d

    out_ref[...] = jnp.maximum(pooled, 0.0)                            # ReLU (commutes with max)


def character_cnn_forward(char_ids, emb_table, conv_w, conv_b, *, tile_n=256):
    """char_ids: (B, S, W) int; returns (B, S, F) float32 — same semantics as CharacterCNN.forward."""
    B, S, W = char_ids.shape
    V, E = emb_table.shape
    F, E2, K = conv_w.shape
    assert E2 == E
    N = B * S

    pad_l = (K - 1) // 2                 # matches torch Conv1d(padding='same') split
    WP = W + K - 1                       # padded input-time length
    Vx = V + 1                           # + explicit all-zero pad row (id = V)
    KVp = _round_up(K * Vx, 128)
    Fp = _round_up(F, 128)

    # Fused (embedding x conv tap) lookup table, transposed so filters sit on sublanes.
    emb_ext = jnp.concatenate(
        [emb_table.astype(jnp.float32), jnp.zeros((1, E), jnp.float32)], axis=0)      # (Vx, E)
    mt = jnp.einsum('ve,fek->fkv', emb_ext, conv_w.astype(jnp.float32))                # (F, K, Vx)
    mt = mt.reshape(F, K * Vx)
    # Bake the conv bias into the centre-tap rows for REAL vocab ids (the centre tap always reads
    # a real character for every valid output position, so the bias is added exactly once).
    center = jnp.zeros((K * Vx,), jnp.float32).at[pad_l * Vx: pad_l * Vx + V].set(1.0)
    mt = mt + conv_b.astype(jnp.float32)[:, None] * center[None, :]
    mt = jnp.pad(mt, ((0, Fp - F), (0, KVp - K * Vx)))                                 # (Fp, KVp)

    # Pad ids ('same' conv padding + batch padding -> zero pad row id) and transpose so the word
    # axis is the lane axis (dense HBM layout, lane-dense kernel compute/stores).
    tile_n = max(128, min(_round_up(tile_n, 128), _round_up(max(N, 1), 128)))
    Np = _round_up(max(N, 1), tile_n)
    ids = char_ids.reshape(N, W).astype(jnp.int32)
    ids = jnp.pad(ids, ((0, Np - N), (pad_l, K - 1 - pad_l)), constant_values=V)       # (Np, WP)
    ids_t = ids.T                                                                      # (WP, Np)

    kernel = functools.partial(_char_cnn_kernel, n_time=W, k_taps=K, vocab_ext=Vx)

    out_t = pl.pallas_call(
        kernel,
        out_shape=jax.ShapeDtypeStruct((Fp, Np), jnp.float32),
        grid_spec=pltpu.PrefetchScalarGridSpec(
            num_scalar_prefetch=0,
            grid=(Np // tile_n,),
            in_specs=[
                pl.BlockSpec((WP, tile_n), lambda i: (0, i)),   # char ids (only per-tile HBM stream)
                pl.BlockSpec((Fp, KVp), lambda i: (0, 0)),      # fused table, fetched once
            ],
            out_specs=pl.BlockSpec((Fp, tile_n), lambda i: (0, i)),   # lane-dense output tile
        ),
        compiler_params=pltpu.CompilerParams(
            dimension_semantics=("parallel",),                  # megacore-shardable word tiles
        ),
    )(ids_t, mt)

    return out_t[:F, :N].T.reshape(B, S, F)


def _reference_forward(char_ids, emb_table, conv_w, conv_b):
    """Pure-JAX reference of the PyTorch module (sanity check only)."""
    B, S, W = char_ids.shape
    F, E, K = conv_w.shape
    x = jnp.take(emb_table, char_ids.reshape(-1, W), axis=0)            # (N, W, E)
    pad_l = (K - 1) // 2
    xp = jnp.pad(x, ((0, 0), (pad_l, K - 1 - pad_l), (0, 0)))           # (N, W+K-1, E)
    out = jnp.zeros((B * S, W, F), jnp.float32)
    for k in range(K):
        out = out + jnp.einsum('nwe,fe->nwf', xp[:, k:k + W, :], conv_w[:, :, k])
    out = jnp.maximum(out + conv_b[None, None, :], 0.0)
    return out.max(axis=1).reshape(B, S, F)


if __name__ == "__main__":
    # module hyperparameters (PyTorch defaults)
    char_vocab_size = 40
    char_embedding_dim = 30
    kernel_size = 3
    num_filters = 50
    max_word_len = 20

    # small input shapes: batch=2, seq=8, max_word_len=20
    B, S = 2, 8

    key = jax.random.PRNGKey(0)
    k_ids, k_emb, k_w, k_b = jax.random.split(key, 4)

    char_ids = jax.random.randint(
        k_ids, (B, S, max_word_len), minval=0, maxval=char_vocab_size, dtype=jnp.int32
    )

    # deterministic parameter init (synthetic, not a checkpoint load)
    emb_table = 0.1 * jax.random.normal(
        k_emb, (char_vocab_size, char_embedding_dim), dtype=jnp.float32
    )
    emb_table = emb_table.at[0].set(0.0)  # padding_idx=0
    conv_w = 0.1 * jax.random.normal(
        k_w, (num_filters, char_embedding_dim, kernel_size), dtype=jnp.float32
    )
    conv_b = 0.1 * jax.random.normal(k_b, (num_filters,), dtype=jnp.float32)

    out = character_cnn_forward(char_ids, emb_table, conv_w, conv_b)
    out = jax.block_until_ready(out)
    assert out.shape == (B, S, num_filters), out.shape

    ref = _reference_forward(char_ids, emb_table, conv_w, conv_b)
    assert jnp.allclose(out, ref, atol=1e-2, rtol=1e-2), float(jnp.max(jnp.abs(out - ref)))

    print("KERNEL_OK")
</pallas_src>

<mosaic_0001>
module attributes {stable_mosaic.version = 11 : i64} {
  func.func @_char_cnn_kernel(%arg0: i32, %arg1: memref<22x128xi32, #tpu.memory_space<vmem>>, %arg2: memref<128x128xf32, #tpu.memory_space<vmem>>, %arg3: memref<128x128xf32, #tpu.memory_space<vmem>>) attributes {dimension_semantics = [#tpu.dimension_semantics<parallel>], iteration_bounds = array<i64: 1>, scalar_prefetch = 0 : i64, scratch_operands = 0 : i64, tpu.core_type = #tpu.core_type<tc>, window_params = [{transform_indices = @transform_0, window_bounds = array<i64: 22, 128>}, {pipeline_mode = #tpu.pipeline_mode<synchronous>, transform_indices = @transform_1, window_bounds = array<i64: 128, 128>}, {transform_indices = @transform_2, window_bounds = array<i64: 128, 128>}]} {
    %c0 = arith.constant 0 : index
    %c0_0 = arith.constant 0 : index
    %0 = vector.load %arg2[%c0, %c0_0] : memref<128x128xf32, #tpu.memory_space<vmem>>, vector<128x128xf32>
    %1 = tpu.iota {dimensions = array<i32: 0>} : vector<128x128xi32>
    %c0_1 = arith.constant 0 : index
    %c0_2 = arith.constant 0 : index
    %2 = vector.load %arg1[%c0_1, %c0_2] : memref<22x128xi32, #tpu.memory_space<vmem>>, vector<1x128xi32>
    %3 = vector.broadcast %2 : vector<1x128xi32> to vector<128x128xi32>
    %4 = arith.cmpi eq, %1, %3 : vector<128x128xi32>
    %c1 = arith.constant 1 : index
    %c0_3 = arith.constant 0 : index
    %5 = vector.load %arg1[%c1, %c0_3] : memref<22x128xi32, #tpu.memory_space<vmem>>, vector<1x128xi32>
    %c41_i32 = arith.constant 41 : i32
    %6 = vector.broadcast %c41_i32 : i32 to vector<1x128xi32>
    %7 = arith.addi %5, %6 : vector<1x128xi32>
    %8 = vector.broadcast %7 : vector<1x128xi32> to vector<128x128xi32>
    %9 = arith.cmpi eq, %1, %8 : vector<128x128xi32>
    %10 = arith.ori %4, %9 : vector<128x128xi1>
    %c2 = arith.constant 2 : index
    %c0_4 = arith.constant 0 : index
    %11 = vector.load %arg1[%c2, %c0_4] : memref<22x128xi32, #tpu.memory_space<vmem>>, vector<1x128xi32>
    %c82_i32 = arith.constant 82 : i32
    %12 = vector.broadcast %c82_i32 : i32 to vector<1x128xi32>
    %13 = arith.addi %11, %12 : vector<1x128xi32>
    %14 = vector.broadcast %13 : vector<1x128xi32> to vector<128x128xi32>
    %15 = arith.cmpi eq, %1, %14 : vector<128x128xi32>
    %16 = arith.ori %10, %15 : vector<128x128xi1>
    %17 = arith.extui %16 : vector<128x128xi1> to vector<128x128xi32>
    %18 = arith.sitofp %17 : vector<128x128xi32> to vector<128x128xf32>
    %cst = arith.constant dense<0.000000e+00> : vector<128x128xf32>
    %19 = tpu.matmul %0, %18, %cst {dimension_numbers = #tpu.dot_dimension_numbers<[1], [0], [0], [1], [0, 0, 1, 1], [], []>} : vector<128x128xf32>, vector<128x128xf32>, vector<128x128xf32> -> vector<128x128xf32>
    %c1_5 = arith.constant 1 : index
    %c0_6 = arith.constant 0 : index
    %20 = vector.load %arg1[%c1_5, %c0_6] : memref<22x128xi32, #tpu.memory_space<vmem>>, vector<1x128xi32>
    %21 = vector.broadcast %20 : vector<1x128xi32> to vector<128x128xi32>
    %22 = arith.cmpi eq, %1, %21 : vector<128x128xi32>
    %c2_7 = arith.constant 2 : index
    %c0_8 = arith.constant 0 : index
    %23 = vector.load %arg1[%c2_7, %c0_8] : memref<22x128xi32, #tpu.memory_space<vmem>>, vector<1x128xi32>
    %c41_i32_9 = arith.constant 41 : i32
    %24 = vector.broadcast %c41_i32_9 : i32 to vector<1x128xi32>
    %25 = arith.addi %23, %24 : vector<1x128xi32>
    %26 = vector.broadcast %25 : vector<1x128xi32> to vector<128x128xi32>
    %27 = arith.cmpi eq, %1, %26 : vector<128x128xi32>
    %28 = arith.ori %22, %27 : vector<128x128xi1>
    %c3 = arith.constant 3 : index
    %c0_10 = arith.constant 0 : index
    %29 = vector.load %arg1[%c3, %c0_10] : memref<22x128xi32, #tpu.memory_space<vmem>>, vector<1x128xi32>
    %c82_i32_11 = arith.constant 82 : i32
    %30 = vector.broadcast %c82_i32_11 : i32 to vector<1x128xi32>
    %31 = arith.addi %29, %30 : vector<1x128xi32>
    %32 = vector.broadcast %31 : vector<1x128xi32> to vector<128x128xi32>
    %33 = arith.cmpi eq, %1, %32 : vector<128x128xi32>
    %34 = arith.ori %28, %33 : vector<128x128xi1>
    %35 = arith.extui %34 : vector<128x128xi1> to vector<128x128xi32>
    %36 = arith.sitofp %35 : vector<128x128xi32> to vector<128x128xf32>
    %cst_12 = arith.constant dense<0.000000e+00> : vector<128x128xf32>
    %37 = tpu.matmul %0, %36, %cst_12 {dimension_numbers = #tpu.dot_dimension_numbers<[1], [0], [0], [1], [0, 0, 1, 1], [], []>} : vector<128x128xf32>, vector<128x128xf32>, vector<128x128xf32> -> vector<128x128xf32>
    %38 = arith.maximumf %19, %37 : vector<128x128xf32>
    %c2_13 = arith.constant 2 : index
    %c0_14 = arith.constant 0 : index
    %39 = vector.load %arg1[%c2_13, %c0_14] : memref<22x128xi32, #tpu.memory_space<vmem>>, vector<1x128xi32>
    %40 = vector.broadcast %39 : vector<1x128xi32> to vector<128x128xi32>
    %41 = arith.cmpi eq, %1, %40 : vector<128x128xi32>
    %c3_15 = arith.constant 3 : index
    %c0_16 = arith.constant 0 : index
    %42 = vector.load %arg1[%c3_15, %c0_16] : memref<22x128xi32, #tpu.memory_space<vmem>>, vector<1x128xi32>
    %c41_i32_17 = arith.constant 41 : i32
    %43 = vector.broadcast %c41_i32_17 : i32 to vector<1x128xi32>
    %44 = arith.addi %42, %43 : vector<1x128xi32>
    %45 = vector.broadcast %44 : vector<1x128xi32> to vector<128x128xi32>
    %46 = arith.cmpi eq, %1, %45 : vector<128x128xi32>
    %47 = arith.ori %41, %46 : vector<128x128xi1>
    %c4 = arith.constant 4 : index
    %c0_18 = arith.constant 0 : index
    %48 = vector.load %arg1[%c4, %c0_18] : memref<22x128xi32, #tpu.memory_space<vmem>>, vector<1x128xi32>
    %c82_i32_19 = arith.constant 82 : i32
    %49 = vector.broadcast %c82_i32_19 : i32 to vector<1x128xi32>
    %50 = arith.addi %48, %49 : vector<1x128xi32>
    %51 = vector.broadcast %50 : vector<1x128xi32> to vector<128x128xi32>
    %52 = arith.cmpi eq, %1, %51 : vector<128x128xi32>
    %53 = arith.ori %47, %52 : vector<128x128xi1>
    %54 = arith.extui %53 : vector<128x128xi1> to vector<128x128xi32>
    %55 = arith.sitofp %54 : vector<128x128xi32> to vector<128x128xf32>
    %cst_20 = arith.constant dense<0.000000e+00> : vector<128x128xf32>
    %56 = tpu.matmul %0, %55, %cst_20 {dimension_numbers = #tpu.dot_dimension_numbers<[1], [0], [0], [1], [0, 0, 1, 1], [], []>} : vector<128x128xf32>, vector<128x128xf32>, vector<128x128xf32> -> vector<128x128xf32>
    %57 = arith.maximumf %38, %56 : vector<128x128xf32>
    %c3_21 = arith.constant 3 : index
    %c0_22 = arith.constant 0 : index
    %58 = vector.load %arg1[%c3_21, %c0_22] : memref<22x128xi32, #tpu.memory_space<vmem>>, vector<1x128xi32>
    %59 = vector.broadcast %58 : vector<1x128xi32> to vector<128x128xi32>
    %60 = arith.cmpi eq, %1, %59 : vector<128x128xi32>
    %c4_23 = arith.constant 4 : index
    %c0_24 = arith.constant 0 : index
    %61 = vector.load %arg1[%c4_23, %c0_24] : memref<22x128xi32, #tpu.memory_space<vmem>>, vector<1x128xi32>
    %c41_i32_25 = arith.constant 41 : i32
    %62 = vector.broadcast %c41_i32_25 : i32 to vector<1x128xi32>
    %63 = arith.addi %61, %62 : vector<1x128xi32>
    %64 = vector.broadcast %63 : vector<1x128xi32> to vector<128x128xi32>
    %65 = arith.cmpi eq, %1, %64 : vector<128x128xi32>
    %66 = arith.ori %60, %65 : vector<128x128xi1>
    %c5 = arith.constant 5 : index
    %c0_26 = arith.constant 0 : index
    %67 = vector.load %arg1[%c5, %c0_26] : memref<22x128xi32, #tpu.memory_space<vmem>>, vector<1x128xi32>
    %c82_i32_27 = arith.constant 82 : i32
    %68 = vector.broadcast %c82_i32_27 : i32 to vector<1x128xi32>
    %69 = arith.addi %67, %68 : vector<1x128xi32>
    %70 = vector.broadcast %69 : vector<1x128xi32> to vector<128x128xi32>
    %71 = arith.cmpi eq, %1, %70 : vector<128x128xi32>
    %72 = arith.ori %66, %71 : vector<128x128xi1>
    %73 = arith.extui %72 : vector<128x128xi1> to vector<128x128xi32>
    %74 = arith.sitofp %73 : vector<128x128xi32> to vector<128x128xf32>
    %cst_28 = arith.constant dense<0.000000e+00> : vector<128x128xf32>
    %75 = tpu.matmul %0, %74, %cst_28 {dimension_numbers = #tpu.dot_dimension_numbers<[1], [0], [0], [1], [0, 0, 1, 1], [], []>} : vector<128x128xf32>, vector<128x128xf32>, vector<128x128xf32> -> vector<128x128xf32>
    %76 = arith.maximumf %57, %75 : vector<128x128xf32>
    %c4_29 = arith.constant 4 : index
    %c0_30 = arith.constant 0 : index
    %77 = vector.load %arg1[%c4_29, %c0_30] : memref<22x128xi32, #tpu.memory_space<vmem>>, vector<1x128xi32>
    %78 = vector.broadcast %77 : vector<1x128xi32> to vector<128x128xi32>
    %79 = arith.cmpi eq, %1, %78 : vector<128x128xi32>
    %c5_31 = arith.constant 5 : index
    %c0_32 = arith.constant 0 : index
    %80 = vector.load %arg1[%c5_31, %c0_32] : memref<22x128xi32, #tpu.memory_space<vmem>>, vector<1x128xi32>
    %c41_i32_33 = arith.constant 41 : i32
    %81 = vector.broadcast %c41_i32_33 : i32 to vector<1x128xi32>
    %82 = arith.addi %80, %81 : vector<1x128xi32>
    %83 = vector.broadcast %82 : vector<1x128xi32> to vector<128x128xi32>
    %84 = arith.cmpi eq, %1, %83 : vector<128x128xi32>
    %85 = arith.ori %79, %84 : vector<128x128xi1>
    %c6 = arith.constant 6 : index
    %c0_34 = arith.constant 0 : index
    %86 = vector.load %arg1[%c6, %c0_34] : memref<22x128xi32, #tpu.memory_space<vmem>>, vector<1x128xi32>
    %c82_i32_35 = arith.constant 82 : i32
    %87 = vector.broadcast %c82_i32_35 : i32 to vector<1x128xi32>
    %88 = arith.addi %86, %87 : vector<1x128xi32>
    %89 = vector.broadcast %88 : vector<1x128xi32> to vector<128x128xi32>
    %90 = arith.cmpi eq, %1, %89 : vector<128x128xi32>
    %91 = arith.ori %85, %90 : vector<128x128xi1>
    %92 = arith.extui %91 : vector<128x128xi1> to vector<128x128xi32>
    %93 = arith.sitofp %92 : vector<128x128xi32> to vector<128x128xf32>
    %cst_36 = arith.constant dense<0.000000e+00> : vector<128x128xf32>
    %94 = tpu.matmul %0, %93, %cst_36 {dimension_numbers = #tpu.dot_dimension_numbers<[1], [0], [0], [1], [0, 0, 1, 1], [], []>} : vector<128x128xf32>, vector<128x128xf32>, vector<128x128xf32> -> vector<128x128xf32>
    %95 = arith.maximumf %76, %94 : vector<128x128xf32>
    %c5_37 = arith.constant 5 : index
    %c0_38 = arith.constant 0 : index
    %96 = vector.load %arg1[%c5_37, %c0_38] : memref<22x128xi32, #tpu.memory_space<vmem>>, vector<1x128xi32>
    %97 = vector.broadcast %96 : vector<1x128xi32> to vector<128x128xi32>
    %98 = arith.cmpi eq, %1, %97 : vector<128x128xi32>
    %c6_39 = arith.constant 6 : index
    %c0_40 = arith.constant 0 : index
    %99 = vector.load %arg1[%c6_39, %c0_40] : memref<22x128xi32, #tpu.memory_space<vmem>>, vector<1x128xi32>
    %c41_i32_41 = arith.constant 41 : i32
    %100 = vector.broadcast %c41_i32_41 : i32 to vector<1x128xi32>
    %101 = arith.addi %99, %100 : vector<1x128xi32>
    %102 = vector.broadcast %101 : vector<1x128xi32> to vector<128x128xi32>
    %103 = arith.cmpi eq, %1, %102 : vector<128x128xi32>
    %104 = arith.ori %98, %103 : vector<128x128xi1>
    %c7 = arith.constant 7 : index
    %c0_42 = arith.constant 0 : index
    %105 = vector.load %arg1[%c7, %c0_42] : memref<22x128xi32, #tpu.memory_space<vmem>>, vector<1x128xi32>
    %c82_i32_43 = arith.constant 82 : i32
    %106 = vector.broadcast %c82_i32_43 : i32 to vector<1x128xi32>
    %107 = arith.addi %105, %106 : vector<1x128xi32>
    %108 = vector.broadcast %107 : vector<1x128xi32> to vector<128x128xi32>
    %109 = arith.cmpi eq, %1, %108 : vector<128x128xi32>
    %110 = arith.ori %104, %109 : vector<128x128xi1>
    %111 = arith.extui %110 : vector<128x128xi1> to vector<128x128xi32>
    %112 = arith.sitofp %111 : vector<128x128xi32> to vector<128x128xf32>
    %cst_44 = arith.constant dense<0.000000e+00> : vector<128x128xf32>
    %113 = tpu.matmul %0, %112, %cst_44 {dimension_numbers = #tpu.dot_dimension_numbers<[1], [0], [0], [1], [0, 0, 1, 1], [], []>} : vector<128x128xf32>, vector<128x128xf32>, vector<128x128xf32> -> vector<128x128xf32>
    %114 = arith.maximumf %95, %113 : vector<128x128xf32>
    %c6_45 = arith.constant 6 : index
    %c0_46 = arith.constant 0 : index
    %115 = vector.load %arg1[%c6_45, %c0_46] : memref<22x128xi32, #tpu.memory_space<vmem>>, vector<1x128xi32>
    %116 = vector.broadcast %115 : vector<1x128xi32> to vector<128x128xi32>
    %117 = arith.cmpi eq, %1, %116 : vector<128x128xi32>
    %c7_47 = arith.constant 7 : index
    %c0_48 = arith.constant 0 : index
    %118 = vector.load %arg1[%c7_47, %c0_48] : memref<22x128xi32, #tpu.memory_space<vmem>>, vector<1x128xi32>
    %c41_i32_49 = arith.constant 41 : i32
    %119 = vector.broadcast %c41_i32_49 : i32 to vector<1x128xi32>
    %120 = arith.addi %118, %119 : vector<1x128xi32>
    %121 = vector.broadcast %120 : vector<1x128xi32> to vector<128x128xi32>
    %122 = arith.cmpi eq, %1, %121 : vector<128x128xi32>
    %123 = arith.ori %117, %122 : vector<128x128xi1>
    %c8 = arith.constant 8 : index
    %c0_50 = arith.constant 0 : index
    %124 = vector.load %arg1[%c8, %c0_50] : memref<22x128xi32, #tpu.memory_space<vmem>>, vector<1x128xi32>
    %c82_i32_51 = arith.constant 82 : i32
    %125 = vector.broadcast %c82_i32_51 : i32 to vector<1x128xi32>
    %126 = arith.addi %124, %125 : vector<1x128xi32>
    %127 = vector.broadcast %126 : vector<1x128xi32> to vector<128x128xi32>
    %128 = arith.cmpi eq, %1, %127 : vector<128x128xi32>
    %129 = arith.ori %123, %128 : vector<128x128xi1>
    %130 = arith.extui %129 : vector<128x128xi1> to vector<128x128xi32>
    %131 = arith.sitofp %130 : vector<128x128xi32> to vector<128x128xf32>
    %cst_52 = arith.constant dense<0.000000e+00> : vector<128x128xf32>
    %132 = tpu.matmul %0, %131, %cst_52 {dimension_numbers = #tpu.dot_dimension_numbers<[1], [0], [0], [1], [0, 0, 1, 1], [], []>} : vector<128x128xf32>, vector<128x128xf32>, vector<128x128xf32> -> vector<128x128xf32>
    %133 = arith.maximumf %114, %132 : vector<128x128xf32>
    %c7_53 = arith.constant 7 : index
    %c0_54 = arith.constant 0 : index
    %134 = vector.load %arg1[%c7_53, %c0_54] : memref<22x128xi32, #tpu.memory_space<vmem>>, vector<1x128xi32>
    %135 = vector.broadcast %134 : vector<1x128xi32> to vector<128x128xi32>
    %136 = arith.cmpi eq, %1, %135 : vector<128x128xi32>
    %c8_55 = arith.constant 8 : index
    %c0_56 = arith.constant 0 : index
    %137 = vector.load %arg1[%c8_55, %c0_56] : memref<22x128xi32, #tpu.memory_space<vmem>>, vector<1x128xi32>
    %c41_i32_57 = arith.constant 41 : i32
    %138 = vector.broadcast %c41_i32_57 : i32 to vector<1x128xi32>
    %139 = arith.addi %137, %138 : vector<1x128xi32>
    %140 = vector.broadcast %139 : vector<1x128xi32> to vector<128x128xi32>
    %141 = arith.cmpi eq, %1, %140 : vector<128x128xi32>
    %142 = arith.ori %136, %141 : vector<128x128xi1>
    %c9 = arith.constant 9 : index
    %c0_58 = arith.constant 0 : index
    %143 = vector.load %arg1[%c9, %c0_58] : memref<22x128xi32, #tpu.memory_space<vmem>>, vector<1x128xi32>
    %c82_i32_59 = arith.constant 82 : i32
    %144 = vector.broadcast %c82_i32_59 : i32 to vector<1x128xi32>
    %145 = arith.addi %143, %144 : vector<1x128xi32>
    %146 = vector.broadcast %145 : vector<1x128xi32> to vector<128x128xi32>
    %147 = arith.cmpi eq, %1, %146 : vector<128x128xi32>
    %148 = arith.ori %142, %147 : vector<128x128xi1>
    %149 = arith.extui %148 : vector<128x128xi1> to vector<128x128xi32>
    %150 = arith.sitofp %149 : vector<128x128xi32> to vector<128x128xf32>
    %cst_60 = arith.constant dense<0.000000e+00> : vector<128x128xf32>
    %151 = tpu.matmul %0, %150, %cst_60 {dimension_numbers = #tpu.dot_dimension_numbers<[1], [0], [0], [1], [0, 0, 1, 1], [], []>} : vector<128x128xf32>, vector<128x128xf32>, vector<128x128xf32> -> vector<128x128xf32>
    %152 = arith.maximumf %133, %151 : vector<128x128xf32>
    %c8_61 = arith.constant 8 : index
    %c0_62 = arith.constant 0 : index
    %153 = vector.load %arg1[%c8_61, %c0_62] : memref<22x128xi32, #tpu.memory_space<vmem>>, vector<1x128xi32>
    %154 = vector.broadcast %153 : vector<1x128xi32> to vector<128x128xi32>
    %155 = arith.cmpi eq, %1, %154 : vector<128x128xi32>
    %c9_63 = arith.constant 9 : index
    %c0_64 = arith.constant 0 : index
    %156 = vector.load %arg1[%c9_63, %c0_64] : memref<22x128xi32, #tpu.memory_space<vmem>>, vector<1x128xi32>
    %c41_i32_65 = arith.constant 41 : i32
    %157 = vector.broadcast %c41_i32_65 : i32 to vector<1x128xi32>
    %158 = arith.addi %156, %157 : vector<1x128xi32>
    %159 = vector.broadcast %158 : vector<1x128xi32> to vector<128x128xi32>
    %160 = arith.cmpi eq, %1, %159 : vector<128x128xi32>
    %161 = arith.ori %155, %160 : vector<128x128xi1>
    %c10 = arith.constant 10 : index
    %c0_66 = arith.constant 0 : index
    %162 = vector.load %arg1[%c10, %c0_66] : memref<22x128xi32, #tpu.memory_space<vmem>>, vector<1x128xi32>
    %c82_i32_67 = arith.constant 82 : i32
    %163 = vector.broadcast %c82_i32_67 : i32 to vector<1x128xi32>
    %164 = arith.addi %162, %163 : vector<1x128xi32>
    %165 = vector.broadcast %164 : vector<1x128xi32> to vector<128x128xi32>
    %166 = arith.cmpi eq, %1, %165 : vector<128x128xi32>
    %167 = arith.ori %161, %166 : vector<128x128xi1>
    %168 = arith.extui %167 : vector<128x128xi1> to vector<128x128xi32>
    %169 = arith.sitofp %168 : vector<128x128xi32> to vector<128x128xf32>
    %cst_68 = arith.constant dense<0.000000e+00> : vector<128x128xf32>
    %170 = tpu.matmul %0, %169, %cst_68 {dimension_numbers = #tpu.dot_dimension_numbers<[1], [0], [0], [1], [0, 0, 1, 1], [], []>} : vector<128x128xf32>, vector<128x128xf32>, vector<128x128xf32> -> vector<128x128xf32>
    %171 = arith.maximumf %152, %170 : vector<128x128xf32>
    %c9_69 = arith.constant 9 : index
    %c0_70 = arith.constant 0 : index
    %172 = vector.load %arg1[%c9_69, %c0_70] : memref<22x128xi32, #tpu.memory_space<vmem>>, vector<1x128xi32>
    %173 = vector.broadcast %172 : vector<1x128xi32> to vector<128x128xi32>
    %174 = arith.cmpi eq, %1, %173 : vector<128x128xi32>
    %c10_71 = arith.constant 10 : index
    %c0_72 = arith.constant 0 : index
    %175 = vector.load %arg1[%c10_71, %c0_72] : memref<22x128xi32, #tpu.memory_space<vmem>>, vector<1x128xi32>
    %c41_i32_73 = arith.constant 41 : i32
    %176 = vector.broadcast %c41_i32_73 : i32 to vector<1x128xi32>
    %177 = arith.addi %175, %176 : vector<1x128xi32>
    %178 = vector.broadcast %177 : vector<1x128xi32> to vector<128x128xi32>
    %179 = arith.cmpi eq, %1, %178 : vector<128x128xi32>
    %180 = arith.ori %174, %179 : vector<128x128xi1>
    %c11 = arith.constant 11 : index
    %c0_74 = arith.constant 0 : index
    %181 = vector.load %arg1[%c11, %c0_74] : memref<22x128xi32, #tpu.memory_space<vmem>>, vector<1x128xi32>
    %c82_i32_75 = arith.constant 82 : i32
    %182 = vector.broadcast %c82_i32_75 : i32 to vector<1x128xi32>
    %183 = arith.addi %181, %182 : vector<1x128xi32>
    %184 = vector.broadcast %183 : vector<1x128xi32> to vector<128x128xi32>
    %185 = arith.cmpi eq, %1, %184 : vector<128x128xi32>
    %186 = arith.ori %180, %185 : vector<128x128xi1>
    %187 = arith.extui %186 : vector<128x128xi1> to vector<128x128xi32>
    %188 = arith.sitofp %187 : vector<128x128xi32> to vector<128x128xf32>
    %cst_76 = arith.constant dense<0.000000e+00> : vector<128x128xf32>
    %189 = tpu.matmul %0, %188, %cst_76 {dimension_numbers = #tpu.dot_dimension_numbers<[1], [0], [0], [1], [0, 0, 1, 1], [], []>} : vector<128x128xf32>, vector<128x128xf32>, vector<128x128xf32> -> vector<128x128xf32>
    %190 = arith.maximumf %171, %189 : vector<128x128xf32>
    %c10_77 = arith.constant 10 : index
    %c0_78 = arith.constant 0 : index
    %191 = vector.load %arg1[%c10_77, %c0_78] : memref<22x128xi32, #tpu.memory_space<vmem>>, vector<1x128xi32>
    %192 = vector.broadcast %191 : vector<1x128xi32> to vector<128x128xi32>
    %193 = arith.cmpi eq, %1, %192 : vector<128x128xi32>
    %c11_79 = arith.constant 11 : index
    %c0_80 = arith.constant 0 : index
    %194 = vector.load %arg1[%c11_79, %c0_80] : memref<22x128xi32, #tpu.memory_space<vmem>>, vector<1x128xi32>
    %c41_i32_81 = arith.constant 41 : i32
    %195 = vector.broadcast %c41_i32_81 : i32 to vector<1x128xi32>
    %196 = arith.addi %194, %195 : vector<1x128xi32>
    %197 = vector.broadcast %196 : vector<1x128xi32> to vector<128x128xi32>
    %198 = arith.cmpi eq, %1, %197 : vector<128x128xi32>
    %199 = arith.ori %193, %198 : vector<128x128xi1>
    %c12 = arith.constant 12 : index
    %c0_82 = arith.constant 0 : index
    %200 = vector.load %arg1[%c12, %c0_82] : memref<22x128xi32, #tpu.memory_space<vmem>>, vector<1x128xi32>
    %c82_i32_83 = arith.constant 82 : i32
    %201 = vector.broadcast %c82_i32_83 : i32 to vector<1x128xi32>
    %202 = arith.addi %200, %201 : vector<1x128xi32>
    %203 = vector.broadcast %202 : vector<1x128xi32> to vector<128x128xi32>
    %204 = arith.cmpi eq, %1, %203 : vector<128x128xi32>
    %205 = arith.ori %199, %204 : vector<128x128xi1>
    %206 = arith.extui %205 : vector<128x128xi1> to vector<128x128xi32>
    %207 = arith.sitofp %206 : vector<128x128xi32> to vector<128x128xf32>
    %cst_84 = arith.constant dense<0.000000e+00> : vector<128x128xf32>
    %208 = tpu.matmul %0, %207, %cst_84 {dimension_numbers = #tpu.dot_dimension_numbers<[1], [0], [0], [1], [0, 0, 1, 1], [], []>} : vector<128x128xf32>, vector<128x128xf32>, vector<128x128xf32> -> vector<128x128xf32>
    %209 = arith.maximumf %190, %208 : vector<128x128xf32>
    %c11_85 = arith.constant 11 : index
    %c0_86 = arith.constant 0 : index
    %210 = vector.load %arg1[%c11_85, %c0_86] : memref<22x128xi32, #tpu.memory_space<vmem>>, vector<1x128xi32>
    %211 = vector.broadcast %210 : vector<1x128xi32> to vector<128x128xi32>
    %212 = arith.cmpi eq, %1, %211 : vector<128x128xi32>
    %c12_87 = arith.constant 12 : index
    %c0_88 = arith.constant 0 : index
    %213 = vector.load %arg1[%c12_87, %c0_88] : memref<22x128xi32, #tpu.memory_space<vmem>>, vector<1x128xi32>
    %c41_i32_89 = arith.constant 41 : i32
    %214 = vector.broadcast %c41_i32_89 : i32 to vector<1x128xi32>
    %215 = arith.addi %213, %214 : vector<1x128xi32>
    %216 = vector.broadcast %215 : vector<1x128xi32> to vector<128x128xi32>
    %217 = arith.cmpi eq, %1, %216 : vector<128x128xi32>
    %218 = arith.ori %212, %217 : vector<128x128xi1>
    %c13 = arith.constant 13 : index
    %c0_90 = arith.constant 0 : index
    %219 = vector.load %arg1[%c13, %c0_90] : memref<22x128xi32, #tpu.memory_space<vmem>>, vector<1x128xi32>
    %c82_i32_91 = arith.constant 82 : i32
    %220 = vector.broadcast %c82_i32_91 : i32 to vector<1x128xi32>
    %221 = arith.addi %219, %220 : vector<1x128xi32>
    %222 = vector.broadcast %221 : vector<1x128xi32> to vector<128x128xi32>
    %223 = arith.cmpi eq, %1, %222 : vector<128x128xi32>
    %224 = arith.ori %218, %223 : vector<128x128xi1>
    %225 = arith.extui %224 : vector<128x128xi1> to vector<128x128xi32>
    %226 = arith.sitofp %225 : vector<128x128xi32> to vector<128x128xf32>
    %cst_92 = arith.constant dense<0.000000e+00> : vector<128x128xf32>
    %227 = tpu.matmul %0, %226, %cst_92 {dimension_numbers = #tpu.dot_dimension_numbers<[1], [0], [0], [1], [0, 0, 1, 1], [], []>} : vector<128x128xf32>, vector<128x128xf32>, vector<128x128xf32> -> vector<128x128xf32>
    %228 = arith.maximumf %209, %227 : vector<128x128xf32>
    %c12_93 = arith.constant 12 : index
    %c0_94 = arith.constant 0 : index
    %229 = vector.load %arg1[%c12_93, %c0_94] : memref<22x128xi32, #tpu.memory_space<vmem>>, vector<1x128xi32>
    %230 = vector.broadcast %229 : vector<1x128xi32> to vector<128x128xi32>
    %231 = arith.cmpi eq, %1, %230 : vector<128x128xi32>
    %c13_95 = arith.constant 13 : index
    %c0_96 = arith.constant 0 : index
    %232 = vector.load %arg1[%c13_95, %c0_96] : memref<22x128xi32, #tpu.memory_space<vmem>>, vector<1x128xi32>
    %c41_i32_97 = arith.constant 41 : i32
    %233 = vector.broadcast %c41_i32_97 : i32 to vector<1x128xi32>
    %234 = arith.addi %232, %233 : vector<1x128xi32>
    %235 = vector.broadcast %234 : vector<1x128xi32> to vector<128x128xi32>
    %236 = arith.cmpi eq, %1, %235 : vector<128x128xi32>
    %237 = arith.ori %231, %236 : vector<128x128xi1>
    %c14 = arith.constant 14 : index
    %c0_98 = arith.constant 0 : index
    %238 = vector.load %arg1[%c14, %c0_98] : memref<22x128xi32, #tpu.memory_space<vmem>>, vector<1x128xi32>
    %c82_i32_99 = arith.constant 82 : i32
    %239 = vector.broadcast %c82_i32_99 : i32 to vector<1x128xi32>
    %240 = arith.addi %238, %239 : vector<1x128xi32>
    %241 = vector.broadcast %240 : vector<1x128xi32> to vector<128x128xi32>
    %242 = arith.cmpi eq, %1, %241 : vector<128x128xi32>
    %243 = arith.ori %237, %242 : vector<128x128xi1>
    %244 = arith.extui %243 : vector<128x128xi1> to vector<128x128xi32>
    %245 = arith.sitofp %244 : vector<128x128xi32> to vector<128x128xf32>
    %cst_100 = arith.constant dense<0.000000e+00> : vector<128x128xf32>
    %246 = tpu.matmul %0, %245, %cst_100 {dimension_numbers = #tpu.dot_dimension_numbers<[1], [0], [0], [1], [0, 0, 1, 1], [], []>} : vector<128x128xf32>, vector<128x128xf32>, vector<128x128xf32> -> vector<128x128xf32>
    %247 = arith.maximumf %228, %246 : vector<128x128xf32>
    %c13_101 = arith.constant 13 : index
    %c0_102 = arith.constant 0 : index
    %248 = vector.load %arg1[%c13_101, %c0_102] : memref<22x128xi32, #tpu.memory_space<vmem>>, vector<1x128xi32>
    %249 = vector.broadcast %248 : vector<1x128xi32> to vector<128x128xi32>
    %250 = arith.cmpi eq, %1, %249 : vector<128x128xi32>
    %c14_103 = arith.constant 14 : index
    %c0_104 = arith.constant 0 : index
    %251 = vector.load %arg1[%c14_103, %c0_104] : memref<22x128xi32, #tpu.memory_space<vmem>>, vector<1x128xi32>
    %c41_i32_105 = arith.constant 41 : i32
    %252 = vector.broadcast %c41_i32_105 : i32 to vector<1x128xi32>
    %253 = arith.addi %251, %252 : vector<1x128xi32>
    %254 = vector.broadcast %253 : vector<1x128xi32> to vector<128x128xi32>
    %255 = arith.cmpi eq, %1, %254 : vector<128x128xi32>
    %256 = arith.ori %250, %255 : vector<128x128xi1>
    %c15 = arith.constant 15 : index
    %c0_106 = arith.constant 0 : index
    %257 = vector.load %arg1[%c15, %c0_106] : memref<22x128xi32, #tpu.memory_space<vmem>>, vector<1x128xi32>
    %c82_i32_107 = arith.constant 82 : i32
    %258 = vector.broadcast %c82_i32_107 : i32 to vector<1x128xi32>
    %259 = arith.addi %257, %258 : vector<1x128xi32>
    %260 = vector.broadcast %259 : vector<1x128xi32> to vector<128x128xi32>
    %261 = arith.cmpi eq, %1, %260 : vector<128x128xi32>
    %262 = arith.ori %256, %261 : vector<128x128xi1>
    %263 = arith.extui %262 : vector<128x128xi1> to vector<128x128xi32>
    %264 = arith.sitofp %263 : vector<128x128xi32> to vector<128x128xf32>
    %cst_108 = arith.constant dense<0.000000e+00> : vector<128x128xf32>
    %265 = tpu.matmul %0, %264, %cst_108 {dimension_numbers = #tpu.dot_dimension_numbers<[1], [0], [0], [1], [0, 0, 1, 1], [], []>} : vector<128x128xf32>, vector<128x128xf32>, vector<128x128xf32> -> vector<128x128xf32>
    %266 = arith.maximumf %247, %265 : vector<128x128xf32>
    %c14_109 = arith.constant 14 : index
    %c0_110 = arith.constant 0 : index
    %267 = vector.load %arg1[%c14_109, %c0_110] : memref<22x128xi32, #tpu.memory_space<vmem>>, vector<1x128xi32>
    %268 = vector.broadcast %267 : vector<1x128xi32> to vector<128x128xi32>
    %269 = arith.cmpi eq, %1, %268 : vector<128x128xi32>
    %c15_111 = arith.constant 15 : index
    %c0_112 = arith.constant 0 : index
    %270 = vector.load %arg1[%c15_111, %c0_112] : memref<22x128xi32, #tpu.memory_space<vmem>>, vector<1x128xi32>
    %c41_i32_113 = arith.constant 41 : i32
    %271 = vector.broadcast %c41_i32_113 : i32 to vector<1x128xi32>
    %272 = arith.addi %270, %271 : vector<1x128xi32>
    %273 = vector.broadcast %272 : vector<1x128xi32> to vector<128x128xi32>
    %274 = arith.cmpi eq, %1, %273 : vector<128x128xi32>
    %275 = arith.ori %269, %274 : vector<128x128xi1>
    %c16 = arith.constant 16 : index
    %c0_114 = arith.constant 0 : index
    %276 = vector.load %arg1[%c16, %c0_114] : memref<22x128xi32, #tpu.memory_space<vmem>>, vector<1x128xi32>
    %c82_i32_115 = arith.constant 82 : i32
    %277 = vector.broadcast %c82_i32_115 : i32 to vector<1x128xi32>
    %278 = arith.addi %276, %277 : vector<1x128xi32>
    %279 = vector.broadcast %278 : vector<1x128xi32> to vector<128x128xi32>
    %280 = arith.cmpi eq, %1, %279 : vector<128x128xi32>
    %281 = arith.ori %275, %280 : vector<128x128xi1>
    %282 = arith.extui %281 : vector<128x128xi1> to vector<128x128xi32>
    %283 = arith.sitofp %282 : vector<128x128xi32> to vector<128x128xf32>
    %cst_116 = arith.constant dense<0.000000e+00> : vector<128x128xf32>
    %284 = tpu.matmul %0, %283, %cst_116 {dimension_numbers = #tpu.dot_dimension_numbers<[1], [0], [0], [1], [0, 0, 1, 1], [], []>} : vector<128x128xf32>, vector<128x128xf32>, vector<128x128xf32> -> vector<128x128xf32>
    %285 = arith.maximumf %266, %284 : vector<128x128xf32>
    %c15_117 = arith.constant 15 : index
    %c0_118 = arith.constant 0 : index
    %286 = vector.load %arg1[%c15_117, %c0_118] : memref<22x128xi32, #tpu.memory_space<vmem>>, vector<1x128xi32>
    %287 = vector.broadcast %286 : vector<1x128xi32> to vector<128x128xi32>
    %288 = arith.cmpi eq, %1, %287 : vector<128x128xi32>
    %c16_119 = arith.constant 16 : index
    %c0_120 = arith.constant 0 : index
    %289 = vector.load %arg1[%c16_119, %c0_120] : memref<22x128xi32, #tpu.memory_space<vmem>>, vector<1x128xi32>
    %c41_i32_121 = arith.constant 41 : i32
    %290 = vector.broadcast %c41_i32_121 : i32 to vector<1x128xi32>
    %291 = arith.addi %289, %290 : vector<1x128xi32>
    %292 = vector.broadcast %291 : vector<1x128xi32> to vector<128x128xi32>
    %293 = arith.cmpi eq, %1, %292 : vector<128x128xi32>
    %294 = arith.ori %288, %293 : vector<128x128xi1>
    %c17 = arith.constant 17 : index
    %c0_122 = arith.constant 0 : index
    %295 = vector.load %arg1[%c17, %c0_122] : memref<22x128xi32, #tpu.memory_space<vmem>>, vector<1x128xi32>
    %c82_i32_123 = arith.constant 82 : i32
    %296 = vector.broadcast %c82_i32_123 : i32 to vector<1x128xi32>
    %297 = arith.addi %295, %296 : vector<1x128xi32>
    %298 = vector.broadcast %297 : vector<1x128xi32> to vector<128x128xi32>
    %299 = arith.cmpi eq, %1, %298 : vector<128x128xi32>
    %300 = arith.ori %294, %299 : vector<128x128xi1>
    %301 = arith.extui %300 : vector<128x128xi1> to vector<128x128xi32>
    %302 = arith.sitofp %301 : vector<128x128xi32> to vector<128x128xf32>
    %cst_124 = arith.constant dense<0.000000e+00> : vector<128x128xf32>
    %303 = tpu.matmul %0, %302, %cst_124 {dimension_numbers = #tpu.dot_dimension_numbers<[1], [0], [0], [1], [0, 0, 1, 1], [], []>} : vector<128x128xf32>, vector<128x128xf32>, vector<128x128xf32> -> vector<128x128xf32>
    %304 = arith.maximumf %285, %303 : vector<128x128xf32>
    %c16_125 = arith.constant 16 : index
    %c0_126 = arith.constant 0 : index
    %305 = vector.load %arg1[%c16_125, %c0_126] : memref<22x128xi32, #tpu.memory_space<vmem>>, vector<1x128xi32>
    %306 = vector.broadcast %305 : vector<1x128xi32> to vector<128x128xi32>
    %307 = arith.cmpi eq, %1, %306 : vector<128x128xi32>
    %c17_127 = arith.constant 17 : index
    %c0_128 = arith.constant 0 : index
    %308 = vector.load %arg1[%c17_127, %c0_128] : memref<22x128xi32, #tpu.memory_space<vmem>>, vector<1x128xi32>
    %c41_i32_129 = arith.constant 41 : i32
    %309 = vector.broadcast %c41_i32_129 : i32 to vector<1x128xi32>
    %310 = arith.addi %308, %309 : vector<1x128xi32>
    %311 = vector.broadcast %310 : vector<1x128xi32> to vector<128x128xi32>
    %312 = arith.cmpi eq, %1, %311 : vector<128x128xi32>
    %313 = arith.ori %307, %312 : vector<128x128xi1>
    %c18 = arith.constant 18 : index
    %c0_130 = arith.constant 0 : index
    %314 = vector.load %arg1[%c18, %c0_130] : memref<22x128xi32, #tpu.memory_space<vmem>>, vector<1x128xi32>
    %c82_i32_131 = arith.constant 82 : i32
    %315 = vector.broadcast %c82_i32_131 : i32 to vector<1x128xi32>
    %316 = arith.addi %314, %315 : vector<1x128xi32>
    %317 = vector.broadcast %316 : vector<1x128xi32> to vector<128x128xi32>
    %318 = arith.cmpi eq, %1, %317 : vector<128x128xi32>
    %319 = arith.ori %313, %318 : vector<128x128xi1>
    %320 = arith.extui %319 : vector<128x128xi1> to vector<128x128xi32>
    %321 = arith.sitofp %320 : vector<128x128xi32> to vector<128x128xf32>
    %cst_132 = arith.constant dense<0.000000e+00> : vector<128x128xf32>
    %322 = tpu.matmul %0, %321, %cst_132 {dimension_numbers = #tpu.dot_dimension_numbers<[1], [0], [0], [1], [0, 0, 1, 1], [], []>} : vector<128x128xf32>, vector<128x128xf32>, vector<128x128xf32> -> vector<128x128xf32>
    %323 = arith.maximumf %304, %322 : vector<128x128xf32>
    %c17_133 = arith.constant 17 : index
    %c0_134 = arith.constant 0 : index
    %324 = vector.load %arg1[%c17_133, %c0_134] : memref<22x128xi32, #tpu.memory_space<vmem>>, vector<1x128xi32>
    %325 = vector.broadcast %324 : vector<1x128xi32> to vector<128x128xi32>
    %326 = arith.cmpi eq, %1, %325 : vector<128x128xi32>
    %c18_135 = arith.constant 18 : index
    %c0_136 = arith.constant 0 : index
    %327 = vector.load %arg1[%c18_135, %c0_136] : memref<22x128xi32, #tpu.memory_space<vmem>>, vector<1x128xi32>
    %c41_i32_137 = arith.constant 41 : i32
    %328 = vector.broadcast %c41_i32_137 : i32 to vector<1x128xi32>
    %329 = arith.addi %327, %328 : vector<1x128xi32>
    %330 = vector.broadcast %329 : vector<1x128xi32> to vector<128x128xi32>
    %331 = arith.cmpi eq, %1, %330 : vector<128x128xi32>
    %332 = arith.ori %326, %331 : vector<128x128xi1>
    %c19 = arith.constant 19 : index
    %c0_138 = arith.constant 0 : index
    %333 = vector.load %arg1[%c19, %c0_138] : memref<22x128xi32, #tpu.memory_space<vmem>>, vector<1x128xi32>
    %c82_i32_139 = arith.constant 82 : i32
    %334 = vector.broadcast %c82_i32_139 : i32 to vector<1x128xi32>
    %335 = arith.addi %333, %334 : vector<1x128xi32>
    %336 = vector.broadcast %335 : vector<1x128xi32> to vector<128x128xi32>
    %337 = arith.cmpi eq, %1, %336 : vector<128x128xi32>
    %338 = arith.ori %332, %337 : vector<128x128xi1>
    %339 = arith.extui %338 : vector<128x128xi1> to vector<128x128xi32>
    %340 = arith.sitofp %339 : vector<128x128xi32> to vector<128x128xf32>
    %cst_140 = arith.constant dense<0.000000e+00> : vector<128x128xf32>
    %341 = tpu.matmul %0, %340, %cst_140 {dimension_numbers = #tpu.dot_dimension_numbers<[1], [0], [0], [1], [0, 0, 1, 1], [], []>} : vector<128x128xf32>, vector<128x128xf32>, vector<128x128xf32> -> vector<128x128xf32>
    %342 = arith.maximumf %323, %341 : vector<128x128xf32>
    %c18_141 = arith.constant 18 : index
    %c0_142 = arith.constant 0 : index
    %343 = vector.load %arg1[%c18_141, %c0_142] : memref<22x128xi32, #tpu.memory_space<vmem>>, vector<1x128xi32>
    %344 = vector.broadcast %343 : vector<1x128xi32> to vector<128x128xi32>
    %345 = arith.cmpi eq, %1, %344 : vector<128x128xi32>
    %c19_143 = arith.constant 19 : index
    %c0_144 = arith.constant 0 : index
    %346 = vector.load %arg1[%c19_143, %c0_144] : memref<22x128xi32, #tpu.memory_space<vmem>>, vector<1x128xi32>
    %c41_i32_145 = arith.constant 41 : i32
    %347 = vector.broadcast %c41_i32_145 : i32 to vector<1x128xi32>
    %348 = arith.addi %346, %347 : vector<1x128xi32>
    %349 = vector.broadcast %348 : vector<1x128xi32> to vector<128x128xi32>
    %350 = arith.cmpi eq, %1, %349 : vector<128x128xi32>
    %351 = arith.ori %345, %350 : vector<128x128xi1>
    %c20 = arith.constant 20 : index
    %c0_146 = arith.constant 0 : index
    %352 = vector.load %arg1[%c20, %c0_146] : memref<22x128xi32, #tpu.memory_space<vmem>>, vector<1x128xi32>
    %c82_i32_147 = arith.constant 82 : i32
    %353 = vector.broadcast %c82_i32_147 : i32 to vector<1x128xi32>
    %354 = arith.addi %352, %353 : vector<1x128xi32>
    %355 = vector.broadcast %354 : vector<1x128xi32> to vector<128x128xi32>
    %356 = arith.cmpi eq, %1, %355 : vector<128x128xi32>
    %357 = arith.ori %351, %356 : vector<128x128xi1>
    %358 = arith.extui %357 : vector<128x128xi1> to vector<128x128xi32>
    %359 = arith.sitofp %358 : vector<128x128xi32> to vector<128x128xf32>
    %cst_148 = arith.constant dense<0.000000e+00> : vector<128x128xf32>
    %360 = tpu.matmul %0, %359, %cst_148 {dimension_numbers = #tpu.dot_dimension_numbers<[1], [0], [0], [1], [0, 0, 1, 1], [], []>} : vector<128x128xf32>, vector<128x128xf32>, vector<128x128xf32> -> vector<128x128xf32>
    %361 = arith.maximumf %342, %360 : vector<128x128xf32>
    %c19_149 = arith.constant 19 : index
    %c0_150 = arith.constant 0 : index
    %362 = vector.load %arg1[%c19_149, %c0_150] : memref<22x128xi32, #tpu.memory_space<vmem>>, vector<1x128xi32>
    %363 = vector.broadcast %362 : vector<1x128xi32> to vector<128x128xi32>
    %364 = arith.cmpi eq, %1, %363 : vector<128x128xi32>
    %c20_151 = arith.constant 20 : index
    %c0_152 = arith.constant 0 : index
    %365 = vector.load %arg1[%c20_151, %c0_152] : memref<22x128xi32, #tpu.memory_space<vmem>>, vector<1x128xi32>
    %c41_i32_153 = arith.constant 41 : i32
    %366 = vector.broadcast %c41_i32_153 : i32 to vector<1x128xi32>
    %367 = arith.addi %365, %366 : vector<1x128xi32>
    %368 = vector.broadcast %367 : vector<1x128xi32> to vector<128x128xi32>
    %369 = arith.cmpi eq, %1, %368 : vector<128x128xi32>
    %370 = arith.ori %364, %369 : vector<128x128xi1>
    %c21 = arith.constant 21 : index
    %c0_154 = arith.constant 0 : index
    %371 = vector.load %arg1[%c21, %c0_154] : memref<22x128xi32, #tpu.memory_space<vmem>>, vector<1x128xi32>
    %c82_i32_155 = arith.constant 82 : i32
    %372 = vector.broadcast %c82_i32_155 : i32 to vector<1x128xi32>
    %373 = arith.addi %371, %372 : vector<1x128xi32>
    %374 = vector.broadcast %373 : vector<1x128xi32> to vector<128x128xi32>
    %375 = arith.cmpi eq, %1, %374 : vector<128x128xi32>
    %376 = arith.ori %370, %375 : vector<128x128xi1>
    %377 = arith.extui %376 : vector<128x128xi1> to vector<128x128xi32>
    %378 = arith.sitofp %377 : vector<128x128xi32> to vector<128x128xf32>
    %cst_156 = arith.constant dense<0.000000e+00> : vector<128x128xf32>
    %379 = tpu.matmul %0, %378, %cst_156 {dimension_numbers = #tpu.dot_dimension_numbers<[1], [0], [0], [1], [0, 0, 1, 1], [], []>} : vector<128x128xf32>, vector<128x128xf32>, vector<128x128xf32> -> vector<128x128xf32>
    %380 = arith.maximumf %361, %379 : vector<128x128xf32>
    %cst_157 = arith.constant 0.000000e+00 : f32
    %381 = vector.broadcast %cst_157 : f32 to vector<128x128xf32>
    %382 = arith.maximumf %380, %381 : vector<128x128xf32>
    %c0_158 = arith.constant 0 : index
    %c0_159 = arith.constant 0 : index
    %383 = vector.load %arg3[%c0_158, %c0_159] : memref<128x128xf32, #tpu.memory_space<vmem>>, vector<128x128xf32>
    tpu.vector_store %arg3[%c0_158, %c0_159], %382 {strides = array<i32>} : memref<128x128xf32, #tpu.memory_space<vmem>>, vector<128x128xf32>,
    return
  }
  func.func @transform_0(%arg0: i32) -> (i32, i32) {
    %c0_i32 = arith.constant 0 : i32
    %c0_i32_0 = arith.constant 0 : i32
    return %c0_i32, %arg0 : i32, i32
  }
  func.func @transform_1(%arg0: i32) -> (i32, i32) {
    %c0_i32 = arith.constant 0 : i32
    %c0_i32_0 = arith.constant 0 : i32
    %c0_i32_1 = arith.constant 0 : i32
    return %c0_i32, %c0_i32_0 : i32, i32
  }
  func.func @transform_2(%arg0: i32) -> (i32, i32) {
    %c0_i32 = arith.constant 0 : i32
    %c0_i32_0 = arith.constant 0 : i32
    return %c0_i32, %arg0 : i32, i32
  }
}

</mosaic_0001>

<bundles_post_ra>
// kernel: tpu_custom_call.1
= control target key start
LH: loop header
LB: loop body
LE: loop exit
PB: predicated region body
PF: predicated region fallthrough
CT: control target
= control target key end

     0   :  { %7 = vsyncpa [#allocation3], 0  ;;  %s8373_s0 = inlined_call_operand.hbm [shape: s32[22,128], index: 0, kind: input, shape index: {}]   ;;  %s8374_s1 = inlined_call_operand.hbm [shape: f32[128,128], index: 1, kind: input, shape index: {}]   ;;  %s8375_s2 = inlined_call_operand.hbm [shape: f32[128,128], index: 2, kind: output, shape index: {}]  }
   0x1   :  { %8 = vsyncpa [#allocation6], 0 }
   0x2   :  { %9 = vsyncpa [#allocation4], 0  ;;  %s14_s11 = sshll.u32 %s8373_s0, 4  ;;  %s4905_s12 = smov [#allocation2]   ;;  %s15_s11 = int_to_ptr.hbm [resolvable:$true] %s14_s11 }
   0x3   :  { %s16_s13 = sshll.u32 %s4905_s12, 4  ;;  %s27_s16 = sshll.u32 %s8374_s1, 4  ;;  %s17_s13 = int_to_ptr.vmem [resolvable:$true] %s16_s13  ;;  %s28_s16 = int_to_ptr.hbm [resolvable:$true] %s27_s16 }
   0x4   :  { %s4906_s17 = smov 128   ;;  %s4907_s18 = smov 8  }
   0x5   :  { %22 = dma.hbm_to_vmem [thread:$0]  %s15_s11, 384, %s17_s13, [#allocation3], %s4906_s17, %s4906_s17, %s4907_s18  }
   0x6   :  { %s4908_s19 = smov [#allocation5]  }
   0x7   :  { %s29_s20 = sshll.u32 %s4908_s19, 4  ;;  %s30_s20 = int_to_ptr.vmem [resolvable:$true] %s29_s20 }
   0x8   :  { %35 = dma.hbm_to_vmem [thread:$0]  %s28_s16, 2048, %s30_s20, [#allocation6], %s4906_s17, %s4906_s17, %s4907_s18  }
   0x9   :  { %4899 = dma.done.wait [#allocation3], 384  }
   0xa   :  { %4900 = vsyncadd [#allocation3], 4294966912 }
   0xb   :  { %4901 = dma.done.wait [#allocation6], 2048  }
   0xc   :  { %4902 = vsyncadd [#allocation6], 4294965248  ;;  %v60_v0 = vlaneseq  ;;  %v4943_v3 = vld [vmem:[#allocation2] ss:$0 sm:$0xff]  ;;  %v95_v4 = vld [vmem:[#allocation2 + $0x1] sm:$0x1] }
   0xd   :  { %v96_v5 = vadd.s32 41, %v95_v4  ;;  %v130_v6 = vld [vmem:[#allocation2 + $0x2] sm:$0x1]  ;;  %v313_v7 = vld [vmem:[#allocation2 + $0x3] sm:$0x1]  ;;  %v8382_v24 = vmov 1.0  }
   0xe   :  { %v4938_v1 = vshrl.u32 %v60_v0, 7  ;;  %v131_v9 = vadd.s32 82, %v130_v6  ;;  %v4950_v10 = vld [vmem:[#allocation2 + $0x2] ss:$0 sm:$0xff]  ;;  %v478_v11 = vadd.s32 41, %v313_v7  ;;  %v279_v15 = vadd.s32 41, %v130_v6 }
   0xf   :  { %v512_v12 = vld [vmem:[#allocation2 + $0x4] sm:$0x1]  ;;  %v4952_v13 = vperm.slane %v96_v5, 0  ;;  %v314_v16 = vadd.s32 82, %v313_v7  ;;  %v4964_v20 = vld [vmem:[#allocation2 + $0x1] ss:$0 sm:$0xff] }
  0x10   :  { %v4941_v2 = vadd.s32 120, %v4938_v1  ;;  %v4946_v8 = vadd.s32 112, %v4938_v1  ;;  %v513_v14 = vadd.s32 82, %v512_v12  ;;  %v4954_v17 = vperm.slane %v131_v9, 0  ;;  %v4966_v21 = vld [vmem:[#allocation2 + $0x5] sm:$0x1] }
  0x11   :  { %v4956_v18 = vperm.slane %v478_v11, 0  ;;  %v4975_v22 = vperm.slane %v279_v15, 0  ;;  %v4983_v23 = vperm.slane %v314_v16, 0  ;;  %v677_v25 = vadd.s32 41, %v512_v12  ;;  %v4996_v27 = vld [vmem:[#allocation2 + $0x3] ss:$0 sm:$0xff] }
  0x12   :  { %vm94_vm0 = vcmp.eq.s32.totalorder %v4941_v2, %v4943_v3  ;;  %vm113_vm1 = vcmp.eq.s32.totalorder %v4941_v2, %v4952_v13  ;;  %vm477_vm2 = vcmp.eq.s32.totalorder %v4941_v2, %v4950_v10  ;;  %v4962_v19 = vperm.slane %v513_v14, 0  ;;  %v1109_v43 = vld [vmem:[#allocation2 + $0x7] sm:$0x1]  ;;  %v1308_v44 = vld [vmem:[#allocation2 + $0x8] sm:$0x1]  ;;  %v5436_v47 = vld [vmem:[#allocation5] sm:$0xff] }
  0x13   :  { %vm129_vm3 = vmor %vm94_vm0, %vm113_vm1  ;;  %vm148_vm4 = vcmp.eq.s32.totalorder %v4941_v2, %v4954_v17  ;;  %vm495_vm5 = vcmp.eq.s32.totalorder %v4941_v2, %v4956_v18  ;;  %vm93_vm8 = vcmp.eq.s32.totalorder %v4946_v8, %v4943_v3  ;;  %vm112_vm9 = vcmp.eq.s32.totalorder %v4946_v8, %v4952_v13  ;;  %v910_v48 = vld [vmem:[#allocation2 + $0x6] sm:$0x1]  ;;  %v5457_v53 = vld [vmem:[#allocation2 + $0x9] sm:$0x1]  ;;  %s4910_s0 = smov [#allocation7]   ;;  %s4081_s23 = sshll.u32 %s8375_s2, 4  ;;  %s4082_s23 = int_to_ptr.hbm [resolvable:$true] %s4081_s23 }
  0x14   :  { %vm164_vm6 = vmor %vm129_vm3, %vm148_vm4  ;;  %vm530_vm7 = vcmp.eq.s32.totalorder %v4941_v2, %v4962_v19  ;;  %vm147_vm11 = vcmp.eq.s32.totalorder %v4946_v8, %v4954_v17  ;;  %v712_v26 = vadd.s32 82, %v4966_v21  ;;  %vm278_vm13 = vcmp.eq.s32.totalorder %v4941_v2, %v4964_v20  ;;  %v5442_v49 = vld [vmem:[#allocation2 + $0x6] ss:$0 sm:$0xff]  ;;  %v5481_v57 = vld [vmem:[#allocation2 + $0x4] ss:$0 sm:$0xff]  ;;  %s4079_s1 = sshll.u32 %s4910_s0, 4  ;;  %s4080_s1 = int_to_ptr.vmem [resolvable:$true] %s4079_s1 }
  0x15   :  { %4111 = vmatpush.msk.msra.mxu0 %vm164_vm6, %v8382_v24  ;;  %vm511_vm10 = vmor %vm477_vm2, %vm495_vm5  ;;  %vm296_vm14 = vcmp.eq.s32.totalorder %v4941_v2, %v4975_v22  ;;  %vm331_vm0 = vcmp.eq.s32.totalorder %v4941_v2, %v4983_v23  ;;  %v5001_v28 = vperm.slane %v677_v25, 0  ;;  %vm476_vm2 = vcmp.eq.s32.totalorder %v4946_v8, %v4950_v10  ;;  %v45_v62 = vld [vmem:[#allocation5 + $0x8] sm:$0xff]  ;;  %v46_v7 = vld [vmem:[#allocation5 + $0x10] sm:$0xff] }
  0x16   :  { %vm546_vm12 = vmor %vm511_vm10, %vm530_vm7  ;;  %v5003_v29 = vperm.slane %v712_v26, 0  ;;  %vm494_vm3 = vcmp.eq.s32.totalorder %v4946_v8, %v4956_v18  ;;  %v5010_v30 = vadd.s32 104, %v4938_v1  ;;  %vm529_vm5 = vcmp.eq.s32.totalorder %v4946_v8, %v4962_v19  ;;  %v5500_v63 = vld [vmem:[#allocation2 + $0x7] ss:$0 sm:$0xff]  ;;  %v5519_v4 = vld [vmem:[#allocation2 + $0x5] ss:$0 sm:$0xff] }
  0x17   :  { %4175 = vmatpush.msk.msra.mxu2 %vm546_vm12, %v8382_v24  ;;  %vm128_vm15 = vmor %vm93_vm8, %vm112_vm9  ;;  %vm676_vm7 = vcmp.eq.s32.totalorder %v4941_v2, %v4996_v27  ;;  %vm694_vm8 = vcmp.eq.s32.totalorder %v4941_v2, %v5001_v28  ;;  %v5041_v31 = vadd.s32 96, %v4938_v1  ;;  %v5072_v32 = vadd.s32 88, %v4938_v1  ;;  %v47_v9 = vld [vmem:[#allocation5 + $0x18] sm:$0xff]  ;;  %v49_v11 = vld [vmem:[#allocation5 + $0x28] sm:$0xff] }
  0x18   :  { %vm163_vm1 = vmor %vm128_vm15, %vm147_vm11  ;;  %vm729_vm10 = vcmp.eq.s32.totalorder %v4941_v2, %v5003_v29  ;;  %vm92_vm12 = vcmp.eq.s32.totalorder %v5010_v30, %v4943_v3  ;;  %vm146_vm15 = vcmp.eq.s32.totalorder %v5010_v30, %v4954_v17  ;;  %v5103_v33 = vadd.s32 80, %v4938_v1  ;;  %v50_v12 = vld [vmem:[#allocation5 + $0x30] sm:$0xff]  ;;  %v52_v14 = vld [vmem:[#allocation5 + $0x40] sm:$0xff] }
  0x19   :  { %4112 = vmatpush.msk.msra.mxu0 %vm163_vm1, %v8382_v24  ;;  %vm312_vm4 = vmor %vm278_vm13, %vm296_vm14  ;;  %vm111_vm13 = vcmp.eq.s32.totalorder %v5010_v30, %v4952_v13  ;;  %vm277_vm1 = vcmp.eq.s32.totalorder %v4946_v8, %v4964_v20  ;;  %v5134_v34 = vadd.s32 72, %v4938_v1  ;;  %v5165_v35 = vadd.s32 64, %v4938_v1  ;;  %v53_v15 = vld [vmem:[#allocation5 + $0x48] sm:$0xff]  ;;  %v54_v16 = vld [vmem:[#allocation5 + $0x50] sm:$0xff] }
  0x1a   :  { %vm347_vm6 = vmor %vm312_vm4, %vm331_vm0  ;;  %vm330_vm4 = vcmp.eq.s32.totalorder %v4946_v8, %v4983_v23  ;;  %v5196_v36 = vadd.s32 56, %v4938_v1  ;;  %v5227_v37 = vadd.s32 48, %v4938_v1  ;;  %v5258_v38 = vadd.s32 40, %v4938_v1  ;;  %v1706_v26 = vld [vmem:[#allocation2 + $0xa] sm:$0x1] }
  0x1b   :  { %4143 = vmatpush.msk.msra.mxu1 %vm347_vm6, %v8382_v24  ;;  %vm510_vm9 = vmor %vm476_vm2, %vm494_vm3  ;;  %vm295_vm2 = vcmp.eq.s32.totalorder %v4946_v8, %v4975_v22  ;;  %vm475_vm6 = vcmp.eq.s32.totalorder %v5010_v30, %v4950_v10  ;;  %v5289_v39 = vadd.s32 32, %v4938_v1  ;;  %v5320_v40 = vadd.s32 24, %v4938_v1 }
  0x1c   :  { %vm545_vm11 = vmor %vm510_vm9, %vm529_vm5  ;;  %vm528_vm9 = vcmp.eq.s32.totalorder %v5010_v30, %v4962_v19  ;;  %v5351_v41 = vadd.s32 16, %v4938_v1  ;;  %v5382_v42 = vadd.s32 8, %v4938_v1  ;;  %v1274_v45 = vadd.s32 41, %v1109_v43 }
  0x1d   :  { %4176 = vmatpush.msk.msra.mxu2 %vm545_vm11, %v8382_v24  ;;  %vm710_vm14 = vmor %vm676_vm7, %vm694_vm8  ;;  %vm493_vm7 = vcmp.eq.s32.totalorder %v5010_v30, %v4956_v18  ;;  %vm675_vm11 = vcmp.eq.s32.totalorder %v4946_v8, %v4996_v27  ;;  %8400 = vst [vmem:[#allocation11_spill] sm:$0xff] %v5289_v39  ;;  %v1309_v46 = vadd.s32 82, %v1308_v44  ;;  %v876_v52 = vadd.s32 41, %v4966_v21  ;;  %v59_v21 = vld [vmem:[#allocation5 + $0x78] sm:$0xff] }
  0x1e   :  { %vm745_vm0 = vmor %vm710_vm14, %vm729_vm10  ;;  %vm728_vm14 = vcmp.eq.s32.totalorder %v4946_v8, %v5003_v29  ;;  %8401 = vst [vmem:[#allocation12_spill] sm:$0xff] %v5320_v40  ;;  %v5444_v50 = vperm.slane %v1274_v45, 0  ;;  %v911_v54 = vadd.s32 82, %v910_v48  ;;  %v1473_v55 = vadd.s32 41, %v1308_v44  ;;  %v5960_v45 = vld [vmem:[#allocation2 + $0xa] ss:$0 sm:$0xff] }
  0x1f   :  { %4207 = vmatpush.msk.msra.mxu3 %vm745_vm0, %v8382_v24  ;;  %vm127_vm3 = vmor %vm92_vm12, %vm111_vm13  ;;  %vm693_vm12 = vcmp.eq.s32.totalorder %v4946_v8, %v5001_v28  ;;  %vm91_vm0 = vcmp.eq.s32.totalorder %v5041_v31, %v4943_v3  ;;  %8402 = vst [vmem:[#allocation13_spill] sm:$0xff] %v5351_v41  ;;  %v5449_v51 = vperm.slane %v1309_v46, 0  ;;  %v1508_v56 = vadd.s32 82, %v5457_v53 }
  0x20   :  { %vm162_vm5 = vmor %vm127_vm3, %vm146_vm15  ;;  %vm145_vm3 = vcmp.eq.s32.totalorder %v5041_v31, %v4954_v17  ;;  %8403 = vst [vmem:[#allocation14_spill] sm:$0xff] %v5382_v42  ;;  %v5483_v58 = vperm.slane %v876_v52, 0  ;;  %v1075_v59 = vadd.s32 41, %v910_v48  ;;  %v5491_v60 = vperm.slane %v911_v54, 0 }
  0x21   :  { %4113 = vmatpush.msk.msra.mxu0 %vm162_vm5, %v8382_v24  ;;  %vm311_vm8 = vmor %vm277_vm1, %vm295_vm2  ;;  %vm110_vm1 = vcmp.eq.s32.totalorder %v5041_v31, %v4952_v13  ;;  %vm276_vm5 = vcmp.eq.s32.totalorder %v5010_v30, %v4964_v20  ;;  %v1110_v61 = vadd.s32 82, %v1109_v43  ;;  %v5502_v0 = vperm.slane %v1473_v55, 0  ;;  %v2303_v43 = vld [vmem:[#allocation2 + $0xd] sm:$0x1] }
  0x22   :  { %vm346_vm10 = vmor %vm311_vm8, %vm330_vm4  ;;  %vm329_vm8 = vcmp.eq.s32.totalorder %v5010_v30, %v4983_v23  ;;  %v5521_v5 = vperm.slane %v1075_v59, 0  ;;  %v1707_v44 = vadd.s32 82, %v1706_v26 }
  0x23   :  { %4144 = vmatpush.msk.msra.mxu1 %vm346_vm10, %v8382_v24  ;;  %vm509_vm13 = vmor %vm475_vm6, %vm493_vm7  ;;  %vm294_vm6 = vcmp.eq.s32.totalorder %v5010_v30, %v4975_v22  ;;  %vm474_vm10 = vcmp.eq.s32.totalorder %v5041_v31, %v4950_v10  ;;  %v5529_v6 = vperm.slane %v1110_v61, 0 }
  0x24   :  { %vm544_vm15 = vmor %vm509_vm13, %vm528_vm9  ;;  %vm527_vm13 = vcmp.eq.s32.totalorder %v5041_v31, %v4962_v19  ;;  %v5992_v54 = vperm.slane %v1707_v44, 0  ;;  %v4765_v44 = vld [vmem:[#allocation5 + $0x20] sm:$0xff] }
  0x25   :  { %4177 = vmatpush.msk.msra.mxu2 %vm544_vm15, %v8382_v24  ;;  %vm709_vm2 = vmor %vm675_vm11, %vm693_vm12  ;;  %vm492_vm11 = vcmp.eq.s32.totalorder %v5041_v31, %v4956_v18  ;;  %vm674_vm15 = vcmp.eq.s32.totalorder %v5010_v30, %v4996_v27 }
  0x26   :  { %vm744_vm4 = vmor %vm709_vm2, %vm728_vm14  ;;  %vm727_vm2 = vcmp.eq.s32.totalorder %v5010_v30, %v5003_v29 }
  0x27   :  { %4208 = vmatpush.msk.msra.mxu3 %vm744_vm4, %v8382_v24  ;;  %vm126_vm7 = vmor %vm91_vm0, %vm110_vm1  ;;  %vm692_vm0 = vcmp.eq.s32.totalorder %v5010_v30, %v5001_v28  ;;  %vm90_vm4 = vcmp.eq.s32.totalorder %v5072_v32, %v4943_v3 }
  0x28   :  { %vm161_vm9 = vmor %vm126_vm7, %vm145_vm3  ;;  %vm144_vm7 = vcmp.eq.s32.totalorder %v5072_v32, %v4954_v17 }
  0x29   :  { %4114 = vmatpush.msk.msra.mxu0 %vm161_vm9, %v8382_v24  ;;  %vm310_vm12 = vmor %vm276_vm5, %vm294_vm6  ;;  %vm109_vm5 = vcmp.eq.s32.totalorder %v5072_v32, %v4952_v13  ;;  %vm275_vm9 = vcmp.eq.s32.totalorder %v5041_v31, %v4964_v20 }
  0x2a   :  { %vm345_vm14 = vmor %vm310_vm12, %vm329_vm8  ;;  %vm328_vm12 = vcmp.eq.s32.totalorder %v5041_v31, %v4983_v23 }
  0x2b   :  { %4145 = vmatpush.msk.msra.mxu1 %vm345_vm14, %v8382_v24  ;;  %vm508_vm1 = vmor %vm474_vm10, %vm492_vm11  ;;  %vm293_vm10 = vcmp.eq.s32.totalorder %v5041_v31, %v4975_v22  ;;  %vm473_vm14 = vcmp.eq.s32.totalorder %v5072_v32, %v4950_v10 }
  0x2c   :  { %vm543_vm3 = vmor %vm508_vm1, %vm527_vm13  ;;  %vm526_vm1 = vcmp.eq.s32.totalorder %v5072_v32, %v4962_v19 }
  0x2d   :  { %4178 = vmatpush.msk.msra.mxu2 %vm543_vm3, %v8382_v24  ;;  %vm708_vm6 = vmor %vm674_vm15, %vm692_vm0  ;;  %vm491_vm15 = vcmp.eq.s32.totalorder %v5072_v32, %v4956_v18  ;;  %vm673_vm3 = vcmp.eq.s32.totalorder %v5041_v31, %v4996_v27 }
  0x2e   :  { %vm743_vm8 = vmor %vm708_vm6, %vm727_vm2  ;;  %vm726_vm6 = vcmp.eq.s32.totalorder %v5041_v31, %v5003_v29 }
  0x2f   :  { %4209 = vmatpush.msk.msra.mxu3 %vm743_vm8, %v8382_v24  ;;  %vm125_vm11 = vmor %vm90_vm4, %vm109_vm5  ;;  %vm691_vm4 = vcmp.eq.s32.totalorder %v5041_v31, %v5001_v28  ;;  %vm89_vm8 = vcmp.eq.s32.totalorder %v5103_v33, %v4943_v3 }
  0x30   :  { %vm160_vm13 = vmor %vm125_vm11, %vm144_vm7  ;;  %vm143_vm11 = vcmp.eq.s32.totalorder %v5103_v33, %v4954_v17 }
  0x31   :  { %4115 = vmatpush.msk.msra.mxu0 %vm160_vm13, %v8382_v24  ;;  %vm309_vm0 = vmor %vm275_vm9, %vm293_vm10  ;;  %vm108_vm9 = vcmp.eq.s32.totalorder %v5103_v33, %v4952_v13  ;;  %vm274_vm13 = vcmp.eq.s32.totalorder %v5072_v32, %v4964_v20 }
  0x32   :  { %vm344_vm2 = vmor %vm309_vm0, %vm328_vm12  ;;  %vm327_vm0 = vcmp.eq.s32.totalorder %v5072_v32, %v4983_v23 }
  0x33   :  { %4146 = vmatpush.msk.msra.mxu1 %vm344_vm2, %v8382_v24  ;;  %vm507_vm5 = vmor %vm473_vm14, %vm491_vm15  ;;  %vm292_vm14 = vcmp.eq.s32.totalorder %v5072_v32, %v4975_v22  ;;  %vm472_vm2 = vcmp.eq.s32.totalorder %v5103_v33, %v4950_v10 }
  0x34   :  { %vm542_vm7 = vmor %vm507_vm5, %vm526_vm1  ;;  %vm525_vm5 = vcmp.eq.s32.totalorder %v5103_v33, %v4962_v19 }
  0x35   :  { %4179 = vmatpush.msk.msra.mxu2 %vm542_vm7, %v8382_v24  ;;  %vm707_vm10 = vmor %vm673_vm3, %vm691_vm4  ;;  %vm490_vm3 = vcmp.eq.s32.totalorder %v5103_v33, %v4956_v18  ;;  %vm672_vm7 = vcmp.eq.s32.totalorder %v5072_v32, %v4996_v27 }
  0x36   :  { %vm742_vm12 = vmor %vm707_vm10, %vm726_vm6  ;;  %vm725_vm10 = vcmp.eq.s32.totalorder %v5072_v32, %v5003_v29 }
  0x37   :  { %4210 = vmatpush.msk.msra.mxu3 %vm742_vm12, %v8382_v24  ;;  %vm124_vm15 = vmor %vm89_vm8, %vm108_vm9  ;;  %vm690_vm8 = vcmp.eq.s32.totalorder %v5072_v32, %v5001_v28  ;;  %vm88_vm12 = vcmp.eq.s32.totalorder %v5134_v34, %v4943_v3 }
  0x38   :  { %vm159_vm1 = vmor %vm124_vm15, %vm143_vm11  ;;  %vm142_vm15 = vcmp.eq.s32.totalorder %v5134_v34, %v4954_v17 }
  0x39   :  { %4116 = vmatpush.msk.msra.mxu0 %vm159_vm1, %v8382_v24  ;;  %vm308_vm4 = vmor %vm274_vm13, %vm292_vm14  ;;  %vm107_vm13 = vcmp.eq.s32.totalorder %v5134_v34, %v4952_v13  ;;  %vm273_vm1 = vcmp.eq.s32.totalorder %v5103_v33, %v4964_v20 }
  0x3a   :  { %vm343_vm6 = vmor %vm308_vm4, %vm327_vm0  ;;  %vm326_vm4 = vcmp.eq.s32.totalorder %v5103_v33, %v4983_v23 }
  0x3b   :  { %4147 = vmatpush.msk.msra.mxu1 %vm343_vm6, %v8382_v24  ;;  %vm506_vm9 = vmor %vm472_vm2, %vm490_vm3  ;;  %vm291_vm2 = vcmp.eq.s32.totalorder %v5103_v33, %v4975_v22  ;;  %vm471_vm6 = vcmp.eq.s32.totalorder %v5134_v34, %v4950_v10 }
  0x3c   :  { %vm541_vm11 = vmor %vm506_vm9, %vm525_vm5  ;;  %vm524_vm9 = vcmp.eq.s32.totalorder %v5134_v34, %v4962_v19 }
  0x3d   :  { %4180 = vmatpush.msk.msra.mxu2 %vm541_vm11, %v8382_v24  ;;  %vm706_vm14 = vmor %vm672_vm7, %vm690_vm8  ;;  %vm489_vm7 = vcmp.eq.s32.totalorder %v5134_v34, %v4956_v18  ;;  %vm671_vm11 = vcmp.eq.s32.totalorder %v5103_v33, %v4996_v27 }
  0x3e   :  { %vm741_vm0 = vmor %vm706_vm14, %vm725_vm10  ;;  %vm724_vm14 = vcmp.eq.s32.totalorder %v5103_v33, %v5003_v29 }
  0x3f   :  { %4211 = vmatpush.msk.msra.mxu3 %vm741_vm0, %v8382_v24  ;;  %vm123_vm3 = vmor %vm88_vm12, %vm107_vm13  ;;  %vm689_vm12 = vcmp.eq.s32.totalorder %v5103_v33, %v5001_v28  ;;  %vm87_vm0 = vcmp.eq.s32.totalorder %v5165_v35, %v4943_v3 }
  0x40   :  { %vm158_vm5 = vmor %vm123_vm3, %vm142_vm15  ;;  %vm141_vm3 = vcmp.eq.s32.totalorder %v5165_v35, %v4954_v17 }
  0x41   :  { %4117 = vmatpush.msk.msra.mxu0 %vm158_vm5, %v8382_v24  ;;  %vm307_vm8 = vmor %vm273_vm1, %vm291_vm2  ;;  %vm106_vm1 = vcmp.eq.s32.totalorder %v5165_v35, %v4952_v13  ;;  %vm272_vm5 = vcmp.eq.s32.totalorder %v5134_v34, %v4964_v20 }
  0x42   :  { %vm342_vm10 = vmor %vm307_vm8, %vm326_vm4  ;;  %vm325_vm8 = vcmp.eq.s32.totalorder %v5134_v34, %v4983_v23 }
  0x43   :  { %4148 = vmatpush.msk.msra.mxu1 %vm342_vm10, %v8382_v24  ;;  %vm505_vm13 = vmor %vm471_vm6, %vm489_vm7  ;;  %vm290_vm6 = vcmp.eq.s32.totalorder %v5134_v34, %v4975_v22  ;;  %vm470_vm10 = vcmp.eq.s32.totalorder %v5165_v35, %v4950_v10 }
  0x44   :  { %vm540_vm15 = vmor %vm505_vm13, %vm524_vm9  ;;  %vm523_vm13 = vcmp.eq.s32.totalorder %v5165_v35, %v4962_v19 }
  0x45   :  { %4181 = vmatpush.msk.msra.mxu2 %vm540_vm15, %v8382_v24  ;;  %vm705_vm2 = vmor %vm671_vm11, %vm689_vm12  ;;  %vm488_vm11 = vcmp.eq.s32.totalorder %v5165_v35, %v4956_v18  ;;  %vm670_vm15 = vcmp.eq.s32.totalorder %v5134_v34, %v4996_v27 }
  0x46   :  { %vm740_vm4 = vmor %vm705_vm2, %vm724_vm14  ;;  %vm723_vm2 = vcmp.eq.s32.totalorder %v5134_v34, %v5003_v29 }
  0x47   :  { %4212 = vmatpush.msk.msra.mxu3 %vm740_vm4, %v8382_v24  ;;  %vm122_vm7 = vmor %vm87_vm0, %vm106_vm1  ;;  %vm688_vm0 = vcmp.eq.s32.totalorder %v5134_v34, %v5001_v28  ;;  %vm86_vm4 = vcmp.eq.s32.totalorder %v5196_v36, %v4943_v3 }
  0x48   :  { %vm157_vm9 = vmor %vm122_vm7, %vm141_vm3  ;;  %vm140_vm7 = vcmp.eq.s32.totalorder %v5196_v36, %v4954_v17 }
  0x49   :  { %4118 = vmatpush.msk.msra.mxu0 %vm157_vm9, %v8382_v24  ;;  %vm306_vm12 = vmor %vm272_vm5, %vm290_vm6  ;;  %vm105_vm5 = vcmp.eq.s32.totalorder %v5196_v36, %v4952_v13  ;;  %vm271_vm9 = vcmp.eq.s32.totalorder %v5165_v35, %v4964_v20 }
  0x4a   :  { %vm341_vm14 = vmor %vm306_vm12, %vm325_vm8  ;;  %vm324_vm12 = vcmp.eq.s32.totalorder %v5165_v35, %v4983_v23 }
  0x4b   :  { %4149 = vmatpush.msk.msra.mxu1 %vm341_vm14, %v8382_v24  ;;  %vm504_vm1 = vmor %vm470_vm10, %vm488_vm11  ;;  %vm289_vm10 = vcmp.eq.s32.totalorder %v5165_v35, %v4975_v22  ;;  %vm469_vm14 = vcmp.eq.s32.totalorder %v5196_v36, %v4950_v10 }
  0x4c   :  { %vm539_vm3 = vmor %vm504_vm1, %vm523_vm13  ;;  %vm522_vm1 = vcmp.eq.s32.totalorder %v5196_v36, %v4962_v19 }
  0x4d   :  { %4182 = vmatpush.msk.msra.mxu2 %vm539_vm3, %v8382_v24  ;;  %vm704_vm6 = vmor %vm670_vm15, %vm688_vm0  ;;  %vm487_vm15 = vcmp.eq.s32.totalorder %v5196_v36, %v4956_v18  ;;  %vm669_vm3 = vcmp.eq.s32.totalorder %v5165_v35, %v4996_v27 }
  0x4e   :  { %vm739_vm8 = vmor %vm704_vm6, %vm723_vm2  ;;  %vm722_vm6 = vcmp.eq.s32.totalorder %v5165_v35, %v5003_v29 }
  0x4f   :  { %4213 = vmatpush.msk.msra.mxu3 %vm739_vm8, %v8382_v24  ;;  %vm121_vm11 = vmor %vm86_vm4, %vm105_vm5  ;;  %vm687_vm4 = vcmp.eq.s32.totalorder %v5165_v35, %v5001_v28  ;;  %vm85_vm8 = vcmp.eq.s32.totalorder %v5227_v37, %v4943_v3 }
  0x50   :  { %vm156_vm13 = vmor %vm121_vm11, %vm140_vm7  ;;  %vm139_vm11 = vcmp.eq.s32.totalorder %v5227_v37, %v4954_v17 }
  0x51   :  { %4119 = vmatpush.msk.msra.mxu0 %vm156_vm13, %v8382_v24  ;;  %vm305_vm0 = vmor %vm271_vm9, %vm289_vm10  ;;  %vm104_vm9 = vcmp.eq.s32.totalorder %v5227_v37, %v4952_v13  ;;  %vm270_vm13 = vcmp.eq.s32.totalorder %v5196_v36, %v4964_v20 }
  0x52   :  { %vm340_vm2 = vmor %vm305_vm0, %vm324_vm12  ;;  %vm323_vm0 = vcmp.eq.s32.totalorder %v5196_v36, %v4983_v23 }
  0x53   :  { %4150 = vmatpush.msk.msra.mxu1 %vm340_vm2, %v8382_v24  ;;  %vm503_vm5 = vmor %vm469_vm14, %vm487_vm15  ;;  %vm288_vm14 = vcmp.eq.s32.totalorder %v5196_v36, %v4975_v22  ;;  %vm468_vm2 = vcmp.eq.s32.totalorder %v5227_v37, %v4950_v10 }
  0x54   :  { %vm538_vm7 = vmor %vm503_vm5, %vm522_vm1  ;;  %vm521_vm5 = vcmp.eq.s32.totalorder %v5227_v37, %v4962_v19 }
  0x55   :  { %4183 = vmatpush.msk.msra.mxu2 %vm538_vm7, %v8382_v24  ;;  %vm703_vm10 = vmor %vm669_vm3, %vm687_vm4  ;;  %vm486_vm3 = vcmp.eq.s32.totalorder %v5227_v37, %v4956_v18  ;;  %vm668_vm7 = vcmp.eq.s32.totalorder %v5196_v36, %v4996_v27 }
  0x56   :  { %vm738_vm12 = vmor %vm703_vm10, %vm722_vm6  ;;  %vm721_vm10 = vcmp.eq.s32.totalorder %v5196_v36, %v5003_v29 }
  0x57   :  { %4214 = vmatpush.msk.msra.mxu3 %vm738_vm12, %v8382_v24  ;;  %vm120_vm15 = vmor %vm85_vm8, %vm104_vm9  ;;  %vm686_vm8 = vcmp.eq.s32.totalorder %v5196_v36, %v5001_v28  ;;  %vm84_vm12 = vcmp.eq.s32.totalorder %v5258_v38, %v4943_v3 }
  0x58   :  { %vm155_vm1 = vmor %vm120_vm15, %vm139_vm11  ;;  %vm138_vm15 = vcmp.eq.s32.totalorder %v5258_v38, %v4954_v17 }
  0x59   :  { %4120 = vmatpush.msk.msra.mxu0 %vm155_vm1, %v8382_v24  ;;  %vm304_vm4 = vmor %vm270_vm13, %vm288_vm14  ;;  %vm103_vm13 = vcmp.eq.s32.totalorder %v5258_v38, %v4952_v13  ;;  %vm269_vm1 = vcmp.eq.s32.totalorder %v5227_v37, %v4964_v20 }
  0x5a   :  { %vm339_vm6 = vmor %vm304_vm4, %vm323_vm0  ;;  %vm322_vm4 = vcmp.eq.s32.totalorder %v5227_v37, %v4983_v23 }
  0x5b   :  { %4151 = vmatpush.msk.msra.mxu1 %vm339_vm6, %v8382_v24  ;;  %vm502_vm9 = vmor %vm468_vm2, %vm486_vm3  ;;  %vm287_vm2 = vcmp.eq.s32.totalorder %v5227_v37, %v4975_v22  ;;  %vm467_vm6 = vcmp.eq.s32.totalorder %v5258_v38, %v4950_v10 }
  0x5c   :  { %vm537_vm11 = vmor %vm502_vm9, %vm521_vm5  ;;  %vm520_vm9 = vcmp.eq.s32.totalorder %v5258_v38, %v4962_v19 }
  0x5d   :  { %4184 = vmatpush.msk.msra.mxu2 %vm537_vm11, %v8382_v24  ;;  %vm702_vm14 = vmor %vm668_vm7, %vm686_vm8  ;;  %vm485_vm7 = vcmp.eq.s32.totalorder %v5258_v38, %v4956_v18  ;;  %vm667_vm11 = vcmp.eq.s32.totalorder %v5227_v37, %v4996_v27 }
  0x5e   :  { %vm737_vm0 = vmor %vm702_vm14, %vm721_vm10  ;;  %vm720_vm14 = vcmp.eq.s32.totalorder %v5227_v37, %v5003_v29 }
  0x5f   :  { %4215 = vmatpush.msk.msra.mxu3 %vm737_vm0, %v8382_v24  ;;  %vm119_vm3 = vmor %vm84_vm12, %vm103_vm13  ;;  %vm685_vm12 = vcmp.eq.s32.totalorder %v5227_v37, %v5001_v28  ;;  %vm83_vm0 = vcmp.eq.s32.totalorder %v5289_v39, %v4943_v3 }
  0x60   :  { %vm154_vm5 = vmor %vm119_vm3, %vm138_vm15  ;;  %vm137_vm3 = vcmp.eq.s32.totalorder %v5289_v39, %v4954_v17 }
  0x61   :  { %4121 = vmatpush.msk.msra.mxu0 %vm154_vm5, %v8382_v24  ;;  %vm303_vm8 = vmor %vm269_vm1, %vm287_vm2  ;;  %vm102_vm1 = vcmp.eq.s32.totalorder %v5289_v39, %v4952_v13  ;;  %vm268_vm5 = vcmp.eq.s32.totalorder %v5258_v38, %v4964_v20 }
  0x62   :  { %vm338_vm10 = vmor %vm303_vm8, %vm322_vm4  ;;  %vm321_vm8 = vcmp.eq.s32.totalorder %v5258_v38, %v4983_v23 }
  0x63   :  { %4152 = vmatpush.msk.msra.mxu1 %vm338_vm10, %v8382_v24  ;;  %vm501_vm13 = vmor %vm467_vm6, %vm485_vm7  ;;  %vm286_vm6 = vcmp.eq.s32.totalorder %v5258_v38, %v4975_v22  ;;  %vm466_vm10 = vcmp.eq.s32.totalorder %v5289_v39, %v4950_v10 }
  0x64   :  { %vm536_vm15 = vmor %vm501_vm13, %vm520_vm9  ;;  %vm519_vm13 = vcmp.eq.s32.totalorder %v5289_v39, %v4962_v19 }
  0x65   :  { %4185 = vmatpush.msk.msra.mxu2 %vm536_vm15, %v8382_v24  ;;  %vm701_vm2 = vmor %vm667_vm11, %vm685_vm12  ;;  %vm484_vm11 = vcmp.eq.s32.totalorder %v5289_v39, %v4956_v18  ;;  %vm666_vm15 = vcmp.eq.s32.totalorder %v5258_v38, %v4996_v27 }
  0x66   :  { %vm736_vm4 = vmor %vm701_vm2, %vm720_vm14  ;;  %vm719_vm2 = vcmp.eq.s32.totalorder %v5258_v38, %v5003_v29 }
  0x67   :  { %4216 = vmatpush.msk.msra.mxu3 %vm736_vm4, %v8382_v24  ;;  %vm118_vm7 = vmor %vm83_vm0, %vm102_vm1  ;;  %vm684_vm0 = vcmp.eq.s32.totalorder %v5258_v38, %v5001_v28  ;;  %vm82_vm4 = vcmp.eq.s32.totalorder %v5320_v40, %v4943_v3 }
  0x68   :  { %vm153_vm9 = vmor %vm118_vm7, %vm137_vm3  ;;  %vm136_vm7 = vcmp.eq.s32.totalorder %v5320_v40, %v4954_v17 }
  0x69   :  { %4122 = vmatpush.msk.msra.mxu0 %vm153_vm9, %v8382_v24  ;;  %vm302_vm12 = vmor %vm268_vm5, %vm286_vm6  ;;  %vm101_vm5 = vcmp.eq.s32.totalorder %v5320_v40, %v4952_v13  ;;  %vm267_vm9 = vcmp.eq.s32.totalorder %v5289_v39, %v4964_v20 }
  0x6a   :  { %vm337_vm14 = vmor %vm302_vm12, %vm321_vm8  ;;  %vm320_vm12 = vcmp.eq.s32.totalorder %v5289_v39, %v4983_v23 }
  0x6b   :  { %4153 = vmatpush.msk.msra.mxu1 %vm337_vm14, %v8382_v24  ;;  %vm500_vm1 = vmor %vm466_vm10, %vm484_vm11  ;;  %vm285_vm10 = vcmp.eq.s32.totalorder %v5289_v39, %v4975_v22  ;;  %vm465_vm14 = vcmp.eq.s32.totalorder %v5320_v40, %v4950_v10 }
  0x6c   :  { %vm535_vm3 = vmor %vm500_vm1, %vm519_vm13  ;;  %vm518_vm1 = vcmp.eq.s32.totalorder %v5320_v40, %v4962_v19 }
  0x6d   :  { %4186 = vmatpush.msk.msra.mxu2 %vm535_vm3, %v8382_v24  ;;  %vm700_vm6 = vmor %vm666_vm15, %vm684_vm0  ;;  %vm483_vm15 = vcmp.eq.s32.totalorder %v5320_v40, %v4956_v18  ;;  %vm665_vm3 = vcmp.eq.s32.totalorder %v5289_v39, %v4996_v27 }
  0x6e   :  { %vm735_vm8 = vmor %vm700_vm6, %vm719_vm2  ;;  %vm718_vm6 = vcmp.eq.s32.totalorder %v5289_v39, %v5003_v29 }
  0x6f   :  { %4217 = vmatpush.msk.msra.mxu3 %vm735_vm8, %v8382_v24  ;;  %vm117_vm11 = vmor %vm82_vm4, %vm101_vm5  ;;  %vm683_vm4 = vcmp.eq.s32.totalorder %v5289_v39, %v5001_v28  ;;  %vm81_vm8 = vcmp.eq.s32.totalorder %v5351_v41, %v4943_v3 }
  0x70   :  { %vm152_vm13 = vmor %vm117_vm11, %vm136_vm7  ;;  %vm135_vm11 = vcmp.eq.s32.totalorder %v5351_v41, %v4954_v17 }
  0x71   :  { %4123 = vmatpush.msk.msra.mxu0 %vm152_vm13, %v8382_v24  ;;  %vm301_vm0 = vmor %vm267_vm9, %vm285_vm10  ;;  %vm100_vm9 = vcmp.eq.s32.totalorder %v5351_v41, %v4952_v13  ;;  %vm266_vm13 = vcmp.eq.s32.totalorder %v5320_v40, %v4964_v20 }
  0x72   :  { %vm336_vm2 = vmor %vm301_vm0, %vm320_vm12  ;;  %vm319_vm0 = vcmp.eq.s32.totalorder %v5320_v40, %v4983_v23 }
  0x73   :  { %4154 = vmatpush.msk.msra.mxu1 %vm336_vm2, %v8382_v24  ;;  %vm499_vm5 = vmor %vm465_vm14, %vm483_vm15  ;;  %vm284_vm14 = vcmp.eq.s32.totalorder %v5320_v40, %v4975_v22  ;;  %vm464_vm2 = vcmp.eq.s32.totalorder %v5351_v41, %v4950_v10 }
  0x74   :  { %vm534_vm7 = vmor %vm499_vm5, %vm518_vm1  ;;  %vm517_vm5 = vcmp.eq.s32.totalorder %v5351_v41, %v4962_v19 }
  0x75   :  { %4187 = vmatpush.msk.msra.mxu2 %vm534_vm7, %v8382_v24  ;;  %vm699_vm10 = vmor %vm665_vm3, %vm683_vm4  ;;  %vm482_vm3 = vcmp.eq.s32.totalorder %v5351_v41, %v4956_v18  ;;  %vm664_vm7 = vcmp.eq.s32.totalorder %v5320_v40, %v4996_v27 }
  0x76   :  { %vm734_vm12 = vmor %vm699_vm10, %vm718_vm6  ;;  %vm717_vm10 = vcmp.eq.s32.totalorder %v5320_v40, %v5003_v29 }
  0x77   :  { %4218 = vmatpush.msk.msra.mxu3 %vm734_vm12, %v8382_v24  ;;  %vm116_vm15 = vmor %vm81_vm8, %vm100_vm9  ;;  %vm682_vm8 = vcmp.eq.s32.totalorder %v5320_v40, %v5001_v28  ;;  %vm80_vm12 = vcmp.eq.s32.totalorder %v5382_v42, %v4943_v3 }
  0x78   :  { %vm151_vm1 = vmor %vm116_vm15, %vm135_vm11  ;;  %vm134_vm15 = vcmp.eq.s32.totalorder %v5382_v42, %v4954_v17 }
  0x79   :  { %4124 = vmatpush.msk.msra.mxu0 %vm151_vm1, %v8382_v24  ;;  %vm300_vm4 = vmor %vm266_vm13, %vm284_vm14  ;;  %vm99_vm13 = vcmp.eq.s32.totalorder %v5382_v42, %v4952_v13  ;;  %vm265_vm1 = vcmp.eq.s32.totalorder %v5351_v41, %v4964_v20 }
  0x7a   :  { %vm335_vm6 = vmor %vm300_vm4, %vm319_vm0  ;;  %vm318_vm4 = vcmp.eq.s32.totalorder %v5351_v41, %v4983_v23 }
  0x7b   :  { %4155 = vmatpush.msk.msra.mxu1 %vm335_vm6, %v8382_v24  ;;  %vm498_vm9 = vmor %vm464_vm2, %vm482_vm3  ;;  %vm283_vm2 = vcmp.eq.s32.totalorder %v5351_v41, %v4975_v22  ;;  %vm463_vm6 = vcmp.eq.s32.totalorder %v5382_v42, %v4950_v10 }
  0x7c   :  { %vm533_vm11 = vmor %vm498_vm9, %vm517_vm5  ;;  %vm516_vm9 = vcmp.eq.s32.totalorder %v5382_v42, %v4962_v19 }
  0x7d   :  { %4188 = vmatpush.msk.msra.mxu2 %vm533_vm11, %v8382_v24  ;;  %vm698_vm14 = vmor %vm664_vm7, %vm682_vm8  ;;  %vm481_vm7 = vcmp.eq.s32.totalorder %v5382_v42, %v4956_v18  ;;  %vm663_vm11 = vcmp.eq.s32.totalorder %v5351_v41, %v4996_v27 }
  0x7e   :  { %vm733_vm0 = vmor %vm698_vm14, %vm717_vm10  ;;  %vm716_vm14 = vcmp.eq.s32.totalorder %v5351_v41, %v5003_v29 }
  0x7f   :  { %4219 = vmatpush.msk.msra.mxu3 %vm733_vm0, %v8382_v24  ;;  %vm115_vm3 = vmor %vm80_vm12, %vm99_vm13  ;;  %vm681_vm12 = vcmp.eq.s32.totalorder %v5351_v41, %v5001_v28  ;;  %vm79_vm0 = vcmp.eq.s32.totalorder %v4938_v1, %v4943_v3  ;;  %v5513_v3 = vperm.slane %v1508_v56, 0 }
  0x80   :  { %vm150_vm5 = vmor %vm115_vm3, %vm134_vm15  ;;  %vm133_vm3 = vcmp.eq.s32.totalorder %v4938_v1, %v4954_v17  ;;  %v55_v17 = vld [vmem:[#allocation5 + $0x58] sm:$0xff] }
  0x81   :  { %4125 = vmatpush.msk.msra.mxu0 %vm150_vm5, %v8382_v24  ;;  %vm299_vm8 = vmor %vm265_vm1, %vm283_vm2  ;;  %vm98_vm1 = vcmp.eq.s32.totalorder %v4938_v1, %v4952_v13  ;;  %vm264_vm5 = vcmp.eq.s32.totalorder %v5382_v42, %v4964_v20  ;;  %v51_v13 = vld [vmem:[#allocation5 + $0x38] sm:$0xff] }
  0x82   :  { %vm334_vm10 = vmor %vm299_vm8, %vm318_vm4  ;;  %vm317_vm8 = vcmp.eq.s32.totalorder %v5382_v42, %v4983_v23 }
  0x83   :  { %4156 = vmatpush.msk.msra.mxu1 %vm334_vm10, %v8382_v24  ;;  %vm497_vm13 = vmor %vm463_vm6, %vm481_vm7  ;;  %vm282_vm6 = vcmp.eq.s32.totalorder %v5382_v42, %v4975_v22  ;;  %vm462_vm10 = vcmp.eq.s32.totalorder %v4938_v1, %v4950_v10  ;;  %v48_v10 = vld [vmem:[#allocation5 + $0x20] sm:$0xff] }
  0x84   :  { %vm532_vm15 = vmor %vm497_vm13, %vm516_vm9  ;;  %vm515_vm13 = vcmp.eq.s32.totalorder %v4938_v1, %v4962_v19  ;;  %v57_v19 = vld [vmem:[#allocation5 + $0x68] sm:$0xff] }
  0x85   :  { %4189 = vmatpush.msk.msra.mxu2 %vm532_vm15, %v8382_v24  ;;  %vm697_vm2 = vmor %vm663_vm11, %vm681_vm12  ;;  %vm480_vm11 = vcmp.eq.s32.totalorder %v4938_v1, %v4956_v18  ;;  %vm662_vm15 = vcmp.eq.s32.totalorder %v5382_v42, %v4996_v27  ;;  %v56_v18 = vld [vmem:[#allocation5 + $0x60] sm:$0xff] }
  0x86   :  { %vm732_vm4 = vmor %vm697_vm2, %vm716_vm14  ;;  %vm715_vm2 = vcmp.eq.s32.totalorder %v5382_v42, %v5003_v29 }
  0x87   :  { %4220 = vmatpush.msk.msra.mxu3 %vm732_vm4, %v8382_v24  ;;  %vm114_vm7 = vmor %vm79_vm0, %vm98_vm1  ;;  %vm680_vm0 = vcmp.eq.s32.totalorder %v5382_v42, %v5001_v28  ;;  %vm1273_vm4 = vcmp.eq.s32.totalorder %v4941_v2, %v5442_v49 }
  0x88   :  { %vm149_vm9 = vmor %vm114_vm7, %vm133_vm3  ;;  %vm1326_vm7 = vcmp.eq.s32.totalorder %v4941_v2, %v5449_v51 }
  0x89   :  { %4126 = vmatpush.msk.msra.mxu0 %vm149_vm9, %v8382_v24  ;;  %vm298_vm12 = vmor %vm264_vm5, %vm282_vm6  ;;  %vm1291_vm5 = vcmp.eq.s32.totalorder %v4941_v2, %v5444_v50  ;;  %vm263_vm9 = vcmp.eq.s32.totalorder %v4938_v1, %v4964_v20  ;;  %v58_v20 = vld [vmem:[#allocation5 + $0x70] sm:$0xff] }
  0x8a   :  { %vm333_vm14 = vmor %vm298_vm12, %vm317_vm8  ;;  %213 = vmatmul.f32.vlgmr.msra.gmra.mxu0 %v5436_v47  ;;  %vm316_vm12 = vcmp.eq.s32.totalorder %v4938_v1, %v4983_v23  ;;  %v2104_v23 = vld [vmem:[#allocation2 + $0xc] sm:$0x1] }
  0x8b   :  { %4157 = vmatpush.msk.msra.mxu1 %vm333_vm14, %v8382_v24  ;;  %vm496_vm1 = vmor %vm462_vm10, %vm480_vm11  ;;  %vm281_vm10 = vcmp.eq.s32.totalorder %v4938_v1, %v4975_v22  ;;  %vm661_vm14 = vcmp.eq.s32.totalorder %v4938_v1, %v4996_v27  ;;  %v1905_v22 = vld [vmem:[#allocation2 + $0xb] sm:$0x1] }
  0x8c   :  { %vm531_vm3 = vmor %vm496_vm1, %vm515_vm13  ;;  %vm714_vm1 = vcmp.eq.s32.totalorder %v4938_v1, %v5003_v29  ;;  %v2070_v27 = vadd.s32 41, %v1905_v22  ;;  %v1672_v29 = vadd.s32 41, %v5457_v53  ;;  %v1871_v53 = vadd.s32 41, %v1706_v26 }
  0x8d   :  { %4190 = vmatpush.msk.msra.mxu2 %vm531_vm3, %v8382_v24  ;;  %vm696_vm6 = vmor %vm662_vm15, %vm680_vm0  ;;  %vm679_vm15 = vcmp.eq.s32.totalorder %v4938_v1, %v5001_v28  ;;  %vm875_vm3 = vcmp.eq.s32.totalorder %v4941_v2, %v5481_v57  ;;  %v2105_v28 = vadd.s32 82, %v2104_v23  ;;  %v1906_v55 = vadd.s32 82, %v1905_v22  ;;  %v4764_v22 = vld [vmem:[#allocation5 + $0x18] sm:$0xff] }
  0x8e   :  { %vm731_vm8 = vmor %vm696_vm6, %vm715_vm2  ;;  %595 = vmatmul.f32.vlgmr.msra.gmra.mxu2 %v5436_v47  ;;  %vm928_vm6 = vcmp.eq.s32.totalorder %v4941_v2, %v5491_v60  ;;  %v5962_v46 = vperm.slane %v2070_v27, 0  ;;  %v5981_v52 = vperm.slane %v1672_v29, 0 }
  0x8f   :  { %4221 = vmatpush.msk.msra.mxu3 %vm731_vm8, %v8382_v24  ;;  %vm1307_vm11 = vmor %vm1273_vm4, %vm1291_vm5  ;;  %vm893_vm4 = vcmp.eq.s32.totalorder %v4941_v2, %v5483_v58  ;;  %vm1472_vm8 = vcmp.eq.s32.totalorder %v4941_v2, %v5500_v63  ;;  %v5970_v48 = vperm.slane %v2105_v28, 0 }
  0x90   :  { %vm1342_vm13 = vmor %vm1307_vm11, %vm1326_vm7  ;;  %vm1525_vm11 = vcmp.eq.s32.totalorder %v4941_v2, %v5513_v3 }
  0x91   :  { %4303 = vmatpush.msk.msrb.mxu2 %vm1342_vm13, %v8382_v24  ;;  %vm297_vm0 = vmor %vm263_vm9, %vm281_vm10  ;;  %vm1490_vm9 = vcmp.eq.s32.totalorder %v4941_v2, %v5502_v0  ;;  %vm1074_vm13 = vcmp.eq.s32.totalorder %v4941_v2, %v5519_v4 }
  0x92   :  { %vm332_vm2 = vmor %vm297_vm0, %vm316_vm12  ;;  %216 = vmatmul.f32.gmra.mxu0 %v45_v62  ;;  %vm1127_vm0 = vcmp.eq.s32.totalorder %v4941_v2, %v5529_v6 }
  0x93   :  { %4158 = vmatpush.msk.msra.mxu1 %vm332_vm2, %v8382_v24  ;;  %vm695_vm5 = vmor %vm661_vm14, %vm679_vm15  ;;  %vm1092_vm14 = vcmp.eq.s32.totalorder %v4941_v2, %v5521_v5  ;;  %vm1272_vm2 = vcmp.eq.s32.totalorder %v4946_v8, %v5442_v49 }
  0x94   :  { %vm730_vm7 = vmor %vm695_vm5, %vm714_vm1  ;;  %396 = vmatmul.f32.vlgmr.msra.gmra.mxu1 %v5436_v47  ;;  %vm1325_vm5 = vcmp.eq.s32.totalorder %v4946_v8, %v5449_v51 }
  0x95   :  { %4222 = vmatpush.msk.msra.mxu3 %vm730_vm7, %v8382_v24  ;;  %vm909_vm10 = vmor %vm875_vm3, %vm893_vm4  ;;  %vm1290_vm3 = vcmp.eq.s32.totalorder %v4946_v8, %v5444_v50  ;;  %vm874_vm7 = vcmp.eq.s32.totalorder %v4946_v8, %v5481_v57 }
  0x96   :  { %794 = vmatmul.f32.vlgmr.msra.gmra.mxu3 %v5436_v47  ;;  %vm944_vm12 = vmor %vm909_vm10, %vm928_vm6  ;;  %598 = vmatmul.f32.gmra.mxu2 %v45_v62  ;;  %vm927_vm10 = vcmp.eq.s32.totalorder %v4946_v8, %v5491_v60  ;;  %v2269_v47 = vadd.s32 41, %v2104_v23 }
  0x97   :  { %4239 = vmatpush.msk.msrb.mxu0 %vm944_vm12, %v8382_v24  ;;  %vm1506_vm15 = vmor %vm1472_vm8, %vm1490_vm9  ;;  %vm892_vm8 = vcmp.eq.s32.totalorder %v4946_v8, %v5483_v58  ;;  %vm1471_vm12 = vcmp.eq.s32.totalorder %v4946_v8, %v5500_v63 }
  0x98   :  { %vm1541_vm1 = vmor %vm1506_vm15, %vm1525_vm11  ;;  %vm1524_vm15 = vcmp.eq.s32.totalorder %v4946_v8, %v5513_v3 }
  0x99   :  { %4335 = vmatpush.msk.msrb.mxu3 %vm1541_vm1, %v8382_v24  ;;  %vm1108_vm4 = vmor %vm1074_vm13, %vm1092_vm14  ;;  %vm1489_vm13 = vcmp.eq.s32.totalorder %v4946_v8, %v5502_v0  ;;  %vm1073_vm1 = vcmp.eq.s32.totalorder %v4946_v8, %v5519_v4 }
  0x9a   :  { %vm1143_vm6 = vmor %vm1108_vm4, %vm1127_vm0  ;;  %219 = vmatmul.f32.gmra.mxu0 %v46_v7  ;;  %vm1126_vm4 = vcmp.eq.s32.totalorder %v4946_v8, %v5529_v6 }
  0x9b   :  { %4271 = vmatpush.msk.msrb.mxu1 %vm1143_vm6, %v8382_v24  ;;  %vm1306_vm9 = vmor %vm1272_vm2, %vm1290_vm3  ;;  %vm1091_vm2 = vcmp.eq.s32.totalorder %v4946_v8, %v5521_v5  ;;  %vm1271_vm6 = vcmp.eq.s32.totalorder %v5010_v30, %v5442_v49 }
  0x9c   :  { %vm1341_vm11 = vmor %vm1306_vm9, %vm1325_vm5  ;;  %399 = vmatmul.f32.gmra.mxu1 %v45_v62  ;;  %vm1324_vm9 = vcmp.eq.s32.totalorder %v5010_v30, %v5449_v51 }
  0x9d   :  { %4304 = vmatpush.msk.msrb.mxu2 %vm1341_vm11, %v8382_v24  ;;  %vm908_vm14 = vmor %vm874_vm7, %vm892_vm8  ;;  %vm1289_vm7 = vcmp.eq.s32.totalorder %v5010_v30, %v5444_v50  ;;  %vm873_vm11 = vcmp.eq.s32.totalorder %v5010_v30, %v5481_v57 }
  0x9e   :  { %797 = vmatmul.f32.gmra.mxu3 %v45_v62  ;;  %vm943_vm0 = vmor %vm908_vm14, %vm927_vm10  ;;  %601 = vmatmul.f32.gmra.mxu2 %v46_v7  ;;  %vm926_vm14 = vcmp.eq.s32.totalorder %v5010_v30, %v5491_v60  ;;  %v6025_v62 = vld [vmem:[#allocation2 + $0x9] ss:$0 sm:$0xff] }
  0x9f   :  { %4240 = vmatpush.msk.msrb.mxu0 %vm943_vm0, %v8382_v24  ;;  %vm1505_vm3 = vmor %vm1471_vm12, %vm1489_vm13  ;;  %vm891_vm12 = vcmp.eq.s32.totalorder %v5010_v30, %v5483_v58  ;;  %vm1470_vm0 = vcmp.eq.s32.totalorder %v5010_v30, %v5500_v63 }
  0xa0   :  { %vm1540_vm5 = vmor %vm1505_vm3, %vm1524_vm15  ;;  %vm1523_vm3 = vcmp.eq.s32.totalorder %v5010_v30, %v5513_v3 }
  0xa1   :  { %4336 = vmatpush.msk.msrb.mxu3 %vm1540_vm5, %v8382_v24  ;;  %vm1107_vm8 = vmor %vm1073_vm1, %vm1091_vm2  ;;  %vm1488_vm1 = vcmp.eq.s32.totalorder %v5010_v30, %v5502_v0  ;;  %vm1072_vm5 = vcmp.eq.s32.totalorder %v5010_v30, %v5519_v4 }
  0xa2   :  { %vm1142_vm10 = vmor %vm1107_vm8, %vm1126_vm4  ;;  %222 = vmatmul.f32.gmra.mxu0 %v47_v9  ;;  %vm1125_vm8 = vcmp.eq.s32.totalorder %v5010_v30, %v5529_v6 }
  0xa3   :  { %4272 = vmatpush.msk.msrb.mxu1 %vm1142_vm10, %v8382_v24  ;;  %vm1305_vm13 = vmor %vm1271_vm6, %vm1289_vm7  ;;  %vm1090_vm6 = vcmp.eq.s32.totalorder %v5010_v30, %v5521_v5  ;;  %vm1270_vm10 = vcmp.eq.s32.totalorder %v5041_v31, %v5442_v49 }
  0xa4   :  { %vm1340_vm15 = vmor %vm1305_vm13, %vm1324_vm9  ;;  %402 = vmatmul.f32.gmra.mxu1 %v46_v7  ;;  %vm1323_vm13 = vcmp.eq.s32.totalorder %v5041_v31, %v5449_v51 }
  0xa5   :  { %4305 = vmatpush.msk.msrb.mxu2 %vm1340_vm15, %v8382_v24  ;;  %vm907_vm2 = vmor %vm873_vm11, %vm891_vm12  ;;  %vm1288_vm11 = vcmp.eq.s32.totalorder %v5041_v31, %v5444_v50  ;;  %vm872_vm15 = vcmp.eq.s32.totalorder %v5041_v31, %v5481_v57 }
  0xa6   :  { %800 = vmatmul.f32.gmra.mxu3 %v46_v7  ;;  %vm942_vm4 = vmor %vm907_vm2, %vm926_vm14  ;;  %604 = vmatmul.f32.gmra.mxu2 %v47_v9  ;;  %vm925_vm2 = vcmp.eq.s32.totalorder %v5041_v31, %v5491_v60 }
  0xa7   :  { %4241 = vmatpush.msk.msrb.mxu0 %vm942_vm4, %v8382_v24  ;;  %vm1504_vm7 = vmor %vm1470_vm0, %vm1488_vm1  ;;  %vm890_vm0 = vcmp.eq.s32.totalorder %v5041_v31, %v5483_v58  ;;  %vm1469_vm4 = vcmp.eq.s32.totalorder %v5041_v31, %v5500_v63 }
  0xa8   :  { %vm1539_vm9 = vmor %vm1504_vm7, %vm1523_vm3  ;;  %vm1522_vm7 = vcmp.eq.s32.totalorder %v5041_v31, %v5513_v3 }
  0xa9   :  { %4337 = vmatpush.msk.msrb.mxu3 %vm1539_vm9, %v8382_v24  ;;  %vm1106_vm12 = vmor %vm1072_vm5, %vm1090_vm6  ;;  %vm1487_vm5 = vcmp.eq.s32.totalorder %v5041_v31, %v5502_v0  ;;  %vm1071_vm9 = vcmp.eq.s32.totalorder %v5041_v31, %v5519_v4 }
  0xaa   :  { %vm1141_vm14 = vmor %vm1106_vm12, %vm1125_vm8  ;;  %225 = vmatmul.f32.gmra.mxu0 %v48_v10  ;;  %vm1124_vm12 = vcmp.eq.s32.totalorder %v5041_v31, %v5529_v6 }
  0xab   :  { %4273 = vmatpush.msk.msrb.mxu1 %vm1141_vm14, %v8382_v24  ;;  %vm1304_vm1 = vmor %vm1270_vm10, %vm1288_vm11  ;;  %vm1089_vm10 = vcmp.eq.s32.totalorder %v5041_v31, %v5521_v5  ;;  %vm1269_vm14 = vcmp.eq.s32.totalorder %v5072_v32, %v5442_v49 }
  0xac   :  { %vm1339_vm3 = vmor %vm1304_vm1, %vm1323_vm13  ;;  %405 = vmatmul.f32.gmra.mxu1 %v47_v9  ;;  %vm1322_vm1 = vcmp.eq.s32.totalorder %v5072_v32, %v5449_v51 }
  0xad   :  { %4306 = vmatpush.msk.msrb.mxu2 %vm1339_vm3, %v8382_v24  ;;  %vm906_vm6 = vmor %vm872_vm15, %vm890_vm0  ;;  %vm1287_vm15 = vcmp.eq.s32.totalorder %v5072_v32, %v5444_v50  ;;  %vm871_vm3 = vcmp.eq.s32.totalorder %v5072_v32, %v5481_v57 }
  0xae   :  { %803 = vmatmul.f32.gmra.mxu3 %v47_v9  ;;  %vm941_vm8 = vmor %vm906_vm6, %vm925_vm2  ;;  %607 = vmatmul.f32.gmra.mxu2 %v48_v10  ;;  %vm924_vm6 = vcmp.eq.s32.totalorder %v5072_v32, %v5491_v60 }
  0xaf   :  { %4242 = vmatpush.msk.msrb.mxu0 %vm941_vm8, %v8382_v24  ;;  %vm1503_vm11 = vmor %vm1469_vm4, %vm1487_vm5  ;;  %vm889_vm4 = vcmp.eq.s32.totalorder %v5072_v32, %v5483_v58  ;;  %vm1468_vm8 = vcmp.eq.s32.totalorder %v5072_v32, %v5500_v63 }
  0xb0   :  { %vm1538_vm13 = vmor %vm1503_vm11, %vm1522_vm7  ;;  %vm1521_vm11 = vcmp.eq.s32.totalorder %v5072_v32, %v5513_v3 }
  0xb1   :  { %4338 = vmatpush.msk.msrb.mxu3 %vm1538_vm13, %v8382_v24  ;;  %vm1105_vm0 = vmor %vm1071_vm9, %vm1089_vm10  ;;  %vm1486_vm9 = vcmp.eq.s32.totalorder %v5072_v32, %v5502_v0  ;;  %vm1070_vm13 = vcmp.eq.s32.totalorder %v5072_v32, %v5519_v4 }
  0xb2   :  { %vm1140_vm2 = vmor %vm1105_vm0, %vm1124_vm12  ;;  %228 = vmatmul.f32.gmra.mxu0 %v49_v11  ;;  %vm1123_vm0 = vcmp.eq.s32.totalorder %v5072_v32, %v5529_v6 }
  0xb3   :  { %4274 = vmatpush.msk.msrb.mxu1 %vm1140_vm2, %v8382_v24  ;;  %vm1303_vm5 = vmor %vm1269_vm14, %vm1287_vm15  ;;  %vm1088_vm14 = vcmp.eq.s32.totalorder %v5072_v32, %v5521_v5  ;;  %vm1268_vm2 = vcmp.eq.s32.totalorder %v5103_v33, %v5442_v49 }
  0xb4   :  { %vm1338_vm7 = vmor %vm1303_vm5, %vm1322_vm1  ;;  %408 = vmatmul.f32.gmra.mxu1 %v48_v10  ;;  %vm1321_vm5 = vcmp.eq.s32.totalorder %v5103_v33, %v5449_v51 }
  0xb5   :  { %4307 = vmatpush.msk.msrb.mxu2 %vm1338_vm7, %v8382_v24  ;;  %vm905_vm10 = vmor %vm871_vm3, %vm889_vm4  ;;  %vm1286_vm3 = vcmp.eq.s32.totalorder %v5103_v33, %v5444_v50  ;;  %vm870_vm7 = vcmp.eq.s32.totalorder %v5103_v33, %v5481_v57 }
  0xb6   :  { %806 = vmatmul.f32.gmra.mxu3 %v48_v10  ;;  %vm940_vm12 = vmor %vm905_vm10, %vm924_vm6  ;;  %610 = vmatmul.f32.gmra.mxu2 %v49_v11  ;;  %vm923_vm10 = vcmp.eq.s32.totalorder %v5103_v33, %v5491_v60 }
  0xb7   :  { %4243 = vmatpush.msk.msrb.mxu0 %vm940_vm12, %v8382_v24  ;;  %vm1502_vm15 = vmor %vm1468_vm8, %vm1486_vm9  ;;  %vm888_vm8 = vcmp.eq.s32.totalorder %v5103_v33, %v5483_v58  ;;  %vm1467_vm12 = vcmp.eq.s32.totalorder %v5103_v33, %v5500_v63 }
  0xb8   :  { %vm1537_vm1 = vmor %vm1502_vm15, %vm1521_vm11  ;;  %vm1520_vm15 = vcmp.eq.s32.totalorder %v5103_v33, %v5513_v3 }
  0xb9   :  { %4339 = vmatpush.msk.msrb.mxu3 %vm1537_vm1, %v8382_v24  ;;  %vm1104_vm4 = vmor %vm1070_vm13, %vm1088_vm14  ;;  %vm1485_vm13 = vcmp.eq.s32.totalorder %v5103_v33, %v5502_v0  ;;  %vm1069_vm1 = vcmp.eq.s32.totalorder %v5103_v33, %v5519_v4 }
  0xba   :  { %vm1139_vm6 = vmor %vm1104_vm4, %vm1123_vm0  ;;  %231 = vmatmul.f32.gmra.mxu0 %v50_v12  ;;  %vm1122_vm4 = vcmp.eq.s32.totalorder %v5103_v33, %v5529_v6 }
  0xbb   :  { %4275 = vmatpush.msk.msrb.mxu1 %vm1139_vm6, %v8382_v24  ;;  %vm1302_vm9 = vmor %vm1268_vm2, %vm1286_vm3  ;;  %vm1087_vm2 = vcmp.eq.s32.totalorder %v5103_v33, %v5521_v5  ;;  %vm1267_vm6 = vcmp.eq.s32.totalorder %v5134_v34, %v5442_v49 }
  0xbc   :  { %vm1337_vm11 = vmor %vm1302_vm9, %vm1321_vm5  ;;  %411 = vmatmul.f32.gmra.mxu1 %v49_v11  ;;  %vm1320_vm9 = vcmp.eq.s32.totalorder %v5134_v34, %v5449_v51 }
  0xbd   :  { %4308 = vmatpush.msk.msrb.mxu2 %vm1337_vm11, %v8382_v24  ;;  %vm904_vm14 = vmor %vm870_vm7, %vm888_vm8  ;;  %vm1285_vm7 = vcmp.eq.s32.totalorder %v5134_v34, %v5444_v50  ;;  %vm869_vm11 = vcmp.eq.s32.totalorder %v5134_v34, %v5481_v57 }
  0xbe   :  { %809 = vmatmul.f32.gmra.mxu3 %v49_v11  ;;  %vm939_vm0 = vmor %vm904_vm14, %vm923_vm10  ;;  %613 = vmatmul.f32.gmra.mxu2 %v50_v12  ;;  %vm922_vm14 = vcmp.eq.s32.totalorder %v5134_v34, %v5491_v60 }
  0xbf   :  { %4244 = vmatpush.msk.msrb.mxu0 %vm939_vm0, %v8382_v24  ;;  %vm1501_vm3 = vmor %vm1467_vm12, %vm1485_vm13  ;;  %vm887_vm12 = vcmp.eq.s32.totalorder %v5134_v34, %v5483_v58  ;;  %vm1466_vm0 = vcmp.eq.s32.totalorder %v5134_v34, %v5500_v63 }
  0xc0   :  { %vm1536_vm5 = vmor %vm1501_vm3, %vm1520_vm15  ;;  %vm1519_vm3 = vcmp.eq.s32.totalorder %v5134_v34, %v5513_v3 }
  0xc1   :  { %4340 = vmatpush.msk.msrb.mxu3 %vm1536_vm5, %v8382_v24  ;;  %vm1103_vm8 = vmor %vm1069_vm1, %vm1087_vm2  ;;  %vm1484_vm1 = vcmp.eq.s32.totalorder %v5134_v34, %v5502_v0  ;;  %vm1068_vm5 = vcmp.eq.s32.totalorder %v5134_v34, %v5519_v4 }
  0xc2   :  { %vm1138_vm10 = vmor %vm1103_vm8, %vm1122_vm4  ;;  %234 = vmatmul.f32.gmra.mxu0 %v51_v13  ;;  %vm1121_vm8 = vcmp.eq.s32.totalorder %v5134_v34, %v5529_v6 }
  0xc3   :  { %4276 = vmatpush.msk.msrb.mxu1 %vm1138_vm10, %v8382_v24  ;;  %vm1301_vm13 = vmor %vm1267_vm6, %vm1285_vm7  ;;  %vm1086_vm6 = vcmp.eq.s32.totalorder %v5134_v34, %v5521_v5  ;;  %vm1266_vm10 = vcmp.eq.s32.totalorder %v5165_v35, %v5442_v49 }
  0xc4   :  { %vm1336_vm15 = vmor %vm1301_vm13, %vm1320_vm9  ;;  %414 = vmatmul.f32.gmra.mxu1 %v50_v12  ;;  %vm1319_vm13 = vcmp.eq.s32.totalorder %v5165_v35, %v5449_v51 }
  0xc5   :  { %4309 = vmatpush.msk.msrb.mxu2 %vm1336_vm15, %v8382_v24  ;;  %vm903_vm2 = vmor %vm869_vm11, %vm887_vm12  ;;  %vm1284_vm11 = vcmp.eq.s32.totalorder %v5165_v35, %v5444_v50  ;;  %vm868_vm15 = vcmp.eq.s32.totalorder %v5165_v35, %v5481_v57 }
  0xc6   :  { %812 = vmatmul.f32.gmra.mxu3 %v50_v12  ;;  %vm938_vm4 = vmor %vm903_vm2, %vm922_vm14  ;;  %616 = vmatmul.f32.gmra.mxu2 %v51_v13  ;;  %vm921_vm2 = vcmp.eq.s32.totalorder %v5165_v35, %v5491_v60 }
  0xc7   :  { %4245 = vmatpush.msk.msrb.mxu0 %vm938_vm4, %v8382_v24  ;;  %vm1500_vm7 = vmor %vm1466_vm0, %vm1484_vm1  ;;  %vm886_vm0 = vcmp.eq.s32.totalorder %v5165_v35, %v5483_v58  ;;  %vm1465_vm4 = vcmp.eq.s32.totalorder %v5165_v35, %v5500_v63 }
  0xc8   :  { %vm1535_vm9 = vmor %vm1500_vm7, %vm1519_vm3  ;;  %vm1518_vm7 = vcmp.eq.s32.totalorder %v5165_v35, %v5513_v3 }
  0xc9   :  { %4341 = vmatpush.msk.msrb.mxu3 %vm1535_vm9, %v8382_v24  ;;  %vm1102_vm12 = vmor %vm1068_vm5, %vm1086_vm6  ;;  %vm1483_vm5 = vcmp.eq.s32.totalorder %v5165_v35, %v5502_v0  ;;  %vm1067_vm9 = vcmp.eq.s32.totalorder %v5165_v35, %v5519_v4 }
  0xca   :  { %vm1137_vm14 = vmor %vm1102_vm12, %vm1121_vm8  ;;  %237 = vmatmul.f32.gmra.mxu0 %v52_v14  ;;  %vm1120_vm12 = vcmp.eq.s32.totalorder %v5165_v35, %v5529_v6 }
  0xcb   :  { %4277 = vmatpush.msk.msrb.mxu1 %vm1137_vm14, %v8382_v24  ;;  %vm1300_vm1 = vmor %vm1266_vm10, %vm1284_vm11  ;;  %vm1085_vm10 = vcmp.eq.s32.totalorder %v5165_v35, %v5521_v5  ;;  %vm1265_vm14 = vcmp.eq.s32.totalorder %v5196_v36, %v5442_v49 }
  0xcc   :  { %vm1335_vm3 = vmor %vm1300_vm1, %vm1319_vm13  ;;  %417 = vmatmul.f32.gmra.mxu1 %v51_v13  ;;  %vm1318_vm1 = vcmp.eq.s32.totalorder %v5196_v36, %v5449_v51 }
  0xcd   :  { %4310 = vmatpush.msk.msrb.mxu2 %vm1335_vm3, %v8382_v24  ;;  %vm902_vm6 = vmor %vm868_vm15, %vm886_vm0  ;;  %vm1283_vm15 = vcmp.eq.s32.totalorder %v5196_v36, %v5444_v50  ;;  %vm867_vm3 = vcmp.eq.s32.totalorder %v5196_v36, %v5481_v57 }
  0xce   :  { %815 = vmatmul.f32.gmra.mxu3 %v51_v13  ;;  %vm937_vm8 = vmor %vm902_vm6, %vm921_vm2  ;;  %619 = vmatmul.f32.gmra.mxu2 %v52_v14  ;;  %vm920_vm6 = vcmp.eq.s32.totalorder %v5196_v36, %v5491_v60 }
  0xcf   :  { %4246 = vmatpush.msk.msrb.mxu0 %vm937_vm8, %v8382_v24  ;;  %vm1499_vm11 = vmor %vm1465_vm4, %vm1483_vm5  ;;  %vm885_vm4 = vcmp.eq.s32.totalorder %v5196_v36, %v5483_v58  ;;  %vm1464_vm8 = vcmp.eq.s32.totalorder %v5196_v36, %v5500_v63 }
  0xd0   :  { %vm1534_vm13 = vmor %vm1499_vm11, %vm1518_vm7  ;;  %vm1517_vm11 = vcmp.eq.s32.totalorder %v5196_v36, %v5513_v3 }
  0xd1   :  { %4342 = vmatpush.msk.msrb.mxu3 %vm1534_vm13, %v8382_v24  ;;  %vm1101_vm0 = vmor %vm1067_vm9, %vm1085_vm10  ;;  %vm1482_vm9 = vcmp.eq.s32.totalorder %v5196_v36, %v5502_v0  ;;  %vm1066_vm13 = vcmp.eq.s32.totalorder %v5196_v36, %v5519_v4 }
  0xd2   :  { %vm1136_vm2 = vmor %vm1101_vm0, %vm1120_vm12  ;;  %240 = vmatmul.f32.gmra.mxu0 %v53_v15  ;;  %vm1119_vm0 = vcmp.eq.s32.totalorder %v5196_v36, %v5529_v6 }
  0xd3   :  { %4278 = vmatpush.msk.msrb.mxu1 %vm1136_vm2, %v8382_v24  ;;  %vm1299_vm5 = vmor %vm1265_vm14, %vm1283_vm15  ;;  %vm1084_vm14 = vcmp.eq.s32.totalorder %v5196_v36, %v5521_v5  ;;  %vm1264_vm2 = vcmp.eq.s32.totalorder %v5227_v37, %v5442_v49 }
  0xd4   :  { %vm1334_vm7 = vmor %vm1299_vm5, %vm1318_vm1  ;;  %420 = vmatmul.f32.gmra.mxu1 %v52_v14  ;;  %vm1317_vm5 = vcmp.eq.s32.totalorder %v5227_v37, %v5449_v51 }
  0xd5   :  { %4311 = vmatpush.msk.msrb.mxu2 %vm1334_vm7, %v8382_v24  ;;  %vm901_vm10 = vmor %vm867_vm3, %vm885_vm4  ;;  %vm1282_vm3 = vcmp.eq.s32.totalorder %v5227_v37, %v5444_v50  ;;  %vm866_vm7 = vcmp.eq.s32.totalorder %v5227_v37, %v5481_v57 }
  0xd6   :  { %818 = vmatmul.f32.gmra.mxu3 %v52_v14  ;;  %vm936_vm12 = vmor %vm901_vm10, %vm920_vm6  ;;  %622 = vmatmul.f32.gmra.mxu2 %v53_v15  ;;  %vm919_vm10 = vcmp.eq.s32.totalorder %v5227_v37, %v5491_v60  ;;  %v4763_v14 = vld [vmem:[#allocation5 + $0x10] sm:$0xff] }
  0xd7   :  { %4247 = vmatpush.msk.msrb.mxu0 %vm936_vm12, %v8382_v24  ;;  %vm1498_vm15 = vmor %vm1464_vm8, %vm1482_vm9  ;;  %vm884_vm8 = vcmp.eq.s32.totalorder %v5227_v37, %v5483_v58  ;;  %vm1463_vm12 = vcmp.eq.s32.totalorder %v5227_v37, %v5500_v63 }
  0xd8   :  { %vm1533_vm1 = vmor %vm1498_vm15, %vm1517_vm11  ;;  %vm1516_vm15 = vcmp.eq.s32.totalorder %v5227_v37, %v5513_v3 }
  0xd9   :  { %4343 = vmatpush.msk.msrb.mxu3 %vm1533_vm1, %v8382_v24  ;;  %vm1100_vm4 = vmor %vm1066_vm13, %vm1084_vm14  ;;  %vm1481_vm13 = vcmp.eq.s32.totalorder %v5227_v37, %v5502_v0  ;;  %vm1065_vm1 = vcmp.eq.s32.totalorder %v5227_v37, %v5519_v4 }
  0xda   :  { %vm1135_vm6 = vmor %vm1100_vm4, %vm1119_vm0  ;;  %243 = vmatmul.f32.gmra.mxu0 %v54_v16  ;;  %vm1118_vm4 = vcmp.eq.s32.totalorder %v5227_v37, %v5529_v6 }
  0xdb   :  { %4279 = vmatpush.msk.msrb.mxu1 %vm1135_vm6, %v8382_v24  ;;  %vm1298_vm9 = vmor %vm1264_vm2, %vm1282_vm3  ;;  %vm1083_vm2 = vcmp.eq.s32.totalorder %v5227_v37, %v5521_v5  ;;  %vm1263_vm6 = vcmp.eq.s32.totalorder %v5258_v38, %v5442_v49 }
  0xdc   :  { %vm1333_vm11 = vmor %vm1298_vm9, %vm1317_vm5  ;;  %423 = vmatmul.f32.gmra.mxu1 %v53_v15  ;;  %vm1316_vm9 = vcmp.eq.s32.totalorder %v5258_v38, %v5449_v51 }
  0xdd   :  { %4312 = vmatpush.msk.msrb.mxu2 %vm1333_vm11, %v8382_v24  ;;  %vm900_vm14 = vmor %vm866_vm7, %vm884_vm8  ;;  %vm1281_vm7 = vcmp.eq.s32.totalorder %v5258_v38, %v5444_v50  ;;  %vm865_vm11 = vcmp.eq.s32.totalorder %v5258_v38, %v5481_v57 }
  0xde   :  { %821 = vmatmul.f32.gmra.mxu3 %v53_v15  ;;  %vm935_vm0 = vmor %vm900_vm14, %vm919_vm10  ;;  %625 = vmatmul.f32.gmra.mxu2 %v54_v16  ;;  %vm918_vm14 = vcmp.eq.s32.totalorder %v5258_v38, %v5491_v60 }
  0xdf   :  { %4248 = vmatpush.msk.msrb.mxu0 %vm935_vm0, %v8382_v24  ;;  %vm1497_vm3 = vmor %vm1463_vm12, %vm1481_vm13  ;;  %vm883_vm12 = vcmp.eq.s32.totalorder %v5258_v38, %v5483_v58  ;;  %vm1462_vm0 = vcmp.eq.s32.totalorder %v5258_v38, %v5500_v63 }
  0xe0   :  { %vm1532_vm5 = vmor %vm1497_vm3, %vm1516_vm15  ;;  %vm1515_vm3 = vcmp.eq.s32.totalorder %v5258_v38, %v5513_v3 }
  0xe1   :  { %4344 = vmatpush.msk.msrb.mxu3 %vm1532_vm5, %v8382_v24  ;;  %vm1099_vm8 = vmor %vm1065_vm1, %vm1083_vm2  ;;  %vm1480_vm1 = vcmp.eq.s32.totalorder %v5258_v38, %v5502_v0  ;;  %vm1064_vm5 = vcmp.eq.s32.totalorder %v5258_v38, %v5519_v4 }
  0xe2   :  { %vm1134_vm10 = vmor %vm1099_vm8, %vm1118_vm4  ;;  %246 = vmatmul.f32.gmra.mxu0 %v55_v17  ;;  %vm1117_vm8 = vcmp.eq.s32.totalorder %v5258_v38, %v5529_v6 }
  0xe3   :  { %4280 = vmatpush.msk.msrb.mxu1 %vm1134_vm10, %v8382_v24  ;;  %vm1297_vm13 = vmor %vm1263_vm6, %vm1281_vm7  ;;  %vm1082_vm6 = vcmp.eq.s32.totalorder %v5258_v38, %v5521_v5  ;;  %vm1262_vm10 = vcmp.eq.s32.totalorder %v5289_v39, %v5442_v49 }
  0xe4   :  { %vm1332_vm15 = vmor %vm1297_vm13, %vm1316_vm9  ;;  %426 = vmatmul.f32.gmra.mxu1 %v54_v16  ;;  %vm1315_vm13 = vcmp.eq.s32.totalorder %v5289_v39, %v5449_v51 }
  0xe5   :  { %4313 = vmatpush.msk.msrb.mxu2 %vm1332_vm15, %v8382_v24  ;;  %vm899_vm2 = vmor %vm865_vm11, %vm883_vm12  ;;  %vm1280_vm11 = vcmp.eq.s32.totalorder %v5289_v39, %v5444_v50  ;;  %vm864_vm15 = vcmp.eq.s32.totalorder %v5289_v39, %v5481_v57 }
  0xe6   :  { %824 = vmatmul.f32.gmra.mxu3 %v54_v16  ;;  %vm934_vm4 = vmor %vm899_vm2, %vm918_vm14  ;;  %628 = vmatmul.f32.gmra.mxu2 %v55_v17  ;;  %vm917_vm2 = vcmp.eq.s32.totalorder %v5289_v39, %v5491_v60 }
  0xe7   :  { %4249 = vmatpush.msk.msrb.mxu0 %vm934_vm4, %v8382_v24  ;;  %vm1496_vm7 = vmor %vm1462_vm0, %vm1480_vm1  ;;  %vm882_vm0 = vcmp.eq.s32.totalorder %v5289_v39, %v5483_v58  ;;  %vm1461_vm4 = vcmp.eq.s32.totalorder %v5289_v39, %v5500_v63 }
  0xe8   :  { %vm1531_vm9 = vmor %vm1496_vm7, %vm1515_vm3  ;;  %vm1514_vm7 = vcmp.eq.s32.totalorder %v5289_v39, %v5513_v3 }
  0xe9   :  { %4345 = vmatpush.msk.msrb.mxu3 %vm1531_vm9, %v8382_v24  ;;  %vm1098_vm12 = vmor %vm1064_vm5, %vm1082_vm6  ;;  %vm1479_vm5 = vcmp.eq.s32.totalorder %v5289_v39, %v5502_v0  ;;  %vm1063_vm9 = vcmp.eq.s32.totalorder %v5289_v39, %v5519_v4 }
  0xea   :  { %vm1133_vm14 = vmor %vm1098_vm12, %vm1117_vm8  ;;  %249 = vmatmul.f32.gmra.mxu0 %v56_v18  ;;  %vm1116_vm12 = vcmp.eq.s32.totalorder %v5289_v39, %v5529_v6 }
  0xeb   :  { %4281 = vmatpush.msk.msrb.mxu1 %vm1133_vm14, %v8382_v24  ;;  %vm1296_vm1 = vmor %vm1262_vm10, %vm1280_vm11  ;;  %vm1081_vm10 = vcmp.eq.s32.totalorder %v5289_v39, %v5521_v5  ;;  %vm1261_vm14 = vcmp.eq.s32.totalorder %v5320_v40, %v5442_v49 }
  0xec   :  { %vm1331_vm3 = vmor %vm1296_vm1, %vm1315_vm13  ;;  %429 = vmatmul.f32.gmra.mxu1 %v55_v17  ;;  %vm1314_vm1 = vcmp.eq.s32.totalorder %v5320_v40, %v5449_v51 }
  0xed   :  { %4314 = vmatpush.msk.msrb.mxu2 %vm1331_vm3, %v8382_v24  ;;  %vm898_vm6 = vmor %vm864_vm15, %vm882_vm0  ;;  %vm1279_vm15 = vcmp.eq.s32.totalorder %v5320_v40, %v5444_v50  ;;  %vm863_vm3 = vcmp.eq.s32.totalorder %v5320_v40, %v5481_v57 }
  0xee   :  { %827 = vmatmul.f32.gmra.mxu3 %v55_v17  ;;  %vm933_vm8 = vmor %vm898_vm6, %vm917_vm2  ;;  %631 = vmatmul.f32.gmra.mxu2 %v56_v18  ;;  %vm916_vm6 = vcmp.eq.s32.totalorder %v5320_v40, %v5491_v60 }
  0xef   :  { %4250 = vmatpush.msk.msrb.mxu0 %vm933_vm8, %v8382_v24  ;;  %vm1495_vm11 = vmor %vm1461_vm4, %vm1479_vm5  ;;  %vm881_vm4 = vcmp.eq.s32.totalorder %v5320_v40, %v5483_v58  ;;  %vm1460_vm8 = vcmp.eq.s32.totalorder %v5320_v40, %v5500_v63 }
  0xf0   :  { %vm1530_vm13 = vmor %vm1495_vm11, %vm1514_vm7  ;;  %vm1513_vm11 = vcmp.eq.s32.totalorder %v5320_v40, %v5513_v3 }
  0xf1   :  { %4346 = vmatpush.msk.msrb.mxu3 %vm1530_vm13, %v8382_v24  ;;  %vm1097_vm0 = vmor %vm1063_vm9, %vm1081_vm10  ;;  %vm1478_vm9 = vcmp.eq.s32.totalorder %v5320_v40, %v5502_v0  ;;  %vm1062_vm13 = vcmp.eq.s32.totalorder %v5320_v40, %v5519_v4 }
  0xf2   :  { %vm1132_vm2 = vmor %vm1097_vm0, %vm1116_vm12  ;;  %252 = vmatmul.f32.gmra.mxu0 %v57_v19  ;;  %vm1115_vm0 = vcmp.eq.s32.totalorder %v5320_v40, %v5529_v6 }
  0xf3   :  { %4282 = vmatpush.msk.msrb.mxu1 %vm1132_vm2, %v8382_v24  ;;  %vm1295_vm5 = vmor %vm1261_vm14, %vm1279_vm15  ;;  %vm1080_vm14 = vcmp.eq.s32.totalorder %v5320_v40, %v5521_v5  ;;  %vm1260_vm2 = vcmp.eq.s32.totalorder %v5351_v41, %v5442_v49 }
  0xf4   :  { %vm1330_vm7 = vmor %vm1295_vm5, %vm1314_vm1  ;;  %432 = vmatmul.f32.gmra.mxu1 %v56_v18  ;;  %vm1313_vm5 = vcmp.eq.s32.totalorder %v5351_v41, %v5449_v51 }
  0xf5   :  { %4315 = vmatpush.msk.msrb.mxu2 %vm1330_vm7, %v8382_v24  ;;  %vm897_vm10 = vmor %vm863_vm3, %vm881_vm4  ;;  %vm1278_vm3 = vcmp.eq.s32.totalorder %v5351_v41, %v5444_v50  ;;  %vm862_vm7 = vcmp.eq.s32.totalorder %v5351_v41, %v5481_v57 }
  0xf6   :  { %830 = vmatmul.f32.gmra.mxu3 %v56_v18  ;;  %vm932_vm12 = vmor %vm897_vm10, %vm916_vm6  ;;  %634 = vmatmul.f32.gmra.mxu2 %v57_v19  ;;  %vm915_vm10 = vcmp.eq.s32.totalorder %v5351_v41, %v5491_v60 }
  0xf7   :  { %4251 = vmatpush.msk.msrb.mxu0 %vm932_vm12, %v8382_v24  ;;  %vm1494_vm15 = vmor %vm1460_vm8, %vm1478_vm9  ;;  %vm880_vm8 = vcmp.eq.s32.totalorder %v5351_v41, %v5483_v58  ;;  %vm1459_vm12 = vcmp.eq.s32.totalorder %v5351_v41, %v5500_v63 }
  0xf8   :  { %vm1529_vm1 = vmor %vm1494_vm15, %vm1513_vm11  ;;  %vm1512_vm15 = vcmp.eq.s32.totalorder %v5351_v41, %v5513_v3 }
  0xf9   :  { %4347 = vmatpush.msk.msrb.mxu3 %vm1529_vm1, %v8382_v24  ;;  %vm1096_vm4 = vmor %vm1062_vm13, %vm1080_vm14  ;;  %vm1477_vm13 = vcmp.eq.s32.totalorder %v5351_v41, %v5502_v0  ;;  %vm1061_vm1 = vcmp.eq.s32.totalorder %v5351_v41, %v5519_v4 }
  0xfa   :  { %vm1131_vm6 = vmor %vm1096_vm4, %vm1115_vm0  ;;  %255 = vmatmul.f32.gmra.mxu0 %v58_v20  ;;  %vm1114_vm4 = vcmp.eq.s32.totalorder %v5351_v41, %v5529_v6 }
  0xfb   :  { %4283 = vmatpush.msk.msrb.mxu1 %vm1131_vm6, %v8382_v24  ;;  %vm1294_vm9 = vmor %vm1260_vm2, %vm1278_vm3  ;;  %vm1079_vm2 = vcmp.eq.s32.totalorder %v5351_v41, %v5521_v5  ;;  %vm1259_vm6 = vcmp.eq.s32.totalorder %v5382_v42, %v5442_v49 }
  0xfc   :  { %vm1329_vm11 = vmor %vm1294_vm9, %vm1313_vm5  ;;  %435 = vmatmul.f32.gmra.mxu1 %v57_v19  ;;  %vm1312_vm9 = vcmp.eq.s32.totalorder %v5382_v42, %v5449_v51 }
  0xfd   :  { %4316 = vmatpush.msk.msrb.mxu2 %vm1329_vm11, %v8382_v24  ;;  %vm896_vm14 = vmor %vm862_vm7, %vm880_vm8  ;;  %vm1277_vm7 = vcmp.eq.s32.totalorder %v5382_v42, %v5444_v50  ;;  %vm861_vm11 = vcmp.eq.s32.totalorder %v5382_v42, %v5481_v57 }
  0xfe   :  { %833 = vmatmul.f32.gmra.mxu3 %v57_v19  ;;  %vm931_vm0 = vmor %vm896_vm14, %vm915_vm10  ;;  %637 = vmatmul.f32.gmra.mxu2 %v58_v20  ;;  %vm914_vm14 = vcmp.eq.s32.totalorder %v5382_v42, %v5491_v60 }
  0xff   :  { %4252 = vmatpush.msk.msrb.mxu0 %vm931_vm0, %v8382_v24  ;;  %vm1493_vm3 = vmor %vm1459_vm12, %vm1477_vm13  ;;  %vm879_vm12 = vcmp.eq.s32.totalorder %v5382_v42, %v5483_v58  ;;  %vm1458_vm0 = vcmp.eq.s32.totalorder %v5382_v42, %v5500_v63 }
 0x100   :  { %vm1528_vm5 = vmor %vm1493_vm3, %vm1512_vm15  ;;  %vm1511_vm3 = vcmp.eq.s32.totalorder %v5382_v42, %v5513_v3 }
 0x101   :  { %4348 = vmatpush.msk.msrb.mxu3 %vm1528_vm5, %v8382_v24  ;;  %vm1095_vm8 = vmor %vm1061_vm1, %vm1079_vm2  ;;  %vm1476_vm1 = vcmp.eq.s32.totalorder %v5382_v42, %v5502_v0  ;;  %vm1060_vm5 = vcmp.eq.s32.totalorder %v5382_v42, %v5519_v4 }
 0x102   :  { %vm1130_vm10 = vmor %vm1095_vm8, %vm1114_vm4  ;;  %258 = vmatmul.f32.gmra.mxu0 %v59_v21  ;;  %vm1113_vm8 = vcmp.eq.s32.totalorder %v5382_v42, %v5529_v6 }
 0x103   :  { %4284 = vmatpush.msk.msrb.mxu1 %vm1130_vm10, %v8382_v24  ;;  %vm1293_vm13 = vmor %vm1259_vm6, %vm1277_vm7  ;;  %vm1078_vm6 = vcmp.eq.s32.totalorder %v5382_v42, %v5521_v5  ;;  %vm1258_vm10 = vcmp.eq.s32.totalorder %v4938_v1, %v5442_v49  ;;  %v2304_v49 = vadd.s32 82, %v2303_v43 }
 0x104   :  { %vm1328_vm15 = vmor %vm1293_vm13, %vm1312_vm9  ;;  %438 = vmatmul.f32.gmra.mxu1 %v58_v20  ;;  %vm1311_vm13 = vcmp.eq.s32.totalorder %v4938_v1, %v5449_v51  ;;  %v5979_v51 = vld [vmem:[#allocation2 + $0x8] ss:$0 sm:$0xff] }
 0x105   :  { %4317 = vmatpush.msk.msrb.mxu2 %vm1328_vm15, %v8382_v24  ;;  %vm895_vm2 = vmor %vm861_vm11, %vm879_vm12  ;;  %vm1276_vm11 = vcmp.eq.s32.totalorder %v4938_v1, %v5444_v50  ;;  %vm860_vm15 = vcmp.eq.s32.totalorder %v4938_v1, %v5481_v57  ;;  %v4761_v50 = vld [vmem:[#allocation5] sm:$0xff]  ;;  %v6003_v57 = vld [vmem:[#allocation2 + $0xb] ss:$0 sm:$0xff] }
 0x106   :  { %836 = vmatmul.f32.gmra.mxu3 %v58_v20  ;;  %vm930_vm4 = vmor %vm895_vm2, %vm914_vm14  ;;  %640 = vmatmul.f32.gmra.mxu2 %v59_v21  ;;  %vm913_vm2 = vcmp.eq.s32.totalorder %v4938_v1, %v5491_v60  ;;  %v6016_v60 = vperm.slane %v2304_v49, 0 }
 0x107   :  { %4253 = vmatpush.msk.msrb.mxu0 %vm930_vm4, %v8382_v24  ;;  %vm1492_vm7 = vmor %vm1458_vm0, %vm1476_vm1  ;;  %v5939_v25 = vpop.f32.mrf.mxu0  ;;  %vm878_vm0 = vcmp.eq.s32.totalorder %v4938_v1, %v5483_v58  ;;  %vm1457_vm4 = vcmp.eq.s32.totalorder %v4938_v1, %v5500_v63  ;;  %v6005_v58 = vperm.slane %v2269_v47, 0  ;;  %v6027_v63 = vperm.slane %v1871_v53, 0 }
 0x108   :  { %vm1527_vm9 = vmor %vm1492_vm7, %vm1511_vm3  ;;  %vm1510_vm7 = vcmp.eq.s32.totalorder %v4938_v1, %v5513_v3 }
 0x109   :  { %4349 = vmatpush.msk.msrb.mxu3 %vm1527_vm9, %v8382_v24  ;;  %vm1094_vm12 = vmor %vm1060_vm5, %vm1078_vm6  ;;  %vm1475_vm5 = vcmp.eq.s32.totalorder %v4938_v1, %v5502_v0  ;;  %vm1059_vm9 = vcmp.eq.s32.totalorder %v4938_v1, %v5519_v4  ;;  %v6038_v0 = vperm.slane %v1906_v55, 0 }
 0x10a   :  { %vm1129_vm14 = vmor %vm1094_vm12, %vm1113_vm8  ;;  %vm1112_vm12 = vcmp.eq.s32.totalorder %v4938_v1, %v5529_v6 }
 0x10b   :  { %4285 = vmatpush.msk.msrb.mxu1 %vm1129_vm14, %v8382_v24  ;;  %vm1292_vm1 = vmor %vm1258_vm10, %vm1276_vm11  ;;  %vm1077_vm10 = vcmp.eq.s32.totalorder %v4938_v1, %v5521_v5  ;;  %vm2069_vm14 = vcmp.eq.s32.totalorder %v4941_v2, %v5960_v45  ;;  %v4762_v5 = vld [vmem:[#allocation5 + $0x8] sm:$0xff] }
 0x10c   :  { %vm1327_vm3 = vmor %vm1292_vm1, %vm1311_vm13  ;;  %441 = vmatmul.f32.gmra.mxu1 %v59_v21  ;;  %vm2122_vm1 = vcmp.eq.s32.totalorder %v4941_v2, %v5970_v48 }
 0x10d   :  { %4318 = vmatpush.msk.msrb.mxu2 %vm1327_vm3, %v8382_v24  ;;  %vm894_vm6 = vmor %vm860_vm15, %vm878_vm0  ;;  %vm2087_vm15 = vcmp.eq.s32.totalorder %v4941_v2, %v5962_v46  ;;  %vm1671_vm3 = vcmp.eq.s32.totalorder %v4941_v2, %v5979_v51 }
 0x10e   :  { %839 = vmatmul.f32.gmra.mxu3 %v59_v21  ;;  %vm929_vm8 = vmor %vm894_vm6, %vm913_vm2  ;;  %1391 = vmatmul.f32.vlgmr.msrb.gmra.mxu2 %v4761_v50  ;;  %vm1724_vm6 = vcmp.eq.s32.totalorder %v4941_v2, %v5992_v54 }
 0x10f   :  { %4254 = vmatpush.msk.msrb.mxu0 %vm929_vm8, %v8382_v24  ;;  %vm1491_vm11 = vmor %vm1457_vm4, %vm1475_vm5  ;;  %v5994_v56 = vpop.f32.mrf.mxu0  ;;  %vm1689_vm4 = vcmp.eq.s32.totalorder %v4941_v2, %v5981_v52  ;;  %vm2268_vm8 = vcmp.eq.s32.totalorder %v4941_v2, %v6003_v57 }
 0x110   :  { %vm1526_vm13 = vmor %vm1491_vm11, %vm1510_vm7  ;;  %993 = vmatmul.f32.vlgmr.msrb.gmra.mxu0 %v4761_v50  ;;  %vm2321_vm11 = vcmp.eq.s32.totalorder %v4941_v2, %v6016_v60 }
 0x111   :  { %4350 = vmatpush.msk.msrb.mxu3 %vm1526_vm13, %v8382_v24  ;;  %vm1093_vm0 = vmor %vm1059_vm9, %vm1077_vm10  ;;  %v397_v59 = vpop.f32.mrf.mxu1  ;;  %v596_v61 = vpop.f32.mrf.mxu2  ;;  %vm2286_vm9 = vcmp.eq.s32.totalorder %v4941_v2, %v6005_v58  ;;  %vm1870_vm13 = vcmp.eq.s32.totalorder %v4941_v2, %v6025_v62 }
 0x112   :  { %vm1128_vm2 = vmor %vm1093_vm0, %vm1112_vm12  ;;  %v445_v3 = vmax.f32 %v5939_v25, %v397_v59  ;;  %vm1923_vm0 = vcmp.eq.s32.totalorder %v4941_v2, %v6038_v0 }
 0x113   :  { %4286 = vmatpush.msk.msrb.mxu1 %vm1128_vm2, %v8382_v24  ;;  %vm2103_vm5 = vmor %vm2069_vm14, %vm2087_vm15  ;;  %vm1888_vm14 = vcmp.eq.s32.totalorder %v4941_v2, %v6027_v63  ;;  %vm2068_vm2 = vcmp.eq.s32.totalorder %v4946_v8, %v5960_v45 }
 0x114   :  { %vm2138_vm7 = vmor %vm2103_vm5, %vm2122_vm1  ;;  %1192 = vmatmul.f32.vlgmr.msrb.gmra.mxu1 %v4761_v50  ;;  %v6048_v4 = vmax.f32 %v445_v3, %v596_v61  ;;  %vm2121_vm5 = vcmp.eq.s32.totalorder %v4946_v8, %v5970_v48  ;;  %v4766_v61 = vld [vmem:[#allocation5 + $0x28] sm:$0xff] }
 0x115   :  { %4431 = vmatpush.msk.msra.mxu2 %vm2138_vm7, %v8382_v24  ;;  %vm1705_vm10 = vmor %vm1671_vm3, %vm1689_vm4  ;;  %vm2086_vm3 = vcmp.eq.s32.totalorder %v4946_v8, %v5962_v46  ;;  %vm1670_vm7 = vcmp.eq.s32.totalorder %v4946_v8, %v5979_v51 }
 0x116   :  { %1590 = vmatmul.f32.vlgmr.msrb.gmra.mxu3 %v4761_v50  ;;  %vm1740_vm12 = vmor %vm1705_vm10, %vm1724_vm6  ;;  %1394 = vmatmul.f32.gmra.mxu2 %v4762_v5  ;;  %vm1723_vm10 = vcmp.eq.s32.totalorder %v4946_v8, %v5992_v54 }
 0x117   :  { %4367 = vmatpush.msk.msra.mxu0 %vm1740_vm12, %v8382_v24  ;;  %vm2302_vm15 = vmor %vm2268_vm8, %vm2286_vm9  ;;  %v6057_v6 = vpop.f32.mrf.mxu0  ;;  %vm1688_vm8 = vcmp.eq.s32.totalorder %v4946_v8, %v5981_v52  ;;  %vm2267_vm12 = vcmp.eq.s32.totalorder %v4946_v8, %v6003_v57 }
 0x118   :  { %vm2337_vm1 = vmor %vm2302_vm15, %vm2321_vm11  ;;  %996 = vmatmul.f32.gmra.mxu0 %v4762_v5  ;;  %vm2320_vm15 = vcmp.eq.s32.totalorder %v4946_v8, %v6016_v60 }
 0x119   :  { %4463 = vmatpush.msk.msra.mxu3 %vm2337_vm1, %v8382_v24  ;;  %vm1904_vm4 = vmor %vm1870_vm13, %vm1888_vm14  ;;  %v6064_v7 = vpop.f32.mrf.mxu3  ;;  %v400_v9 = vpop.f32.mrf.mxu1  ;;  %vm2285_vm13 = vcmp.eq.s32.totalorder %v4946_v8, %v6005_v58  ;;  %vm1869_vm1 = vcmp.eq.s32.totalorder %v4946_v8, %v6025_v62 }
 0x11a   :  { %vm1939_vm6 = vmor %vm1904_vm4, %vm1923_vm0  ;;  %v599_v11 = vpop.f32.mrf.mxu2  ;;  %v446_v12 = vmax.f32 %v5994_v56, %v400_v9  ;;  %vm1922_vm4 = vcmp.eq.s32.totalorder %v4946_v8, %v6038_v0 }
 0x11b   :  { %4399 = vmatpush.msk.msra.mxu1 %vm1939_vm6, %v8382_v24  ;;  %vm2102_vm9 = vmor %vm2068_vm2, %vm2086_vm3  ;;  %vm1887_vm2 = vcmp.eq.s32.totalorder %v4946_v8, %v6027_v63  ;;  %vm2067_vm6 = vcmp.eq.s32.totalorder %v5010_v30, %v5960_v45 }
 0x11c   :  { %vm2137_vm11 = vmor %vm2102_vm9, %vm2121_vm5  ;;  %1195 = vmatmul.f32.gmra.mxu1 %v4762_v5  ;;  %v6085_v13 = vmax.f32 %v446_v12, %v599_v11  ;;  %vm2120_vm9 = vcmp.eq.s32.totalorder %v5010_v30, %v5970_v48 }
 0x11d   :  { %4432 = vmatpush.msk.msra.mxu2 %vm2137_vm11, %v8382_v24  ;;  %vm1704_vm14 = vmor %vm1670_vm7, %vm1688_vm8  ;;  %vm2085_vm7 = vcmp.eq.s32.totalorder %v5010_v30, %v5962_v46  ;;  %vm1669_vm11 = vcmp.eq.s32.totalorder %v5010_v30, %v5979_v51 }
 0x11e   :  { %1593 = vmatmul.f32.gmra.mxu3 %v4762_v5  ;;  %vm1739_vm0 = vmor %vm1704_vm14, %vm1723_vm10  ;;  %1397 = vmatmul.f32.gmra.mxu2 %v4763_v14  ;;  %vm1722_vm14 = vcmp.eq.s32.totalorder %v5010_v30, %v5992_v54 }
 0x11f   :  { %4368 = vmatpush.msk.msra.mxu0 %vm1739_vm0, %v8382_v24  ;;  %vm2301_vm3 = vmor %vm2267_vm12, %vm2285_vm13  ;;  %v6094_v15 = vpop.f32.mrf.mxu0  ;;  %vm1687_vm12 = vcmp.eq.s32.totalorder %v5010_v30, %v5981_v52  ;;  %vm2266_vm0 = vcmp.eq.s32.totalorder %v5010_v30, %v6003_v57 }
 0x120   :  { %vm2336_vm5 = vmor %vm2301_vm3, %vm2320_vm15  ;;  %999 = vmatmul.f32.gmra.mxu0 %v4763_v14  ;;  %vm2319_vm3 = vcmp.eq.s32.totalorder %v5010_v30, %v6016_v60 }
 0x121   :  { %4464 = vmatpush.msk.msra.mxu3 %vm2336_vm5, %v8382_v24  ;;  %vm1903_vm8 = vmor %vm1869_vm1, %vm1887_vm2  ;;  %v6101_v16 = vpop.f32.mrf.mxu3  ;;  %v403_v17 = vpop.f32.mrf.mxu1  ;;  %vm2284_vm1 = vcmp.eq.s32.totalorder %v5010_v30, %v6005_v58  ;;  %vm1868_vm5 = vcmp.eq.s32.totalorder %v5010_v30, %v6025_v62 }
 0x122   :  { %vm1938_vm10 = vmor %vm1903_vm8, %vm1922_vm4  ;;  %v602_v19 = vpop.f32.mrf.mxu2  ;;  %v447_v20 = vmax.f32 %v6057_v6, %v403_v17  ;;  %vm1921_vm8 = vcmp.eq.s32.totalorder %v5010_v30, %v6038_v0 }
 0x123   :  { %4400 = vmatpush.msk.msra.mxu1 %vm1938_vm10, %v8382_v24  ;;  %vm2101_vm13 = vmor %vm2067_vm6, %vm2085_vm7  ;;  %vm1886_vm6 = vcmp.eq.s32.totalorder %v5010_v30, %v6027_v63  ;;  %vm2066_vm10 = vcmp.eq.s32.totalorder %v5041_v31, %v5960_v45 }
 0x124   :  { %vm2136_vm15 = vmor %vm2101_vm13, %vm2120_vm9  ;;  %1198 = vmatmul.f32.gmra.mxu1 %v4763_v14  ;;  %v6122_v21 = vmax.f32 %v447_v20, %v602_v19  ;;  %vm2119_vm13 = vcmp.eq.s32.totalorder %v5041_v31, %v5970_v48 }
 0x125   :  { %4433 = vmatpush.msk.msra.mxu2 %vm2136_vm15, %v8382_v24  ;;  %vm1703_vm2 = vmor %vm1669_vm11, %vm1687_vm12  ;;  %vm2084_vm11 = vcmp.eq.s32.totalorder %v5041_v31, %v5962_v46  ;;  %vm1668_vm15 = vcmp.eq.s32.totalorder %v5041_v31, %v5979_v51 }
 0x126   :  { %1596 = vmatmul.f32.gmra.mxu3 %v4763_v14  ;;  %vm1738_vm4 = vmor %vm1703_vm2, %vm1722_vm14  ;;  %1400 = vmatmul.f32.gmra.mxu2 %v4764_v22  ;;  %vm1721_vm2 = vcmp.eq.s32.totalorder %v5041_v31, %v5992_v54 }
 0x127   :  { %4369 = vmatpush.msk.msra.mxu0 %vm1738_vm4, %v8382_v24  ;;  %vm2300_vm7 = vmor %vm2266_vm0, %vm2284_vm1  ;;  %v6131_v23 = vpop.f32.mrf.mxu0  ;;  %vm1686_vm0 = vcmp.eq.s32.totalorder %v5041_v31, %v5981_v52  ;;  %vm2265_vm4 = vcmp.eq.s32.totalorder %v5041_v31, %v6003_v57 }
 0x128   :  { %vm2335_vm9 = vmor %vm2300_vm7, %vm2319_vm3  ;;  %1002 = vmatmul.f32.gmra.mxu0 %v4764_v22  ;;  %vm2318_vm7 = vcmp.eq.s32.totalorder %v5041_v31, %v6016_v60 }
 0x129   :  { %4465 = vmatpush.msk.msra.mxu3 %vm2335_vm9, %v8382_v24  ;;  %vm1902_vm12 = vmor %vm1868_vm5, %vm1886_vm6  ;;  %v6138_v25 = vpop.f32.mrf.mxu3  ;;  %v406_v26 = vpop.f32.mrf.mxu1  ;;  %vm2283_vm5 = vcmp.eq.s32.totalorder %v5041_v31, %v6005_v58  ;;  %vm1867_vm9 = vcmp.eq.s32.totalorder %v5041_v31, %v6025_v62 }
 0x12a   :  { %vm1937_vm14 = vmor %vm1902_vm12, %vm1921_vm8  ;;  %v605_v28 = vpop.f32.mrf.mxu2  ;;  %v448_v29 = vmax.f32 %v6094_v15, %v406_v26  ;;  %vm1920_vm12 = vcmp.eq.s32.totalorder %v5041_v31, %v6038_v0  ;;  %v4767_v15 = vld [vmem:[#allocation5 + $0x30] sm:$0xff] }
 0x12b   :  { %4401 = vmatpush.msk.msra.mxu1 %vm1937_vm14, %v8382_v24  ;;  %vm2100_vm1 = vmor %vm2066_vm10, %vm2084_vm11  ;;  %vm1885_vm10 = vcmp.eq.s32.totalorder %v5041_v31, %v6027_v63  ;;  %vm2065_vm14 = vcmp.eq.s32.totalorder %v5072_v32, %v5960_v45 }
 0x12c   :  { %vm2135_vm3 = vmor %vm2100_vm1, %vm2119_vm13  ;;  %1201 = vmatmul.f32.gmra.mxu1 %v4764_v22  ;;  %v6159_v43 = vmax.f32 %v448_v29, %v605_v28  ;;  %vm2118_vm1 = vcmp.eq.s32.totalorder %v5072_v32, %v5970_v48  ;;  %v4768_v29 = vld [vmem:[#allocation5 + $0x38] sm:$0xff] }
 0x12d   :  { %4434 = vmatpush.msk.msra.mxu2 %vm2135_vm3, %v8382_v24  ;;  %vm1702_vm6 = vmor %vm1668_vm15, %vm1686_vm0  ;;  %vm2083_vm15 = vcmp.eq.s32.totalorder %v5072_v32, %v5962_v46  ;;  %vm1667_vm3 = vcmp.eq.s32.totalorder %v5072_v32, %v5979_v51 }
 0x12e   :  { %1599 = vmatmul.f32.gmra.mxu3 %v4764_v22  ;;  %vm1737_vm8 = vmor %vm1702_vm6, %vm1721_vm2  ;;  %1403 = vmatmul.f32.gmra.mxu2 %v4765_v44  ;;  %vm1720_vm6 = vcmp.eq.s32.totalorder %v5072_v32, %v5992_v54 }
 0x12f   :  { %4370 = vmatpush.msk.msra.mxu0 %vm1737_vm8, %v8382_v24  ;;  %vm2299_vm11 = vmor %vm2265_vm4, %vm2283_vm5  ;;  %v6168_v47 = vpop.f32.mrf.mxu0  ;;  %vm1685_vm4 = vcmp.eq.s32.totalorder %v5072_v32, %v5981_v52  ;;  %vm2264_vm8 = vcmp.eq.s32.totalorder %v5072_v32, %v6003_v57 }
 0x130   :  { %vm2334_vm13 = vmor %vm2299_vm11, %vm2318_vm7  ;;  %1005 = vmatmul.f32.gmra.mxu0 %v4765_v44  ;;  %vm2317_vm11 = vcmp.eq.s32.totalorder %v5072_v32, %v6016_v60 }
 0x131   :  { %4466 = vmatpush.msk.msra.mxu3 %vm2334_vm13, %v8382_v24  ;;  %vm1901_vm0 = vmor %vm1867_vm9, %vm1885_vm10  ;;  %v6175_v49 = vpop.f32.mrf.mxu3  ;;  %v409_v50 = vpop.f32.mrf.mxu1  ;;  %vm2282_vm9 = vcmp.eq.s32.totalorder %v5072_v32, %v6005_v58  ;;  %vm1866_vm13 = vcmp.eq.s32.totalorder %v5072_v32, %v6025_v62 }
 0x132   :  { %vm1936_vm2 = vmor %vm1901_vm0, %vm1920_vm12  ;;  %v608_v55 = vpop.f32.mrf.mxu2  ;;  %v449_v56 = vmax.f32 %v6131_v23, %v409_v50  ;;  %vm1919_vm0 = vcmp.eq.s32.totalorder %v5072_v32, %v6038_v0 }
 0x133   :  { %4402 = vmatpush.msk.msra.mxu1 %vm1936_vm2, %v8382_v24  ;;  %vm2099_vm5 = vmor %vm2065_vm14, %vm2083_vm15  ;;  %vm1884_vm14 = vcmp.eq.s32.totalorder %v5072_v32, %v6027_v63  ;;  %vm2064_vm2 = vcmp.eq.s32.totalorder %v5103_v33, %v5960_v45 }
 0x134   :  { %vm2134_vm7 = vmor %vm2099_vm5, %vm2118_vm1  ;;  %1204 = vmatmul.f32.gmra.mxu1 %v4765_v44  ;;  %v6196_v59 = vmax.f32 %v449_v56, %v608_v55  ;;  %vm2117_vm5 = vcmp.eq.s32.totalorder %v5103_v33, %v5970_v48 }
 0x135   :  { %4435 = vmatpush.msk.msra.mxu2 %vm2134_vm7, %v8382_v24  ;;  %vm1701_vm10 = vmor %vm1667_vm3, %vm1685_vm4  ;;  %vm2082_vm3 = vcmp.eq.s32.totalorder %v5103_v33, %v5962_v46  ;;  %vm1666_vm7 = vcmp.eq.s32.totalorder %v5103_v33, %v5979_v51 }
 0x136   :  { %1602 = vmatmul.f32.gmra.mxu3 %v4765_v44  ;;  %vm1736_vm12 = vmor %vm1701_vm10, %vm1720_vm6  ;;  %1406 = vmatmul.f32.gmra.mxu2 %v4766_v61  ;;  %vm1719_vm10 = vcmp.eq.s32.totalorder %v5103_v33, %v5992_v54 }
 0x137   :  { %4371 = vmatpush.msk.msra.mxu0 %vm1736_vm12, %v8382_v24  ;;  %vm2298_vm15 = vmor %vm2264_vm8, %vm2282_vm9  ;;  %v6205_v3 = vpop.f32.mrf.mxu0  ;;  %vm1684_vm8 = vcmp.eq.s32.totalorder %v5103_v33, %v5981_v52  ;;  %vm2263_vm12 = vcmp.eq.s32.totalorder %v5103_v33, %v6003_v57 }
 0x138   :  { %vm2333_vm1 = vmor %vm2298_vm15, %vm2317_vm11  ;;  %1008 = vmatmul.f32.gmra.mxu0 %v4766_v61  ;;  %vm2316_vm15 = vcmp.eq.s32.totalorder %v5103_v33, %v6016_v60 }
 0x139   :  { %4467 = vmatpush.msk.msra.mxu3 %vm2333_vm1, %v8382_v24  ;;  %vm1900_vm4 = vmor %vm1866_vm13, %vm1884_vm14  ;;  %v6212_v5 = vpop.f32.mrf.mxu3  ;;  %v412_v6 = vpop.f32.mrf.mxu1  ;;  %vm2281_vm13 = vcmp.eq.s32.totalorder %v5103_v33, %v6005_v58  ;;  %vm1865_vm1 = vcmp.eq.s32.totalorder %v5103_v33, %v6025_v62 }
 0x13a   :  { %vm1935_vm6 = vmor %vm1900_vm4, %vm1919_vm0  ;;  %v611_v11 = vpop.f32.mrf.mxu2  ;;  %v450_v12 = vmax.f32 %v6168_v47, %v412_v6  ;;  %vm1918_vm4 = vcmp.eq.s32.totalorder %v5103_v33, %v6038_v0  ;;  %v4769_v6 = vld [vmem:[#allocation5 + $0x40] sm:$0xff] }
 0x13b   :  { %4403 = vmatpush.msk.msra.mxu1 %vm1935_vm6, %v8382_v24  ;;  %vm2098_vm9 = vmor %vm2064_vm2, %vm2082_vm3  ;;  %vm1883_vm2 = vcmp.eq.s32.totalorder %v5103_v33, %v6027_v63  ;;  %vm2063_vm6 = vcmp.eq.s32.totalorder %v5134_v34, %v5960_v45 }
 0x13c   :  { %vm2133_vm11 = vmor %vm2098_vm9, %vm2117_vm5  ;;  %1207 = vmatmul.f32.gmra.mxu1 %v4766_v61  ;;  %v6233_v14 = vmax.f32 %v450_v12, %v611_v11  ;;  %vm2116_vm9 = vcmp.eq.s32.totalorder %v5134_v34, %v5970_v48 }
 0x13d   :  { %4436 = vmatpush.msk.msra.mxu2 %vm2133_vm11, %v8382_v24  ;;  %vm1700_vm14 = vmor %vm1666_vm7, %vm1684_vm8  ;;  %vm2081_vm7 = vcmp.eq.s32.totalorder %v5134_v34, %v5962_v46  ;;  %vm1665_vm11 = vcmp.eq.s32.totalorder %v5134_v34, %v5979_v51 }
 0x13e   :  { %1605 = vmatmul.f32.gmra.mxu3 %v4766_v61  ;;  %vm1735_vm0 = vmor %vm1700_vm14, %vm1719_vm10  ;;  %1409 = vmatmul.f32.gmra.mxu2 %v4767_v15  ;;  %vm1718_vm14 = vcmp.eq.s32.totalorder %v5134_v34, %v5992_v54 }
 0x13f   :  { %4372 = vmatpush.msk.msra.mxu0 %vm1735_vm0, %v8382_v24  ;;  %vm2297_vm3 = vmor %vm2263_vm12, %vm2281_vm13  ;;  %v6242_v17 = vpop.f32.mrf.mxu0  ;;  %vm1683_vm12 = vcmp.eq.s32.totalorder %v5134_v34, %v5981_v52  ;;  %vm2262_vm0 = vcmp.eq.s32.totalorder %v5134_v34, %v6003_v57 }
 0x140   :  { %vm2332_vm5 = vmor %vm2297_vm3, %vm2316_vm15  ;;  %1011 = vmatmul.f32.gmra.mxu0 %v4767_v15  ;;  %vm2315_vm3 = vcmp.eq.s32.totalorder %v5134_v34, %v6016_v60 }
 0x141   :  { %4468 = vmatpush.msk.msra.mxu3 %vm2332_vm5, %v8382_v24  ;;  %vm1899_vm8 = vmor %vm1865_vm1, %vm1883_vm2  ;;  %v6249_v19 = vpop.f32.mrf.mxu3  ;;  %v415_v20 = vpop.f32.mrf.mxu1  ;;  %vm2280_vm1 = vcmp.eq.s32.totalorder %v5134_v34, %v6005_v58  ;;  %vm1864_vm5 = vcmp.eq.s32.totalorder %v5134_v34, %v6025_v62 }
 0x142   :  { %vm1934_vm10 = vmor %vm1899_vm8, %vm1918_vm4  ;;  %v614_v23 = vpop.f32.mrf.mxu2  ;;  %v451_v26 = vmax.f32 %v6205_v3, %v415_v20  ;;  %vm1917_vm8 = vcmp.eq.s32.totalorder %v5134_v34, %v6038_v0 }
 0x143   :  { %4404 = vmatpush.msk.msra.mxu1 %vm1934_vm10, %v8382_v24  ;;  %vm2097_vm13 = vmor %vm2063_vm6, %vm2081_vm7  ;;  %vm1882_vm6 = vcmp.eq.s32.totalorder %v5134_v34, %v6027_v63  ;;  %vm2062_vm10 = vcmp.eq.s32.totalorder %v5165_v35, %v5960_v45 }
 0x144   :  { %vm2132_vm15 = vmor %vm2097_vm13, %vm2116_vm9  ;;  %1210 = vmatmul.f32.gmra.mxu1 %v4767_v15  ;;  %v6270_v28 = vmax.f32 %v451_v26, %v614_v23  ;;  %vm2115_vm13 = vcmp.eq.s32.totalorder %v5165_v35, %v5970_v48 }
 0x145   :  { %4437 = vmatpush.msk.msra.mxu2 %vm2132_vm15, %v8382_v24  ;;  %vm1699_vm2 = vmor %vm1665_vm11, %vm1683_vm12  ;;  %vm2080_vm11 = vcmp.eq.s32.totalorder %v5165_v35, %v5962_v46  ;;  %vm1664_vm15 = vcmp.eq.s32.totalorder %v5165_v35, %v5979_v51 }
 0x146   :  { %1608 = vmatmul.f32.gmra.mxu3 %v4767_v15  ;;  %vm1734_vm4 = vmor %vm1699_vm2, %vm1718_vm14  ;;  %1412 = vmatmul.f32.gmra.mxu2 %v4768_v29  ;;  %vm1717_vm2 = vcmp.eq.s32.totalorder %v5165_v35, %v5992_v54 }
 0x147   :  { %4373 = vmatpush.msk.msra.mxu0 %vm1734_vm4, %v8382_v24  ;;  %vm2296_vm7 = vmor %vm2262_vm0, %vm2280_vm1  ;;  %v6279_v44 = vpop.f32.mrf.mxu0  ;;  %vm1682_vm0 = vcmp.eq.s32.totalorder %v5165_v35, %v5981_v52  ;;  %vm2261_vm4 = vcmp.eq.s32.totalorder %v5165_v35, %v6003_v57 }
 0x148   :  { %vm2331_vm9 = vmor %vm2296_vm7, %vm2315_vm3  ;;  %1014 = vmatmul.f32.gmra.mxu0 %v4768_v29  ;;  %vm2314_vm7 = vcmp.eq.s32.totalorder %v5165_v35, %v6016_v60 }
 0x149   :  { %4469 = vmatpush.msk.msra.mxu3 %vm2331_vm9, %v8382_v24  ;;  %vm1898_vm12 = vmor %vm1864_vm5, %vm1882_vm6  ;;  %v6286_v47 = vpop.f32.mrf.mxu3  ;;  %v418_v50 = vpop.f32.mrf.mxu1  ;;  %vm2279_vm5 = vcmp.eq.s32.totalorder %v5165_v35, %v6005_v58  ;;  %vm1863_vm9 = vcmp.eq.s32.totalorder %v5165_v35, %v6025_v62 }
 0x14a   :  { %vm1933_vm14 = vmor %vm1898_vm12, %vm1917_vm8  ;;  %v617_v56 = vpop.f32.mrf.mxu2  ;;  %v452_v61 = vmax.f32 %v6242_v17, %v418_v50  ;;  %vm1916_vm12 = vcmp.eq.s32.totalorder %v5165_v35, %v6038_v0 }
 0x14b   :  { %4405 = vmatpush.msk.msra.mxu1 %vm1933_vm14, %v8382_v24  ;;  %vm2096_vm1 = vmor %vm2062_vm10, %vm2080_vm11  ;;  %vm1881_vm10 = vcmp.eq.s32.totalorder %v5165_v35, %v6027_v63  ;;  %vm2061_vm14 = vcmp.eq.s32.totalorder %v5196_v36, %v5960_v45 }
 0x14c   :  { %vm2131_vm3 = vmor %vm2096_vm1, %vm2115_vm13  ;;  %1213 = vmatmul.f32.gmra.mxu1 %v4768_v29  ;;  %v6307_v3 = vmax.f32 %v452_v61, %v617_v56  ;;  %vm2114_vm1 = vcmp.eq.s32.totalorder %v5196_v36, %v5970_v48 }
 0x14d   :  { %4438 = vmatpush.msk.msra.mxu2 %vm2131_vm3, %v8382_v24  ;;  %vm1698_vm6 = vmor %vm1664_vm15, %vm1682_vm0  ;;  %vm2079_vm15 = vcmp.eq.s32.totalorder %v5196_v36, %v5962_v46  ;;  %vm1663_vm3 = vcmp.eq.s32.totalorder %v5196_v36, %v5979_v51 }
 0x14e   :  { %1611 = vmatmul.f32.gmra.mxu3 %v4768_v29  ;;  %vm1733_vm8 = vmor %vm1698_vm6, %vm1717_vm2  ;;  %1415 = vmatmul.f32.gmra.mxu2 %v4769_v6  ;;  %vm1716_vm6 = vcmp.eq.s32.totalorder %v5196_v36, %v5992_v54  ;;  %v4770_v29 = vld [vmem:[#allocation5 + $0x48] sm:$0xff] }
 0x14f   :  { %4374 = vmatpush.msk.msra.mxu0 %vm1733_vm8, %v8382_v24  ;;  %vm2295_vm11 = vmor %vm2261_vm4, %vm2279_vm5  ;;  %v6316_v11 = vpop.f32.mrf.mxu0  ;;  %vm1681_vm4 = vcmp.eq.s32.totalorder %v5196_v36, %v5981_v52  ;;  %vm2260_vm8 = vcmp.eq.s32.totalorder %v5196_v36, %v6003_v57 }
 0x150   :  { %vm2330_vm13 = vmor %vm2295_vm11, %vm2314_vm7  ;;  %1017 = vmatmul.f32.gmra.mxu0 %v4769_v6  ;;  %vm2313_vm11 = vcmp.eq.s32.totalorder %v5196_v36, %v6016_v60 }
 0x151   :  { %4470 = vmatpush.msk.msra.mxu3 %vm2330_vm13, %v8382_v24  ;;  %vm1897_vm0 = vmor %vm1863_vm9, %vm1881_vm10  ;;  %v6323_v12 = vpop.f32.mrf.mxu3  ;;  %v421_v15 = vpop.f32.mrf.mxu1  ;;  %vm2278_vm9 = vcmp.eq.s32.totalorder %v5196_v36, %v6005_v58  ;;  %vm1862_vm13 = vcmp.eq.s32.totalorder %v5196_v36, %v6025_v62 }
 0x152   :  { %vm1932_vm2 = vmor %vm1897_vm0, %vm1916_vm12  ;;  %v620_v20 = vpop.f32.mrf.mxu2  ;;  %v453_v23 = vmax.f32 %v6279_v44, %v421_v15  ;;  %vm1915_vm0 = vcmp.eq.s32.totalorder %v5196_v36, %v6038_v0 }
 0x153   :  { %4406 = vmatpush.msk.msra.mxu1 %vm1932_vm2, %v8382_v24  ;;  %vm2095_vm5 = vmor %vm2061_vm14, %vm2079_vm15  ;;  %vm1880_vm14 = vcmp.eq.s32.totalorder %v5196_v36, %v6027_v63  ;;  %vm2060_vm2 = vcmp.eq.s32.totalorder %v5227_v37, %v5960_v45 }
 0x154   :  { %vm2130_vm7 = vmor %vm2095_vm5, %vm2114_vm1  ;;  %1216 = vmatmul.f32.gmra.mxu1 %v4769_v6  ;;  %v6344_v26 = vmax.f32 %v453_v23, %v620_v20  ;;  %vm2113_vm5 = vcmp.eq.s32.totalorder %v5227_v37, %v5970_v48 }
 0x155   :  { %4439 = vmatpush.msk.msra.mxu2 %vm2130_vm7, %v8382_v24  ;;  %vm1697_vm10 = vmor %vm1663_vm3, %vm1681_vm4  ;;  %vm2078_vm3 = vcmp.eq.s32.totalorder %v5227_v37, %v5962_v46  ;;  %vm1662_vm7 = vcmp.eq.s32.totalorder %v5227_v37, %v5979_v51 }
 0x156   :  { %1614 = vmatmul.f32.gmra.mxu3 %v4769_v6  ;;  %vm1732_vm12 = vmor %vm1697_vm10, %vm1716_vm6  ;;  %1418 = vmatmul.f32.gmra.mxu2 %v4770_v29  ;;  %vm1715_vm10 = vcmp.eq.s32.totalorder %v5227_v37, %v5992_v54 }
 0x157   :  { %4375 = vmatpush.msk.msra.mxu0 %vm1732_vm12, %v8382_v24  ;;  %vm2294_vm15 = vmor %vm2260_vm8, %vm2278_vm9  ;;  %v6353_v44 = vpop.f32.mrf.mxu0  ;;  %vm1680_vm8 = vcmp.eq.s32.totalorder %v5227_v37, %v5981_v52  ;;  %vm2259_vm12 = vcmp.eq.s32.totalorder %v5227_v37, %v6003_v57 }
 0x158   :  { %vm2329_vm1 = vmor %vm2294_vm15, %vm2313_vm11  ;;  %1020 = vmatmul.f32.gmra.mxu0 %v4770_v29  ;;  %vm2312_vm15 = vcmp.eq.s32.totalorder %v5227_v37, %v6016_v60 }
 0x159   :  { %4471 = vmatpush.msk.msra.mxu3 %vm2329_vm1, %v8382_v24  ;;  %vm1896_vm4 = vmor %vm1862_vm13, %vm1880_vm14  ;;  %v6360_v50 = vpop.f32.mrf.mxu3  ;;  %v424_v56 = vpop.f32.mrf.mxu1  ;;  %vm2277_vm13 = vcmp.eq.s32.totalorder %v5227_v37, %v6005_v58  ;;  %vm1861_vm1 = vcmp.eq.s32.totalorder %v5227_v37, %v6025_v62 }
 0x15a   :  { %vm1931_vm6 = vmor %vm1896_vm4, %vm1915_vm0  ;;  %v623_v6 = vpop.f32.mrf.mxu2  ;;  %v454_v15 = vmax.f32 %v6316_v11, %v424_v56  ;;  %v4771_v11 = vld [vmem:[#allocation5 + $0x50] sm:$0xff]  ;;  %vm1914_vm4 = vcmp.eq.s32.totalorder %v5227_v37, %v6038_v0 }
 0x15b   :  { %4407 = vmatpush.msk.msra.mxu1 %vm1931_vm6, %v8382_v24  ;;  %vm2094_vm9 = vmor %vm2060_vm2, %vm2078_vm3  ;;  %vm1879_vm2 = vcmp.eq.s32.totalorder %v5227_v37, %v6027_v63  ;;  %vm2059_vm6 = vcmp.eq.s32.totalorder %v5258_v38, %v5960_v45 }
 0x15c   :  { %vm2129_vm11 = vmor %vm2094_vm9, %vm2113_vm5  ;;  %1219 = vmatmul.f32.gmra.mxu1 %v4770_v29  ;;  %v6381_v20 = vmax.f32 %v454_v15, %v623_v6  ;;  %vm2112_vm9 = vcmp.eq.s32.totalorder %v5258_v38, %v5970_v48 }
 0x15d   :  { %4440 = vmatpush.msk.msra.mxu2 %vm2129_vm11, %v8382_v24  ;;  %vm1696_vm14 = vmor %vm1662_vm7, %vm1680_vm8  ;;  %vm2077_vm7 = vcmp.eq.s32.totalorder %v5258_v38, %v5962_v46  ;;  %vm1661_vm11 = vcmp.eq.s32.totalorder %v5258_v38, %v5979_v51 }
 0x15e   :  { %1617 = vmatmul.f32.gmra.mxu3 %v4770_v29  ;;  %vm1731_vm0 = vmor %vm1696_vm14, %vm1715_vm10  ;;  %1421 = vmatmul.f32.gmra.mxu2 %v4771_v11  ;;  %vm1714_vm14 = vcmp.eq.s32.totalorder %v5258_v38, %v5992_v54 }
 0x15f   :  { %4376 = vmatpush.msk.msra.mxu0 %vm1731_vm0, %v8382_v24  ;;  %vm2293_vm3 = vmor %vm2259_vm12, %vm2277_vm13  ;;  %v6390_v23 = vpop.f32.mrf.mxu0  ;;  %vm1679_vm12 = vcmp.eq.s32.totalorder %v5258_v38, %v5981_v52  ;;  %vm2258_vm0 = vcmp.eq.s32.totalorder %v5258_v38, %v6003_v57 }
 0x160   :  { %vm2328_vm5 = vmor %vm2293_vm3, %vm2312_vm15  ;;  %1023 = vmatmul.f32.gmra.mxu0 %v4771_v11  ;;  %vm2311_vm3 = vcmp.eq.s32.totalorder %v5258_v38, %v6016_v60 }
 0x161   :  { %4472 = vmatpush.msk.msra.mxu3 %vm2328_vm5, %v8382_v24  ;;  %vm1895_vm8 = vmor %vm1861_vm1, %vm1879_vm2  ;;  %v6397_v29 = vpop.f32.mrf.mxu3  ;;  %v427_v56 = vpop.f32.mrf.mxu1  ;;  %vm2276_vm1 = vcmp.eq.s32.totalorder %v5258_v38, %v6005_v58  ;;  %vm1860_vm5 = vcmp.eq.s32.totalorder %v5258_v38, %v6025_v62 }
 0x162   :  { %vm1930_vm10 = vmor %vm1895_vm8, %vm1914_vm4  ;;  %v626_v15 = vpop.f32.mrf.mxu2  ;;  %v455_v61 = vmax.f32 %v6353_v44, %v427_v56  ;;  %v4772_v44 = vld [vmem:[#allocation5 + $0x58] sm:$0xff]  ;;  %vm1913_vm8 = vcmp.eq.s32.totalorder %v5258_v38, %v6038_v0 }
 0x163   :  { %4408 = vmatpush.msk.msra.mxu1 %vm1930_vm10, %v8382_v24  ;;  %vm2093_vm13 = vmor %vm2059_vm6, %vm2077_vm7  ;;  %vm1878_vm6 = vcmp.eq.s32.totalorder %v5258_v38, %v6027_v63  ;;  %vm2058_vm10 = vcmp.eq.s32.totalorder %v5289_v39, %v5960_v45 }
 0x164   :  { %vm2128_vm15 = vmor %vm2093_vm13, %vm2112_vm9  ;;  %1222 = vmatmul.f32.gmra.mxu1 %v4771_v11  ;;  %v6418_v6 = vmax.f32 %v455_v61, %v626_v15  ;;  %vm2111_vm13 = vcmp.eq.s32.totalorder %v5289_v39, %v5970_v48 }
 0x165   :  { %4441 = vmatpush.msk.msra.mxu2 %vm2128_vm15, %v8382_v24  ;;  %vm1695_vm2 = vmor %vm1661_vm11, %vm1679_vm12  ;;  %vm2076_vm11 = vcmp.eq.s32.totalorder %v5289_v39, %v5962_v46  ;;  %vm1660_vm15 = vcmp.eq.s32.totalorder %v5289_v39, %v5979_v51 }
 0x166   :  { %1620 = vmatmul.f32.gmra.mxu3 %v4771_v11  ;;  %vm1730_vm4 = vmor %vm1695_vm2, %vm1714_vm14  ;;  %1424 = vmatmul.f32.gmra.mxu2 %v4772_v44  ;;  %vm1713_vm2 = vcmp.eq.s32.totalorder %v5289_v39, %v5992_v54 }
 0x167   :  { %4377 = vmatpush.msk.msra.mxu0 %vm1730_vm4, %v8382_v24  ;;  %vm2292_vm7 = vmor %vm2258_vm0, %vm2276_vm1  ;;  %v6427_v56 = vpop.f32.mrf.mxu0  ;;  %vm1678_vm0 = vcmp.eq.s32.totalorder %v5289_v39, %v5981_v52  ;;  %vm2257_vm4 = vcmp.eq.s32.totalorder %v5289_v39, %v6003_v57 }
 0x168   :  { %vm2327_vm9 = vmor %vm2292_vm7, %vm2311_vm3  ;;  %1026 = vmatmul.f32.gmra.mxu0 %v4772_v44  ;;  %vm2310_vm7 = vcmp.eq.s32.totalorder %v5289_v39, %v6016_v60 }
 0x169   :  { %4473 = vmatpush.msk.msra.mxu3 %vm2327_vm9, %v8382_v24  ;;  %vm1894_vm12 = vmor %vm1860_vm5, %vm1878_vm6  ;;  %v6434_v61 = vpop.f32.mrf.mxu3  ;;  %v430_v11 = vpop.f32.mrf.mxu1  ;;  %vm2275_vm5 = vcmp.eq.s32.totalorder %v5289_v39, %v6005_v58  ;;  %vm1859_vm9 = vcmp.eq.s32.totalorder %v5289_v39, %v6025_v62 }
 0x16a   :  { %vm1929_vm14 = vmor %vm1894_vm12, %vm1913_vm8  ;;  %v629_v17 = vpop.f32.mrf.mxu2  ;;  %v456_v55 = vmax.f32 %v6390_v23, %v430_v11  ;;  %v4773_v23 = vld [vmem:[#allocation5 + $0x60] sm:$0xff]  ;;  %vm1912_vm12 = vcmp.eq.s32.totalorder %v5289_v39, %v6038_v0 }
 0x16b   :  { %4409 = vmatpush.msk.msra.mxu1 %vm1929_vm14, %v8382_v24  ;;  %vm2092_vm1 = vmor %vm2058_vm10, %vm2076_vm11  ;;  %vm1877_vm10 = vcmp.eq.s32.totalorder %v5289_v39, %v6027_v63  ;;  %vm2057_vm14 = vcmp.eq.s32.totalorder %v5320_v40, %v5960_v45 }
 0x16c   :  { %vm2127_vm3 = vmor %vm2092_vm1, %vm2111_vm13  ;;  %1225 = vmatmul.f32.gmra.mxu1 %v4772_v44  ;;  %v6455_v15 = vmax.f32 %v456_v55, %v629_v17  ;;  %vm2110_vm1 = vcmp.eq.s32.totalorder %v5320_v40, %v5970_v48 }
 0x16d   :  { %4442 = vmatpush.msk.msra.mxu2 %vm2127_vm3, %v8382_v24  ;;  %vm1694_vm6 = vmor %vm1660_vm15, %vm1678_vm0  ;;  %vm2075_vm15 = vcmp.eq.s32.totalorder %v5320_v40, %v5962_v46  ;;  %vm1659_vm3 = vcmp.eq.s32.totalorder %v5320_v40, %v5979_v51 }
 0x16e   :  { %1623 = vmatmul.f32.gmra.mxu3 %v4772_v44  ;;  %vm1729_vm8 = vmor %vm1694_vm6, %vm1713_vm2  ;;  %1427 = vmatmul.f32.gmra.mxu2 %v4773_v23  ;;  %vm1712_vm6 = vcmp.eq.s32.totalorder %v5320_v40, %v5992_v54 }
 0x16f   :  { %4378 = vmatpush.msk.msra.mxu0 %vm1729_vm8, %v8382_v24  ;;  %vm2291_vm11 = vmor %vm2257_vm4, %vm2275_vm5  ;;  %v6464_v11 = vpop.f32.mrf.mxu0  ;;  %vm1677_vm4 = vcmp.eq.s32.totalorder %v5320_v40, %v5981_v52  ;;  %vm2256_vm8 = vcmp.eq.s32.totalorder %v5320_v40, %v6003_v57 }
 0x170   :  { %vm2326_vm13 = vmor %vm2291_vm11, %vm2310_vm7  ;;  %1029 = vmatmul.f32.gmra.mxu0 %v4773_v23  ;;  %vm2309_vm11 = vcmp.eq.s32.totalorder %v5320_v40, %v6016_v60 }
 0x171   :  { %4474 = vmatpush.msk.msra.mxu3 %vm2326_vm13, %v8382_v24  ;;  %vm1893_vm0 = vmor %vm1859_vm9, %vm1877_vm10  ;;  %v6471_v55 = vpop.f32.mrf.mxu3  ;;  %v433_v17 = vpop.f32.mrf.mxu1  ;;  %vm2274_vm9 = vcmp.eq.s32.totalorder %v5320_v40, %v6005_v58  ;;  %vm1858_vm13 = vcmp.eq.s32.totalorder %v5320_v40, %v6025_v62 }
 0x172   :  { %vm1928_vm2 = vmor %vm1893_vm0, %vm1912_vm12  ;;  %v632_v22 = vpop.f32.mrf.mxu2  ;;  %v457_v9 = vmax.f32 %v6427_v56, %v433_v17  ;;  %v4774_v56 = vld [vmem:[#allocation5 + $0x68] sm:$0xff]  ;;  %vm1911_vm0 = vcmp.eq.s32.totalorder %v5320_v40, %v6038_v0  ;;  %v6548_v17 = vld [vmem:[#allocation2 + $0x8] ss:$0 sm:$0xff] }
 0x173   :  { %4410 = vmatpush.msk.msra.mxu1 %vm1928_vm2, %v8382_v24  ;;  %vm2091_vm5 = vmor %vm2057_vm14, %vm2075_vm15  ;;  %vm1876_vm14 = vcmp.eq.s32.totalorder %v5320_v40, %v6027_v63  ;;  %vm2056_vm2 = vcmp.eq.s32.totalorder %v5351_v41, %v5960_v45 }
 0x174   :  { %vm2126_vm7 = vmor %vm2091_vm5, %vm2110_vm1  ;;  %1228 = vmatmul.f32.gmra.mxu1 %v4773_v23  ;;  %v6492_v44 = vmax.f32 %v457_v9, %v632_v22  ;;  %vm2109_vm5 = vcmp.eq.s32.totalorder %v5351_v41, %v5970_v48 }
 0x175   :  { %4443 = vmatpush.msk.msra.mxu2 %vm2126_vm7, %v8382_v24  ;;  %vm1693_vm10 = vmor %vm1659_vm3, %vm1677_vm4  ;;  %vm2074_vm3 = vcmp.eq.s32.totalorder %v5351_v41, %v5962_v46  ;;  %vm1658_vm7 = vcmp.eq.s32.totalorder %v5351_v41, %v5979_v51 }
 0x176   :  { %1626 = vmatmul.f32.gmra.mxu3 %v4773_v23  ;;  %vm1728_vm12 = vmor %vm1693_vm10, %vm1712_vm6  ;;  %8404 = vst [vmem:[#allocation15_spill] sm:$0xff] %v6492_v44  ;;  %1430 = vmatmul.f32.gmra.mxu2 %v4774_v56  ;;  %vm1711_vm10 = vcmp.eq.s32.totalorder %v5351_v41, %v5992_v54  ;;  %v8410_v44 = vmov 1.0  }
 0x177   :  { %4379 = vmatpush.msk.msra.mxu0 %vm1728_vm12, %v8382_v24  ;;  %vm2290_vm15 = vmor %vm2256_vm8, %vm2274_vm9  ;;  %v6505_v9 = vpop.f32.mrf.mxu0  ;;  %vm1676_vm8 = vcmp.eq.s32.totalorder %v5351_v41, %v5981_v52  ;;  %vm2255_vm12 = vcmp.eq.s32.totalorder %v5351_v41, %v6003_v57 }
 0x178   :  { %vm2325_vm1 = vmor %vm2290_vm15, %vm2309_vm11  ;;  %1032 = vmatmul.f32.gmra.mxu0 %v4774_v56  ;;  %vm2308_vm15 = vcmp.eq.s32.totalorder %v5351_v41, %v6016_v60 }
 0x179   :  { %4475 = vmatpush.msk.msra.mxu3 %vm2325_vm1, %v8382_v24  ;;  %vm1892_vm4 = vmor %vm1858_vm13, %vm1876_vm14  ;;  %v6508_v22 = vpop.f32.mrf.mxu3  ;;  %v436_v23 = vpop.f32.mrf.mxu1  ;;  %vm2273_vm13 = vcmp.eq.s32.totalorder %v5351_v41, %v6005_v58  ;;  %vm1857_vm1 = vcmp.eq.s32.totalorder %v5351_v41, %v6025_v62 }
 0x17a   :  { %8405 = vst [vmem:[#allocation16_spill] sm:$0xff] %v6508_v22  ;;  %vm1927_vm6 = vmor %vm1892_vm4, %vm1911_vm0  ;;  %v635_v45 = vpop.f32.mrf.mxu2  ;;  %v458_v53 = vmax.f32 %v6464_v11, %v436_v23  ;;  %v4775_v11 = vld [vmem:[#allocation5 + $0x70] sm:$0xff]  ;;  %vm1910_vm4 = vcmp.eq.s32.totalorder %v5351_v41, %v6038_v0  ;;  %v3099_v22 = vld [vmem:[#allocation2 + $0x11] sm:$0x1] }
 0x17b   :  { %4411 = vmatpush.msk.msra.mxu1 %vm1927_vm6, %v8382_v24  ;;  %vm2090_vm9 = vmor %vm2056_vm2, %vm2074_vm3  ;;  %vm1875_vm2 = vcmp.eq.s32.totalorder %v5351_v41, %v6027_v63 }
 0x17c   :  { %vm2125_vm11 = vmor %vm2090_vm9, %vm2109_vm5  ;;  %1231 = vmatmul.f32.gmra.mxu1 %v4774_v56  ;;  %v6529_v51 = vmax.f32 %v458_v53, %v635_v45  ;;  %vm2108_vm9 = vcmp.eq.s32.totalorder %v5382_v42, %v5970_v48  ;;  %v6565_v45 = vld [vmem:[#allocation2 + $0xf] sm:$0x1] }
 0x17d   :  { %4444 = vmatpush.msk.msra.mxu2 %vm2125_vm11, %v8382_v24  ;;  %vm1692_vm14 = vmor %vm1658_vm7, %vm1676_vm8  ;;  %vm2073_vm7 = vcmp.eq.s32.totalorder %v5382_v42, %v5962_v46  ;;  %vm1657_vm11 = vcmp.eq.s32.totalorder %v5382_v42, %v6548_v17 }
 0x17e   :  { %1629 = vmatmul.f32.gmra.mxu3 %v4774_v56  ;;  %vm1727_vm0 = vmor %vm1692_vm14, %vm1711_vm10  ;;  %8406 = vst [vmem:[#allocation17_spill] sm:$0xff] %v6529_v51  ;;  %1433 = vmatmul.f32.gmra.mxu2 %v4775_v11  ;;  %v4776_v56 = vld [vmem:[#allocation2 + $0xa] ss:$0 sm:$0xff]  ;;  %vm1710_vm14 = vcmp.eq.s32.totalorder %v5382_v42, %v5992_v54  ;;  %v4780_v51 = vld [vmem:[#allocation2 + $0xb] ss:$0 sm:$0xff] }
 0x17f   :  { %4380 = vmatpush.msk.msra.mxu0 %vm1727_vm0, %v8382_v24  ;;  %vm2289_vm3 = vmor %vm2255_vm12, %vm2273_vm13  ;;  %vm2055_vm6 = vcmp.eq.s32.totalorder %v5382_v42, %v4776_v56  ;;  %vm1675_vm12 = vcmp.eq.s32.totalorder %v5382_v42, %v5981_v52  ;;  %v259_v18 = vpop.f32.mrf.mxu0  ;;  %vm2254_vm0 = vcmp.eq.s32.totalorder %v5382_v42, %v6003_v57 }
 0x180   :  { %vm2324_vm5 = vmor %vm2289_vm3, %vm2308_vm15  ;;  %1035 = vmatmul.f32.gmra.mxu0 %v4775_v11  ;;  %vm2307_vm3 = vcmp.eq.s32.totalorder %v5382_v42, %v6016_v60 }
 0x181   :  { %4476 = vmatpush.msk.msra.mxu3 %vm2324_vm5, %v8382_v24  ;;  %vm1891_vm8 = vmor %vm1857_vm1, %vm1875_vm2  ;;  %v6542_v53 = vpop.f32.mrf.mxu3  ;;  %v439_v23 = vpop.f32.mrf.mxu1  ;;  %vm2272_vm1 = vcmp.eq.s32.totalorder %v5382_v42, %v6005_v58  ;;  %vm1856_vm5 = vcmp.eq.s32.totalorder %v5382_v42, %v6025_v62 }
 0x182   :  { %8407 = vst [vmem:[#allocation18_spill] sm:$0xff] %v6542_v53  ;;  %vm1926_vm10 = vmor %vm1891_vm8, %vm1910_vm4  ;;  %v638_v27 = vpop.f32.mrf.mxu2  ;;  %v459_v10 = vmax.f32 %v6505_v9, %v439_v23  ;;  %v4778_v9 = vld [vmem:[#allocation5 + $0x78] sm:$0xff]  ;;  %vm1909_vm8 = vcmp.eq.s32.totalorder %v5382_v42, %v6038_v0 }
 0x183   :  { %4412 = vmatpush.msk.msra.mxu1 %vm1926_vm10, %v8382_v24  ;;  %vm2089_vm13 = vmor %vm2055_vm6, %vm2073_vm7  ;;  %vm1874_vm6 = vcmp.eq.s32.totalorder %v5382_v42, %v6027_v63  ;;  %v2900_v23 = vld [vmem:[#allocation2 + $0x10] sm:$0x1]  ;;  %vm2054_vm10 = vcmp.eq.s32.totalorder %v4938_v1, %v4776_v56 }
 0x184   :  { %vm2124_vm15 = vmor %vm2089_vm13, %vm2108_vm9  ;;  %1234 = vmatmul.f32.gmra.mxu1 %v4775_v11  ;;  %v6567_v41 = vmax.f32 %v459_v10, %v638_v27  ;;  %v2502_v10 = vld [vmem:[#allocation2 + $0xe] sm:$0x1]  ;;  %v2866_v27 = vadd.s32 41, %v6565_v45  ;;  %vm2107_vm13 = vcmp.eq.s32.totalorder %v4938_v1, %v5970_v48  ;;  %v2901_v53 = vadd.s32 82, %v2900_v23  ;;  %v4781_v48 = vld [vmem:[#allocation2 + $0x9] ss:$0 sm:$0xff] }
 0x185   :  { %4445 = vmatpush.msk.msra.mxu2 %vm2124_vm15, %v8382_v24  ;;  %vm1691_vm2 = vmor %vm1657_vm11, %vm1675_vm12  ;;  %vm2072_vm11 = vcmp.eq.s32.totalorder %v4938_v1, %v5962_v46  ;;  %v6613_v46 = vld [vmem:[#allocation2 + $0xe] ss:$0 sm:$0xff] }
 0x186   :  { %1632 = vmatmul.f32.gmra.mxu3 %v4775_v11  ;;  %vm1726_vm4 = vmor %vm1691_vm2, %vm1710_vm14  ;;  %8408 = vst [vmem:[#allocation19_spill] sm:$0xff] %v6567_v41  ;;  %1436 = vmatmul.f32.gmra.mxu2 %v4778_v9  ;;  %vm1656_vm14 = vcmp.eq.s32.totalorder %v4938_v1, %v6548_v17  ;;  %vm1709_vm2 = vcmp.eq.s32.totalorder %v4938_v1, %v5992_v54  ;;  %v6615_v56 = vperm.slane %v2866_v27, 0  ;;  %v6629_v27 = vld [vmem:[#allocation2 + $0xc] ss:$0 sm:$0xff] }
 0x187   :  { %4381 = vmatpush.msk.msra.mxu0 %vm1726_vm4, %v8382_v24  ;;  %vm2288_vm7 = vmor %vm2254_vm0, %vm2272_vm1  ;;  %vm1674_vm0 = vcmp.eq.s32.totalorder %v4938_v1, %v5981_v52  ;;  %v8411_v52 = vmax.f32 %v6048_v4, %v6064_v7  ;;  %v2702_v4 = vadd.s32 82, %v6565_v45 }
 0x188   :  { %vm2323_vm9 = vmor %vm2288_vm7, %vm2307_vm3  ;;  %1038 = vmatmul.f32.gmra.mxu0 %v4778_v9  ;;  %vm2253_vm3 = vcmp.eq.s32.totalorder %v4938_v1, %v4780_v51  ;;  %vm2306_vm7 = vcmp.eq.s32.totalorder %v4938_v1, %v6016_v60 }
 0x189   :  { %4477 = vmatpush.msk.msra.mxu3 %vm2323_vm9, %v8382_v24  ;;  %vm1890_vm12 = vmor %vm1856_vm5, %vm1874_vm6  ;;  %v6587_v57 = vpop.f32.mrf.mxu3  ;;  %v442_v11 = vpop.f32.mrf.mxu1  ;;  %v4779_v24 = vld [vmem:[#allocation2 + $0xd] sm:$0x1]  ;;  %vm2271_vm5 = vcmp.eq.s32.totalorder %v4938_v1, %v6005_v58 }
 0x18a   :  { %8409 = vst [vmem:[#allocation20_spill] sm:$0xff] %v6587_v57  ;;  %vm1925_vm15 = vmor %vm1890_vm12, %vm1909_vm8  ;;  %v460_v40 = vmax.f32 %v259_v18, %v442_v11  ;;  %v641_v62 = vpop.f32.mrf.mxu2  ;;  %v2468_v42 = vadd.s32 41, %v4779_v24  ;;  %v2503_v18 = vadd.s32 82, %v2502_v10  ;;  %v3065_v11 = vadd.s32 41, %v2900_v23  ;;  %v4782_v57 = vld [vmem:[#allocation5] sm:$0xff] }
 0x18b   :  { %4413 = vmatpush.msk.msra.mxu1 %vm1925_vm15, %v8410_v44  ;;  %vm2088_vm1 = vmor %vm2054_vm10, %vm2072_vm11  ;;  %vm1855_vm8 = vcmp.eq.s32.totalorder %v4938_v1, %v4781_v48  ;;  %v3100_v23 = vadd.s32 82, %v3099_v22  ;;  %vm1873_vm10 = vcmp.eq.s32.totalorder %v4938_v1, %v6027_v63  ;;  %vm1908_vm12 = vcmp.eq.s32.totalorder %v4938_v1, %v6038_v0  ;;  %v7280_v63 = vld [vmem:[#allocation2 + $0x13] sm:$0x1] }
 0x18c   :  { %vm2123_vm4 = vmor %vm2088_vm1, %vm2107_vm13  ;;  %1237 = vmatmul.f32.gmra.mxu1 %v4778_v9  ;;  %v6611_v24 = vmax.f32 %v460_v40, %v641_v62  ;;  %v6627_v62 = vperm.slane %v2901_v53, 0  ;;  %v6639_v41 = vperm.slane %v2468_v42, 0  ;;  %v2667_v53 = vadd.s32 41, %v2502_v10  ;;  %v6659_v42 = vld [vmem:[#allocation2 + $0xf] ss:$0 sm:$0xff] }
 0x18d   :  { %4446 = vmatpush.msk.msra.mxu2 %vm2123_vm4, %v8410_v44  ;;  %vm1690_vm6 = vmor %vm1656_vm14, %vm1674_vm0  ;;  %v994_v40 = vpop.f32.mrf.mxu0  ;;  %v6649_v54 = vperm.slane %v2503_v18, 0  ;;  %vm2865_vm14 = vcmp.eq.s32.totalorder %v4941_v2, %v6613_v46  ;;  %vm2883_vm15 = vcmp.eq.s32.totalorder %v4941_v2, %v6615_v56  ;;  %v6661_v58 = vperm.slane %v3065_v11, 0 }
 0x18e   :  { %1635 = vmatmul.f32.gmra.mxu3 %v4778_v9  ;;  %vm1725_vm9 = vmor %vm1690_vm6, %vm1709_vm2  ;;  %v1042_v17 = vmax.f32 %v8411_v52, %v994_v40  ;;  %2187 = vmatmul.f32.vlgmr.msra.gmra.mxu2 %v4782_v57  ;;  %vm2918_vm1 = vcmp.eq.s32.totalorder %v4941_v2, %v6627_v62  ;;  %vm2467_vm2 = vcmp.eq.s32.totalorder %v4941_v2, %v6629_v27  ;;  %v6675_v22 = vperm.slane %v3100_v23, 0  ;;  %v6684_v9 = vld [vmem:[#allocation2 + $0xd] ss:$0 sm:$0xff]  ;;  %v4783_v23 = vld [vmem:[#allocation5 + $0x8] sm:$0xff] }
 0x18f   :  { %4382 = vmatpush.msk.msra.mxu0 %vm1725_vm9, %v8410_v44  ;;  %vm2287_vm11 = vmor %vm2253_vm3, %vm2271_vm5  ;;  %vm2485_vm4 = vcmp.eq.s32.totalorder %v4941_v2, %v6639_v41  ;;  %v6686_v10 = vperm.slane %v2667_v53, 0  ;;  %vm2520_vm6 = vcmp.eq.s32.totalorder %v4941_v2, %v6649_v54  ;;  %v6697_v0 = vperm.slane %v2702_v4, 0 }
 0x190   :  { %vm2322_vm13 = vmor %vm2287_vm11, %vm2306_vm7  ;;  %1789 = vmatmul.f32.vlgmr.msra.gmra.mxu0 %v4782_v57  ;;  %vm3082_vm9 = vcmp.eq.s32.totalorder %v4941_v2, %v6661_v58  ;;  %vm3117_vm11 = vcmp.eq.s32.totalorder %v4941_v2, %v6675_v22  ;;  %v8412_v48 = vmax.f32 %v6085_v13, %v6101_v16 }
 0x191   :  { %4478 = vmatpush.msk.msra.mxu3 %vm2322_vm13, %v8410_v44  ;;  %vm1889_vm0 = vmor %vm1855_vm8, %vm1873_vm10  ;;  %v6669_v60 = vpop.f32.mrf.mxu3  ;;  %v1193_v7 = vpop.f32.mrf.mxu1  ;;  %vm3064_vm8 = vcmp.eq.s32.totalorder %v4941_v2, %v6659_v42  ;;  %vm2666_vm13 = vcmp.eq.s32.totalorder %v4941_v2, %v6684_v9 }
 0x192   :  { %vm1924_vm3 = vmor %vm1889_vm0, %vm1908_vm12  ;;  %v1241_v51 = vmax.f32 %v1042_v17, %v1193_v7  ;;  %v1392_v45 = vpop.f32.mrf.mxu2  ;;  %vm2719_vm0 = vcmp.eq.s32.totalorder %v4941_v2, %v6697_v0  ;;  %v8413_v7 = vmax.f32 %v6122_v21, %v6138_v25 }
 0x193   :  { %4414 = vmatpush.msk.msra.mxu1 %vm1924_vm3, %v8410_v44  ;;  %vm2899_vm5 = vmor %vm2865_vm14, %vm2883_vm15  ;;  %vm2684_vm14 = vcmp.eq.s32.totalorder %v4941_v2, %v6686_v10  ;;  %vm2882_vm3 = vcmp.eq.s32.totalorder %v4946_v8, %v6615_v56 }
 0x194   :  { %vm2934_vm7 = vmor %vm2899_vm5, %vm2918_vm1  ;;  %1988 = vmatmul.f32.vlgmr.msra.gmra.mxu1 %v4782_v57  ;;  %v6703_v18 = vmax.f32 %v1241_v51, %v1392_v45  ;;  %vm2917_vm5 = vcmp.eq.s32.totalorder %v4946_v8, %v6627_v62  ;;  %v4784_v45 = vld [vmem:[#allocation5 + $0x10] sm:$0xff] }
 0x195   :  { %4559 = vmatpush.msk.msrb.mxu2 %vm2934_vm7, %v8410_v44  ;;  %vm2501_vm10 = vmor %vm2467_vm2, %vm2485_vm4  ;;  %v997_v11 = vpop.f32.mrf.mxu0  ;;  %vm2864_vm2 = vcmp.eq.s32.totalorder %v4946_v8, %v6613_v46  ;;  %vm2466_vm7 = vcmp.eq.s32.totalorder %v4946_v8, %v6629_v27 }
 0x196   :  { %2386 = vmatmul.f32.vlgmr.msra.gmra.mxu3 %v4782_v57  ;;  %vm2536_vm12 = vmor %vm2501_vm10, %vm2520_vm6  ;;  %v1043_v40 = vmax.f32 %v8412_v48, %v997_v11  ;;  %2190 = vmatmul.f32.gmra.mxu2 %v4783_v23  ;;  %vm2519_vm10 = vcmp.eq.s32.totalorder %v4946_v8, %v6649_v54 }
 0x197   :  { %4495 = vmatpush.msk.msrb.mxu0 %vm2536_vm12, %v8410_v44  ;;  %vm3098_vm15 = vmor %vm3064_vm8, %vm3082_vm9  ;;  %vm2484_vm8 = vcmp.eq.s32.totalorder %v4946_v8, %v6639_v41  ;;  %vm3063_vm12 = vcmp.eq.s32.totalorder %v4946_v8, %v6659_v42 }
 0x198   :  { %vm3133_vm1 = vmor %vm3098_vm15, %vm3117_vm11  ;;  %1792 = vmatmul.f32.gmra.mxu0 %v4783_v23  ;;  %vm3116_vm15 = vcmp.eq.s32.totalorder %v4946_v8, %v6675_v22 }
 0x199   :  { %4591 = vmatpush.msk.msrb.mxu3 %vm3133_vm1, %v8410_v44  ;;  %vm2700_vm4 = vmor %vm2666_vm13, %vm2684_vm14  ;;  %v6729_v13 = vpop.f32.mrf.mxu3  ;;  %v1196_v16 = vpop.f32.mrf.mxu1  ;;  %vm3081_vm13 = vcmp.eq.s32.totalorder %v4946_v8, %v6661_v58  ;;  %vm2665_vm1 = vcmp.eq.s32.totalorder %v4946_v8, %v6684_v9 }
 0x19a   :  { %vm2735_vm6 = vmor %vm2700_vm4, %vm2719_vm0  ;;  %v1242_v52 = vmax.f32 %v1043_v40, %v1196_v16  ;;  %v1395_v17 = vpop.f32.mrf.mxu2  ;;  %vm2718_vm4 = vcmp.eq.s32.totalorder %v4946_v8, %v6697_v0 }
 0x19b   :  { %4527 = vmatpush.msk.msrb.mxu1 %vm2735_vm6, %v8410_v44  ;;  %vm2898_vm9 = vmor %vm2864_vm2, %vm2882_vm3  ;;  %vm2683_vm2 = vcmp.eq.s32.totalorder %v4946_v8, %v6686_v10  ;;  %vm2863_vm6 = vcmp.eq.s32.totalorder %v5010_v30, %v6613_v46 }
 0x19c   :  { %vm2933_vm11 = vmor %vm2898_vm9, %vm2917_vm5  ;;  %1991 = vmatmul.f32.gmra.mxu1 %v4783_v23  ;;  %v6746_v53 = vmax.f32 %v1242_v52, %v1395_v17  ;;  %vm2916_vm9 = vcmp.eq.s32.totalorder %v5010_v30, %v6627_v62  ;;  %v8414_v52 = vmax.f32 %v6159_v43, %v6175_v49 }
 0x19d   :  { %4560 = vmatpush.msk.msrb.mxu2 %vm2933_vm11, %v8410_v44  ;;  %vm2500_vm14 = vmor %vm2466_vm7, %vm2484_vm8  ;;  %v1000_v4 = vpop.f32.mrf.mxu0  ;;  %vm2881_vm7 = vcmp.eq.s32.totalorder %v5010_v30, %v6615_v56  ;;  %vm2465_vm11 = vcmp.eq.s32.totalorder %v5010_v30, %v6629_v27 }
 0x19e   :  { %2389 = vmatmul.f32.gmra.mxu3 %v4783_v23  ;;  %vm2535_vm0 = vmor %vm2500_vm14, %vm2519_vm10  ;;  %v1044_v51 = vmax.f32 %v8413_v7, %v1000_v4  ;;  %2193 = vmatmul.f32.gmra.mxu2 %v4784_v45  ;;  %vm2518_vm14 = vcmp.eq.s32.totalorder %v5010_v30, %v6649_v54  ;;  %v4785_v4 = vld [vmem:[#allocation5 + $0x18] sm:$0xff] }
 0x19f   :  { %4496 = vmatpush.msk.msrb.mxu0 %vm2535_vm0, %v8410_v44  ;;  %vm3097_vm3 = vmor %vm3063_vm12, %vm3081_vm13  ;;  %vm2483_vm12 = vcmp.eq.s32.totalorder %v5010_v30, %v6639_v41  ;;  %vm3062_vm0 = vcmp.eq.s32.totalorder %v5010_v30, %v6659_v42 }
 0x1a0   :  { %vm3132_vm5 = vmor %vm3097_vm3, %vm3116_vm15  ;;  %1795 = vmatmul.f32.gmra.mxu0 %v4784_v45  ;;  %vm3115_vm3 = vcmp.eq.s32.totalorder %v5010_v30, %v6675_v22 }
 0x1a1   :  { %4592 = vmatpush.msk.msrb.mxu3 %vm3132_vm5, %v8410_v44  ;;  %vm2699_vm8 = vmor %vm2665_vm1, %vm2683_vm2  ;;  %v6769_v21 = vpop.f32.mrf.mxu3  ;;  %v1199_v25 = vpop.f32.mrf.mxu1  ;;  %vm3080_vm1 = vcmp.eq.s32.totalorder %v5010_v30, %v6661_v58  ;;  %vm2664_vm5 = vcmp.eq.s32.totalorder %v5010_v30, %v6684_v9 }
 0x1a2   :  { %vm2734_vm10 = vmor %vm2699_vm8, %vm2718_vm4  ;;  %v1243_v48 = vmax.f32 %v1044_v51, %v1199_v25  ;;  %v1398_v40 = vpop.f32.mrf.mxu2  ;;  %vm2717_vm8 = vcmp.eq.s32.totalorder %v5010_v30, %v6697_v0 }
 0x1a3   :  { %4528 = vmatpush.msk.msrb.mxu1 %vm2734_vm10, %v8410_v44  ;;  %vm2897_vm13 = vmor %vm2863_vm6, %vm2881_vm7  ;;  %vm2682_vm6 = vcmp.eq.s32.totalorder %v5010_v30, %v6686_v10  ;;  %vm2862_vm10 = vcmp.eq.s32.totalorder %v5041_v31, %v6613_v46 }
 0x1a4   :  { %vm2932_vm15 = vmor %vm2897_vm13, %vm2916_vm9  ;;  %1994 = vmatmul.f32.gmra.mxu1 %v4784_v45  ;;  %v6786_v23 = vmax.f32 %v1243_v48, %v1398_v40  ;;  %vm2915_vm13 = vcmp.eq.s32.totalorder %v5041_v31, %v6627_v62  ;;  %v8415_v40 = vmax.f32 %v6196_v59, %v6212_v5 }
 0x1a5   :  { %4561 = vmatpush.msk.msrb.mxu2 %vm2932_vm15, %v8410_v44  ;;  %vm2499_vm2 = vmor %vm2465_vm11, %vm2483_vm12  ;;  %v1003_v16 = vpop.f32.mrf.mxu0  ;;  %vm2880_vm11 = vcmp.eq.s32.totalorder %v5041_v31, %v6615_v56  ;;  %vm2464_vm15 = vcmp.eq.s32.totalorder %v5041_v31, %v6629_v27 }
 0x1a6   :  { %2392 = vmatmul.f32.gmra.mxu3 %v4784_v45  ;;  %vm2534_vm4 = vmor %vm2499_vm2, %vm2518_vm14  ;;  %v1045_v17 = vmax.f32 %v8414_v52, %v1003_v16  ;;  %2196 = vmatmul.f32.gmra.mxu2 %v4785_v4  ;;  %vm2517_vm2 = vcmp.eq.s32.totalorder %v5041_v31, %v6649_v54  ;;  %v4786_v52 = vld [vmem:[#allocation5 + $0x20] sm:$0xff] }
 0x1a7   :  { %4497 = vmatpush.msk.msrb.mxu0 %vm2534_vm4, %v8410_v44  ;;  %vm3096_vm7 = vmor %vm3062_vm0, %vm3080_vm1  ;;  %vm2482_vm0 = vcmp.eq.s32.totalorder %v5041_v31, %v6639_v41  ;;  %vm3061_vm4 = vcmp.eq.s32.totalorder %v5041_v31, %v6659_v42 }
 0x1a8   :  { %vm3131_vm9 = vmor %vm3096_vm7, %vm3115_vm3  ;;  %1798 = vmatmul.f32.gmra.mxu0 %v4785_v4  ;;  %vm3114_vm7 = vcmp.eq.s32.totalorder %v5041_v31, %v6675_v22 }
 0x1a9   :  { %4593 = vmatpush.msk.msrb.mxu3 %vm3131_vm9, %v8410_v44  ;;  %vm2698_vm12 = vmor %vm2664_vm5, %vm2682_vm6  ;;  %v6809_v43 = vpop.f32.mrf.mxu3  ;;  %v1202_v49 = vpop.f32.mrf.mxu1  ;;  %vm3079_vm5 = vcmp.eq.s32.totalorder %v5041_v31, %v6661_v58  ;;  %vm2663_vm9 = vcmp.eq.s32.totalorder %v5041_v31, %v6684_v9 }
 0x1aa   :  { %vm2733_vm14 = vmor %vm2698_vm12, %vm2717_vm8  ;;  %v1244_v51 = vmax.f32 %v1045_v17, %v1202_v49  ;;  %v1401_v45 = vpop.f32.mrf.mxu2  ;;  %vm2716_vm12 = vcmp.eq.s32.totalorder %v5041_v31, %v6697_v0  ;;  %v8430_v17 = vld [vmem:[#allocation18_spill] sm:$0xff] }
 0x1ab   :  { %4529 = vmatpush.msk.msrb.mxu1 %vm2733_vm14, %v8410_v44  ;;  %vm2896_vm1 = vmor %vm2862_vm10, %vm2880_vm11  ;;  %vm2681_vm10 = vcmp.eq.s32.totalorder %v5041_v31, %v6686_v10  ;;  %vm2861_vm14 = vcmp.eq.s32.totalorder %v5072_v32, %v6613_v46 }
 0x1ac   :  { %vm2931_vm3 = vmor %vm2896_vm1, %vm2915_vm13  ;;  %1997 = vmatmul.f32.gmra.mxu1 %v4785_v4  ;;  %v6826_v25 = vmax.f32 %v1244_v51, %v1401_v45  ;;  %vm2914_vm1 = vcmp.eq.s32.totalorder %v5072_v32, %v6627_v62 }
 0x1ad   :  { %4562 = vmatpush.msk.msrb.mxu2 %vm2931_vm3, %v8410_v44  ;;  %vm2498_vm6 = vmor %vm2464_vm15, %vm2482_vm0  ;;  %v1006_v48 = vpop.f32.mrf.mxu0  ;;  %vm2879_vm15 = vcmp.eq.s32.totalorder %v5072_v32, %v6615_v56  ;;  %vm2463_vm3 = vcmp.eq.s32.totalorder %v5072_v32, %v6629_v27 }
 0x1ae   :  { %2395 = vmatmul.f32.gmra.mxu3 %v4785_v4  ;;  %vm2533_vm8 = vmor %vm2498_vm6, %vm2517_vm2  ;;  %v1046_v16 = vmax.f32 %v8415_v40, %v1006_v48  ;;  %2199 = vmatmul.f32.gmra.mxu2 %v4786_v52  ;;  %vm2516_vm6 = vcmp.eq.s32.totalorder %v5072_v32, %v6649_v54  ;;  %v8416_v48 = vmax.f32 %v6233_v14, %v6249_v19 }
 0x1af   :  { %4498 = vmatpush.msk.msrb.mxu0 %vm2533_vm8, %v8410_v44  ;;  %vm3095_vm11 = vmor %vm3061_vm4, %vm3079_vm5  ;;  %vm2481_vm4 = vcmp.eq.s32.totalorder %v5072_v32, %v6639_v41  ;;  %vm3060_vm8 = vcmp.eq.s32.totalorder %v5072_v32, %v6659_v42 }
 0x1b0   :  { %vm3130_vm13 = vmor %vm3095_vm11, %vm3114_vm7  ;;  %1801 = vmatmul.f32.gmra.mxu0 %v4786_v52  ;;  %vm3113_vm11 = vcmp.eq.s32.totalorder %v5072_v32, %v6675_v22 }
 0x1b1   :  { %4594 = vmatpush.msk.msrb.mxu3 %vm3130_vm13, %v8410_v44  ;;  %vm2697_vm0 = vmor %vm2663_vm9, %vm2681_vm10  ;;  %v6849_v59 = vpop.f32.mrf.mxu3  ;;  %v1205_v5 = vpop.f32.mrf.mxu1  ;;  %vm3078_vm9 = vcmp.eq.s32.totalorder %v5072_v32, %v6661_v58  ;;  %vm2662_vm13 = vcmp.eq.s32.totalorder %v5072_v32, %v6684_v9 }
 0x1b2   :  { %vm2732_vm2 = vmor %vm2697_vm0, %vm2716_vm12  ;;  %v1245_v4 = vmax.f32 %v1046_v16, %v1205_v5  ;;  %v1404_v49 = vpop.f32.mrf.mxu2  ;;  %v4787_v16 = vld [vmem:[#allocation5 + $0x28] sm:$0xff]  ;;  %vm2715_vm0 = vcmp.eq.s32.totalorder %v5072_v32, %v6697_v0 }
 0x1b3   :  { %4530 = vmatpush.msk.msrb.mxu1 %vm2732_vm2, %v8410_v44  ;;  %vm2895_vm5 = vmor %vm2861_vm14, %vm2879_vm15  ;;  %vm2680_vm14 = vcmp.eq.s32.totalorder %v5072_v32, %v6686_v10  ;;  %vm2860_vm2 = vcmp.eq.s32.totalorder %v5103_v33, %v6613_v46 }
 0x1b4   :  { %vm2930_vm7 = vmor %vm2895_vm5, %vm2914_vm1  ;;  %2000 = vmatmul.f32.gmra.mxu1 %v4786_v52  ;;  %v6866_v51 = vmax.f32 %v1245_v4, %v1404_v49  ;;  %vm2913_vm5 = vcmp.eq.s32.totalorder %v5103_v33, %v6627_v62 }
 0x1b5   :  { %4563 = vmatpush.msk.msrb.mxu2 %vm2930_vm7, %v8410_v44  ;;  %vm2497_vm10 = vmor %vm2463_vm3, %vm2481_vm4  ;;  %v1009_v45 = vpop.f32.mrf.mxu0  ;;  %vm2878_vm3 = vcmp.eq.s32.totalorder %v5103_v33, %v6615_v56  ;;  %vm2462_vm7 = vcmp.eq.s32.totalorder %v5103_v33, %v6629_v27 }
 0x1b6   :  { %2398 = vmatmul.f32.gmra.mxu3 %v4786_v52  ;;  %vm2532_vm12 = vmor %vm2497_vm10, %vm2516_vm6  ;;  %v1047_v40 = vmax.f32 %v8416_v48, %v1009_v45  ;;  %2202 = vmatmul.f32.gmra.mxu2 %v4787_v16  ;;  %vm2515_vm10 = vcmp.eq.s32.totalorder %v5103_v33, %v6649_v54  ;;  %v8417_v48 = vmax.f32 %v6270_v28, %v6286_v47 }
 0x1b7   :  { %4499 = vmatpush.msk.msrb.mxu0 %vm2532_vm12, %v8410_v44  ;;  %vm3094_vm15 = vmor %vm3060_vm8, %vm3078_vm9  ;;  %vm2480_vm8 = vcmp.eq.s32.totalorder %v5103_v33, %v6639_v41  ;;  %vm3059_vm12 = vcmp.eq.s32.totalorder %v5103_v33, %v6659_v42 }
 0x1b8   :  { %vm3129_vm1 = vmor %vm3094_vm15, %vm3113_vm11  ;;  %1804 = vmatmul.f32.gmra.mxu0 %v4787_v16  ;;  %vm3112_vm15 = vcmp.eq.s32.totalorder %v5103_v33, %v6675_v22 }
 0x1b9   :  { %4595 = vmatpush.msk.msrb.mxu3 %vm3129_vm1, %v8410_v44  ;;  %vm2696_vm4 = vmor %vm2662_vm13, %vm2680_vm14  ;;  %v6889_v14 = vpop.f32.mrf.mxu3  ;;  %v1208_v19 = vpop.f32.mrf.mxu1  ;;  %vm3077_vm13 = vcmp.eq.s32.totalorder %v5103_v33, %v6661_v58  ;;  %vm2661_vm1 = vcmp.eq.s32.totalorder %v5103_v33, %v6684_v9 }
 0x1ba   :  { %vm2731_vm6 = vmor %vm2696_vm4, %vm2715_vm0  ;;  %v1246_v5 = vmax.f32 %v1047_v40, %v1208_v19  ;;  %v1407_v4 = vpop.f32.mrf.mxu2  ;;  %v4788_v19 = vld [vmem:[#allocation5 + $0x30] sm:$0xff]  ;;  %vm2714_vm4 = vcmp.eq.s32.totalorder %v5103_v33, %v6697_v0 }
 0x1bb   :  { %4531 = vmatpush.msk.msrb.mxu1 %vm2731_vm6, %v8410_v44  ;;  %vm2894_vm9 = vmor %vm2860_vm2, %vm2878_vm3  ;;  %vm2679_vm2 = vcmp.eq.s32.totalorder %v5103_v33, %v6686_v10  ;;  %vm2859_vm6 = vcmp.eq.s32.totalorder %v5134_v34, %v6613_v46 }
 0x1bc   :  { %vm2929_vm11 = vmor %vm2894_vm9, %vm2913_vm5  ;;  %2003 = vmatmul.f32.gmra.mxu1 %v4787_v16  ;;  %v6906_v49 = vmax.f32 %v1246_v5, %v1407_v4  ;;  %vm2912_vm9 = vcmp.eq.s32.totalorder %v5134_v34, %v6627_v62 }
 0x1bd   :  { %4564 = vmatpush.msk.msrb.mxu2 %vm2929_vm11, %v8410_v44  ;;  %vm2496_vm14 = vmor %vm2462_vm7, %vm2480_vm8  ;;  %v1012_v45 = vpop.f32.mrf.mxu0  ;;  %vm2877_vm7 = vcmp.eq.s32.totalorder %v5134_v34, %v6615_v56  ;;  %vm2461_vm11 = vcmp.eq.s32.totalorder %v5134_v34, %v6629_v27 }
 0x1be   :  { %2401 = vmatmul.f32.gmra.mxu3 %v4787_v16  ;;  %vm2531_vm0 = vmor %vm2496_vm14, %vm2515_vm10  ;;  %v1048_v40 = vmax.f32 %v8417_v48, %v1012_v45  ;;  %2205 = vmatmul.f32.gmra.mxu2 %v4788_v19  ;;  %vm2514_vm14 = vcmp.eq.s32.totalorder %v5134_v34, %v6649_v54 }
 0x1bf   :  { %4500 = vmatpush.msk.msrb.mxu0 %vm2531_vm0, %v8410_v44  ;;  %vm3093_vm3 = vmor %vm3059_vm12, %vm3077_vm13  ;;  %vm2479_vm12 = vcmp.eq.s32.totalorder %v5134_v34, %v6639_v41  ;;  %vm3058_vm0 = vcmp.eq.s32.totalorder %v5134_v34, %v6659_v42 }
 0x1c0   :  { %vm3128_vm5 = vmor %vm3093_vm3, %vm3112_vm15  ;;  %1807 = vmatmul.f32.gmra.mxu0 %v4788_v19  ;;  %vm3111_vm3 = vcmp.eq.s32.totalorder %v5134_v34, %v6675_v22 }
 0x1c1   :  { %4596 = vmatpush.msk.msrb.mxu3 %vm3128_vm5, %v8410_v44  ;;  %vm2695_vm8 = vmor %vm2661_vm1, %vm2679_vm2  ;;  %v6929_v28 = vpop.f32.mrf.mxu3  ;;  %v1211_v47 = vpop.f32.mrf.mxu1  ;;  %vm3076_vm1 = vcmp.eq.s32.totalorder %v5134_v34, %v6661_v58  ;;  %vm2660_vm5 = vcmp.eq.s32.totalorder %v5134_v34, %v6684_v9 }
 0x1c2   :  { %vm2730_vm10 = vmor %vm2695_vm8, %vm2714_vm4  ;;  %v1247_v5 = vmax.f32 %v1048_v40, %v1211_v47  ;;  %v1410_v4 = vpop.f32.mrf.mxu2  ;;  %v8418_v40 = vmax.f32 %v6307_v3, %v6323_v12  ;;  %vm2713_vm8 = vcmp.eq.s32.totalorder %v5134_v34, %v6697_v0 }
 0x1c3   :  { %4532 = vmatpush.msk.msrb.mxu1 %vm2730_vm10, %v8410_v44  ;;  %vm2893_vm13 = vmor %vm2859_vm6, %vm2877_vm7  ;;  %vm2678_vm6 = vcmp.eq.s32.totalorder %v5134_v34, %v6686_v10  ;;  %vm2858_vm10 = vcmp.eq.s32.totalorder %v5165_v35, %v6613_v46 }
 0x1c4   :  { %vm2928_vm15 = vmor %vm2893_vm13, %vm2912_vm9  ;;  %2006 = vmatmul.f32.gmra.mxu1 %v4788_v19  ;;  %v6946_v45 = vmax.f32 %v1247_v5, %v1410_v4  ;;  %v4789_v5 = vld [vmem:[#allocation5 + $0x38] sm:$0xff]  ;;  %vm2911_vm13 = vcmp.eq.s32.totalorder %v5165_v35, %v6627_v62 }
 0x1c5   :  { %4565 = vmatpush.msk.msrb.mxu2 %vm2928_vm15, %v8410_v44  ;;  %vm2495_vm2 = vmor %vm2461_vm11, %vm2479_vm12  ;;  %v1015_v48 = vpop.f32.mrf.mxu0  ;;  %vm2876_vm11 = vcmp.eq.s32.totalorder %v5165_v35, %v6615_v56  ;;  %vm2460_vm15 = vcmp.eq.s32.totalorder %v5165_v35, %v6629_v27 }
 0x1c6   :  { %2404 = vmatmul.f32.gmra.mxu3 %v4788_v19  ;;  %vm2530_vm4 = vmor %vm2495_vm2, %vm2514_vm14  ;;  %v1049_v47 = vmax.f32 %v8418_v40, %v1015_v48  ;;  %2208 = vmatmul.f32.gmra.mxu2 %v4789_v5  ;;  %vm2513_vm2 = vcmp.eq.s32.totalorder %v5165_v35, %v6649_v54  ;;  %v8424_v19 = vld [vmem:[#allocation16_spill] sm:$0xff] }
 0x1c7   :  { %4501 = vmatpush.msk.msrb.mxu0 %vm2530_vm4, %v8410_v44  ;;  %vm3092_vm7 = vmor %vm3058_vm0, %vm3076_vm1  ;;  %vm2478_vm0 = vcmp.eq.s32.totalorder %v5165_v35, %v6639_v41  ;;  %vm3057_vm4 = vcmp.eq.s32.totalorder %v5165_v35, %v6659_v42 }
 0x1c8   :  { %vm3127_vm9 = vmor %vm3092_vm7, %vm3111_vm3  ;;  %1810 = vmatmul.f32.gmra.mxu0 %v4789_v5  ;;  %vm3110_vm7 = vcmp.eq.s32.totalorder %v5165_v35, %v6675_v22 }
 0x1c9   :  { %4597 = vmatpush.msk.msrb.mxu3 %vm3127_vm9, %v8410_v44  ;;  %vm2694_vm12 = vmor %vm2660_vm5, %vm2678_vm6  ;;  %v6969_v3 = vpop.f32.mrf.mxu3  ;;  %v1214_v12 = vpop.f32.mrf.mxu1  ;;  %vm3075_vm5 = vcmp.eq.s32.totalorder %v5165_v35, %v6661_v58  ;;  %vm2659_vm9 = vcmp.eq.s32.totalorder %v5165_v35, %v6684_v9 }
 0x1ca   :  { %vm2729_vm14 = vmor %vm2694_vm12, %vm2713_vm8  ;;  %v1248_v4 = vmax.f32 %v1049_v47, %v1214_v12  ;;  %v1413_v48 = vpop.f32.mrf.mxu2  ;;  %v8419_v12 = vmax.f32 %v6344_v26, %v6360_v50  ;;  %vm2712_vm12 = vcmp.eq.s32.totalorder %v5165_v35, %v6697_v0 }
 0x1cb   :  { %4533 = vmatpush.msk.msrb.mxu1 %vm2729_vm14, %v8410_v44  ;;  %vm2892_vm1 = vmor %vm2858_vm10, %vm2876_vm11  ;;  %vm2677_vm10 = vcmp.eq.s32.totalorder %v5165_v35, %v6686_v10  ;;  %vm2857_vm14 = vcmp.eq.s32.totalorder %v5196_v36, %v6613_v46 }
 0x1cc   :  { %vm2927_vm3 = vmor %vm2892_vm1, %vm2911_vm13  ;;  %2009 = vmatmul.f32.gmra.mxu1 %v4789_v5  ;;  %v6986_v40 = vmax.f32 %v1248_v4, %v1413_v48  ;;  %v4790_v48 = vld [vmem:[#allocation5 + $0x40] sm:$0xff]  ;;  %vm2910_vm1 = vcmp.eq.s32.totalorder %v5196_v36, %v6627_v62 }
 0x1cd   :  { %4566 = vmatpush.msk.msrb.mxu2 %vm2927_vm3, %v8410_v44  ;;  %vm2494_vm6 = vmor %vm2460_vm15, %vm2478_vm0  ;;  %v1018_v47 = vpop.f32.mrf.mxu0  ;;  %vm2875_vm15 = vcmp.eq.s32.totalorder %v5196_v36, %v6615_v56  ;;  %vm2459_vm3 = vcmp.eq.s32.totalorder %v5196_v36, %v6629_v27 }
 0x1ce   :  { %2407 = vmatmul.f32.gmra.mxu3 %v4789_v5  ;;  %vm2529_vm8 = vmor %vm2494_vm6, %vm2513_vm2  ;;  %v1050_v4 = vmax.f32 %v8419_v12, %v1018_v47  ;;  %2211 = vmatmul.f32.gmra.mxu2 %v4790_v48  ;;  %vm2512_vm6 = vcmp.eq.s32.totalorder %v5196_v36, %v6649_v54  ;;  %v8420_v5 = vmax.f32 %v6381_v20, %v6397_v29 }
 0x1cf   :  { %4502 = vmatpush.msk.msrb.mxu0 %vm2529_vm8, %v8410_v44  ;;  %vm3091_vm11 = vmor %vm3057_vm4, %vm3075_vm5  ;;  %vm2477_vm4 = vcmp.eq.s32.totalorder %v5196_v36, %v6639_v41  ;;  %vm3056_vm8 = vcmp.eq.s32.totalorder %v5196_v36, %v6659_v42 }
 0x1d0   :  { %vm3126_vm13 = vmor %vm3091_vm11, %vm3110_vm7  ;;  %1813 = vmatmul.f32.gmra.mxu0 %v4790_v48  ;;  %vm3109_vm11 = vcmp.eq.s32.totalorder %v5196_v36, %v6675_v22 }
 0x1d1   :  { %4598 = vmatpush.msk.msrb.mxu3 %vm3126_vm13, %v8410_v44  ;;  %vm2693_vm0 = vmor %vm2659_vm9, %vm2677_vm10  ;;  %v7009_v26 = vpop.f32.mrf.mxu3  ;;  %v1217_v50 = vpop.f32.mrf.mxu1  ;;  %vm3074_vm9 = vcmp.eq.s32.totalorder %v5196_v36, %v6661_v58  ;;  %vm2658_vm13 = vcmp.eq.s32.totalorder %v5196_v36, %v6684_v9 }
 0x1d2   :  { %vm2728_vm2 = vmor %vm2693_vm0, %vm2712_vm12  ;;  %v1249_v47 = vmax.f32 %v1050_v4, %v1217_v50  ;;  %v1416_v12 = vpop.f32.mrf.mxu2  ;;  %vm2711_vm0 = vcmp.eq.s32.totalorder %v5196_v36, %v6697_v0 }
 0x1d3   :  { %4534 = vmatpush.msk.msrb.mxu1 %vm2728_vm2, %v8410_v44  ;;  %vm2891_vm5 = vmor %vm2857_vm14, %vm2875_vm15  ;;  %vm2676_vm14 = vcmp.eq.s32.totalorder %v5196_v36, %v6686_v10  ;;  %vm2856_vm2 = vcmp.eq.s32.totalorder %v5227_v37, %v6613_v46 }
 0x1d4   :  { %vm2926_vm7 = vmor %vm2891_vm5, %vm2910_vm1  ;;  %2012 = vmatmul.f32.gmra.mxu1 %v4790_v48  ;;  %v7026_v4 = vmax.f32 %v1249_v47, %v1416_v12  ;;  %v4791_v12 = vld [vmem:[#allocation5 + $0x48] sm:$0xff]  ;;  %vm2909_vm5 = vcmp.eq.s32.totalorder %v5227_v37, %v6627_v62 }
 0x1d5   :  { %4567 = vmatpush.msk.msrb.mxu2 %vm2926_vm7, %v8410_v44  ;;  %vm2493_vm10 = vmor %vm2459_vm3, %vm2477_vm4  ;;  %v1021_v50 = vpop.f32.mrf.mxu0  ;;  %vm2874_vm3 = vcmp.eq.s32.totalorder %v5227_v37, %v6615_v56  ;;  %vm2458_vm7 = vcmp.eq.s32.totalorder %v5227_v37, %v6629_v27 }
 0x1d6   :  { %2410 = vmatmul.f32.gmra.mxu3 %v4790_v48  ;;  %vm2528_vm12 = vmor %vm2493_vm10, %vm2512_vm6  ;;  %v1051_v47 = vmax.f32 %v8420_v5, %v1021_v50  ;;  %2214 = vmatmul.f32.gmra.mxu2 %v4791_v12  ;;  %vm2511_vm10 = vcmp.eq.s32.totalorder %v5227_v37, %v6649_v54  ;;  %v8421_v48 = vmax.f32 %v6418_v6, %v6434_v61 }
 0x1d7   :  { %4503 = vmatpush.msk.msrb.mxu0 %vm2528_vm12, %v8410_v44  ;;  %vm3090_vm15 = vmor %vm3056_vm8, %vm3074_vm9  ;;  %vm2476_vm8 = vcmp.eq.s32.totalorder %v5227_v37, %v6639_v41  ;;  %vm3055_vm12 = vcmp.eq.s32.totalorder %v5227_v37, %v6659_v42 }
 0x1d8   :  { %vm3125_vm1 = vmor %vm3090_vm15, %vm3109_vm11  ;;  %1816 = vmatmul.f32.gmra.mxu0 %v4791_v12  ;;  %vm3108_vm15 = vcmp.eq.s32.totalorder %v5227_v37, %v6675_v22 }
 0x1d9   :  { %4599 = vmatpush.msk.msrb.mxu3 %vm3125_vm1, %v8410_v44  ;;  %vm2692_vm4 = vmor %vm2658_vm13, %vm2676_vm14  ;;  %v7049_v20 = vpop.f32.mrf.mxu3  ;;  %v1220_v29 = vpop.f32.mrf.mxu1  ;;  %vm3073_vm13 = vcmp.eq.s32.totalorder %v5227_v37, %v6661_v58  ;;  %vm2657_vm1 = vcmp.eq.s32.totalorder %v5227_v37, %v6684_v9 }
 0x1da   :  { %vm2727_vm6 = vmor %vm2692_vm4, %vm2711_vm0  ;;  %v1250_v5 = vmax.f32 %v1051_v47, %v1220_v29  ;;  %v1419_v50 = vpop.f32.mrf.mxu2  ;;  %vm2710_vm4 = vcmp.eq.s32.totalorder %v5227_v37, %v6697_v0 }
 0x1db   :  { %4535 = vmatpush.msk.msrb.mxu1 %vm2727_vm6, %v8410_v44  ;;  %vm2890_vm9 = vmor %vm2856_vm2, %vm2874_vm3  ;;  %vm2675_vm2 = vcmp.eq.s32.totalorder %v5227_v37, %v6686_v10  ;;  %vm2855_vm6 = vcmp.eq.s32.totalorder %v5258_v38, %v6613_v46 }
 0x1dc   :  { %vm2925_vm11 = vmor %vm2890_vm9, %vm2909_vm5  ;;  %2015 = vmatmul.f32.gmra.mxu1 %v4791_v12  ;;  %v7066_v47 = vmax.f32 %v1250_v5, %v1419_v50  ;;  %v4792_v50 = vld [vmem:[#allocation5 + $0x50] sm:$0xff]  ;;  %vm2908_vm9 = vcmp.eq.s32.totalorder %v5258_v38, %v6627_v62 }
 0x1dd   :  { %4568 = vmatpush.msk.msrb.mxu2 %vm2925_vm11, %v8410_v44  ;;  %vm2492_vm14 = vmor %vm2458_vm7, %vm2476_vm8  ;;  %v1024_v29 = vpop.f32.mrf.mxu0  ;;  %vm2873_vm7 = vcmp.eq.s32.totalorder %v5258_v38, %v6615_v56  ;;  %vm2457_vm11 = vcmp.eq.s32.totalorder %v5258_v38, %v6629_v27 }
 0x1de   :  { %2413 = vmatmul.f32.gmra.mxu3 %v4791_v12  ;;  %vm2527_vm0 = vmor %vm2492_vm14, %vm2511_vm10  ;;  %v1052_v5 = vmax.f32 %v8421_v48, %v1024_v29  ;;  %2217 = vmatmul.f32.gmra.mxu2 %v4792_v50  ;;  %vm2510_vm14 = vcmp.eq.s32.totalorder %v5258_v38, %v6649_v54  ;;  %v8422_v12 = vmax.f32 %v6455_v15, %v6471_v55 }
 0x1df   :  { %4504 = vmatpush.msk.msrb.mxu0 %vm2527_vm0, %v8410_v44  ;;  %vm3089_vm3 = vmor %vm3055_vm12, %vm3073_vm13  ;;  %vm2475_vm12 = vcmp.eq.s32.totalorder %v5258_v38, %v6639_v41  ;;  %vm3054_vm0 = vcmp.eq.s32.totalorder %v5258_v38, %v6659_v42 }
 0x1e0   :  { %vm3124_vm5 = vmor %vm3089_vm3, %vm3108_vm15  ;;  %1819 = vmatmul.f32.gmra.mxu0 %v4792_v50  ;;  %vm3107_vm3 = vcmp.eq.s32.totalorder %v5258_v38, %v6675_v22 }
 0x1e1   :  { %4600 = vmatpush.msk.msrb.mxu3 %vm3124_vm5, %v8410_v44  ;;  %vm2691_vm8 = vmor %vm2657_vm1, %vm2675_vm2  ;;  %v7089_v6 = vpop.f32.mrf.mxu3  ;;  %v1223_v61 = vpop.f32.mrf.mxu1  ;;  %vm3072_vm1 = vcmp.eq.s32.totalorder %v5258_v38, %v6661_v58  ;;  %vm2656_vm5 = vcmp.eq.s32.totalorder %v5258_v38, %v6684_v9 }
 0x1e2   :  { %vm2726_vm10 = vmor %vm2691_vm8, %vm2710_vm4  ;;  %v1251_v48 = vmax.f32 %v1052_v5, %v1223_v61  ;;  %v1422_v29 = vpop.f32.mrf.mxu2  ;;  %vm2709_vm8 = vcmp.eq.s32.totalorder %v5258_v38, %v6697_v0 }
 0x1e3   :  { %4536 = vmatpush.msk.msrb.mxu1 %vm2726_vm10, %v8410_v44  ;;  %vm2889_vm13 = vmor %vm2855_vm6, %vm2873_vm7  ;;  %vm2674_vm6 = vcmp.eq.s32.totalorder %v5258_v38, %v6686_v10  ;;  %vm2854_vm10 = vcmp.eq.s32.totalorder %v5289_v39, %v6613_v46 }
 0x1e4   :  { %vm2924_vm15 = vmor %vm2889_vm13, %vm2908_vm9  ;;  %2018 = vmatmul.f32.gmra.mxu1 %v4792_v50  ;;  %v7106_v5 = vmax.f32 %v1251_v48, %v1422_v29  ;;  %v4793_v29 = vld [vmem:[#allocation5 + $0x58] sm:$0xff]  ;;  %vm2907_vm13 = vcmp.eq.s32.totalorder %v5289_v39, %v6627_v62 }
 0x1e5   :  { %4569 = vmatpush.msk.msrb.mxu2 %vm2924_vm15, %v8410_v44  ;;  %vm2491_vm2 = vmor %vm2457_vm11, %vm2475_vm12  ;;  %v1027_v61 = vpop.f32.mrf.mxu0  ;;  %vm2872_vm11 = vcmp.eq.s32.totalorder %v5289_v39, %v6615_v56  ;;  %vm2456_vm15 = vcmp.eq.s32.totalorder %v5289_v39, %v6629_v27 }
 0x1e6   :  { %2416 = vmatmul.f32.gmra.mxu3 %v4792_v50  ;;  %vm2526_vm4 = vmor %vm2491_vm2, %vm2510_vm14  ;;  %v1053_v48 = vmax.f32 %v8422_v12, %v1027_v61  ;;  %2220 = vmatmul.f32.gmra.mxu2 %v4793_v29  ;;  %vm2509_vm2 = vcmp.eq.s32.totalorder %v5289_v39, %v6649_v54  ;;  %v8423_v50 = vld [vmem:[#allocation15_spill] sm:$0xff] }
 0x1e7   :  { %4505 = vmatpush.msk.msrb.mxu0 %vm2526_vm4, %v8410_v44  ;;  %vm3088_vm7 = vmor %vm3054_vm0, %vm3072_vm1  ;;  %vm2474_vm0 = vcmp.eq.s32.totalorder %v5289_v39, %v6639_v41  ;;  %vm3053_vm4 = vcmp.eq.s32.totalorder %v5289_v39, %v6659_v42  ;;  %v8425_v16 = vmax.f32 %v8423_v50, %v8424_v19  ;;  %v8429_v50 = vld [vmem:[#allocation17_spill] sm:$0xff] }
 0x1e8   :  { %vm3123_vm9 = vmor %vm3088_vm7, %vm3107_vm3  ;;  %1822 = vmatmul.f32.gmra.mxu0 %v4793_v29  ;;  %vm3106_vm7 = vcmp.eq.s32.totalorder %v5289_v39, %v6675_v22  ;;  %v8431_v7 = vmax.f32 %v8429_v50, %v8430_v17  ;;  %v8436_v50 = vld [vmem:[#allocation20_spill] sm:$0xff] }
 0x1e9   :  { %4601 = vmatpush.msk.msrb.mxu3 %vm3123_vm9, %v8410_v44  ;;  %vm2690_vm12 = vmor %vm2656_vm5, %vm2674_vm6  ;;  %v7129_v15 = vpop.f32.mrf.mxu3  ;;  %v1226_v55 = vpop.f32.mrf.mxu1  ;;  %vm3071_vm5 = vcmp.eq.s32.totalorder %v5289_v39, %v6661_v58  ;;  %vm2655_vm9 = vcmp.eq.s32.totalorder %v5289_v39, %v6684_v9 }
 0x1ea   :  { %vm2725_vm14 = vmor %vm2690_vm12, %vm2709_vm8  ;;  %v1252_v12 = vmax.f32 %v1053_v48, %v1226_v55  ;;  %v1425_v61 = vpop.f32.mrf.mxu2  ;;  %vm2708_vm12 = vcmp.eq.s32.totalorder %v5289_v39, %v6697_v0 }
 0x1eb   :  { %4537 = vmatpush.msk.msrb.mxu1 %vm2725_vm14, %v8410_v44  ;;  %vm2888_vm1 = vmor %vm2854_vm10, %vm2872_vm11  ;;  %vm2673_vm10 = vcmp.eq.s32.totalorder %v5289_v39, %v6686_v10 }
 0x1ec   :  { %vm2923_vm3 = vmor %vm2888_vm1, %vm2907_vm13  ;;  %2021 = vmatmul.f32.gmra.mxu1 %v4793_v29  ;;  %v7146_v48 = vmax.f32 %v1252_v12, %v1425_v61  ;;  %v4794_v61 = vld [vmem:[#allocation5 + $0x60] sm:$0xff] }
 0x1ed   :  { %4570 = vmatpush.msk.msrb.mxu2 %vm2923_vm3, %v8410_v44  ;;  %vm2490_vm6 = vmor %vm2456_vm15, %vm2474_vm0  ;;  %v1030_v55 = vpop.f32.mrf.mxu0 }
 0x1ee   :  { %2419 = vmatmul.f32.gmra.mxu3 %v4793_v29  ;;  %vm2525_vm8 = vmor %vm2490_vm6, %vm2509_vm2  ;;  %v1054_v12 = vmax.f32 %v8425_v16, %v1030_v55  ;;  %2223 = vmatmul.f32.gmra.mxu2 %v4794_v61  ;;  %v8426_v29 = vld [vmem:[#allocation12_spill] sm:$0xff] }
 0x1ef   :  { %4506 = vmatpush.msk.msrb.mxu0 %vm2525_vm8, %v8410_v44  ;;  %vm3087_vm11 = vmor %vm3053_vm4, %vm3071_vm5  ;;  %vm2853_vm14 = vcmp.eq.s32.totalorder %v8426_v29, %v6613_v46  ;;  %vm2871_vm15 = vcmp.eq.s32.totalorder %v8426_v29, %v6615_v56  ;;  %vm2906_vm1 = vcmp.eq.s32.totalorder %v8426_v29, %v6627_v62  ;;  %vm2455_vm3 = vcmp.eq.s32.totalorder %v8426_v29, %v6629_v27 }
 0x1f0   :  { %vm3122_vm13 = vmor %vm3087_vm11, %vm3106_vm7  ;;  %1825 = vmatmul.f32.gmra.mxu0 %v4794_v61  ;;  %vm2473_vm4 = vcmp.eq.s32.totalorder %v8426_v29, %v6639_v41  ;;  %vm2508_vm6 = vcmp.eq.s32.totalorder %v8426_v29, %v6649_v54  ;;  %vm3052_vm8 = vcmp.eq.s32.totalorder %v8426_v29, %v6659_v42  ;;  %vm3105_vm11 = vcmp.eq.s32.totalorder %v8426_v29, %v6675_v22 }
 0x1f1   :  { %4602 = vmatpush.msk.msrb.mxu3 %vm3122_vm13, %v8410_v44  ;;  %vm2689_vm0 = vmor %vm2655_vm9, %vm2673_vm10  ;;  %v7169_v16 = vpop.f32.mrf.mxu3  ;;  %v1229_v19 = vpop.f32.mrf.mxu1  ;;  %vm3070_vm9 = vcmp.eq.s32.totalorder %v8426_v29, %v6661_v58  ;;  %vm2654_vm13 = vcmp.eq.s32.totalorder %v8426_v29, %v6684_v9 }
 0x1f2   :  { %8427 = vst [vmem:[#allocation15_spill] sm:$0xff] %v7169_v16  ;;  %vm2724_vm2 = vmor %vm2689_vm0, %vm2708_vm12  ;;  %v1253_v55 = vmax.f32 %v1054_v12, %v1229_v19  ;;  %v1428_v52 = vpop.f32.mrf.mxu2  ;;  %vm2707_vm0 = vcmp.eq.s32.totalorder %v8426_v29, %v6697_v0  ;;  %v3895_v16 = vld [vmem:[#allocation2 + $0x15] sm:$0x1] }
 0x1f3   :  { %4538 = vmatpush.msk.msrb.mxu1 %vm2724_vm2, %v8410_v44  ;;  %vm2887_vm5 = vmor %vm2853_vm14, %vm2871_vm15  ;;  %vm2672_vm14 = vcmp.eq.s32.totalorder %v8426_v29, %v6686_v10 }
 0x1f4   :  { %vm2922_vm7 = vmor %vm2887_vm5, %vm2906_vm1  ;;  %2024 = vmatmul.f32.gmra.mxu1 %v4794_v61  ;;  %v7186_v12 = vmax.f32 %v1253_v55, %v1428_v52  ;;  %v4795_v55 = vld [vmem:[#allocation5 + $0x68] sm:$0xff] }
 0x1f5   :  { %4571 = vmatpush.msk.msrb.mxu2 %vm2922_vm7, %v8410_v44  ;;  %vm2489_vm10 = vmor %vm2455_vm3, %vm2473_vm4  ;;  %v1033_v19 = vpop.f32.mrf.mxu0 }
 0x1f6   :  { %8428 = vst [vmem:[#allocation16_spill] sm:$0xff] %v7186_v12  ;;  %2422 = vmatmul.f32.gmra.mxu3 %v4794_v61  ;;  %vm2524_vm12 = vmor %vm2489_vm10, %vm2508_vm6  ;;  %v1055_v52 = vmax.f32 %v8431_v7, %v1033_v19  ;;  %2226 = vmatmul.f32.gmra.mxu2 %v4795_v55  ;;  %v8432_v61 = vld [vmem:[#allocation13_spill] sm:$0xff]  ;;  %v4802_v12 = vld [vmem:[#allocation2 + $0x11] sm:$0x1] }
 0x1f7   :  { %4507 = vmatpush.msk.msrb.mxu0 %vm2524_vm12, %v8410_v44  ;;  %vm3086_vm15 = vmor %vm3052_vm8, %vm3070_vm9  ;;  %vm2852_vm2 = vcmp.eq.s32.totalorder %v8432_v61, %v6613_v46  ;;  %vm2870_vm3 = vcmp.eq.s32.totalorder %v8432_v61, %v6615_v56  ;;  %vm2905_vm5 = vcmp.eq.s32.totalorder %v8432_v61, %v6627_v62  ;;  %vm2454_vm7 = vcmp.eq.s32.totalorder %v8432_v61, %v6629_v27 }
 0x1f8   :  { %vm3121_vm1 = vmor %vm3086_vm15, %vm3105_vm11  ;;  %1828 = vmatmul.f32.gmra.mxu0 %v4795_v55  ;;  %vm2472_vm8 = vcmp.eq.s32.totalorder %v8432_v61, %v6639_v41  ;;  %vm2507_vm10 = vcmp.eq.s32.totalorder %v8432_v61, %v6649_v54  ;;  %vm3051_vm12 = vcmp.eq.s32.totalorder %v8432_v61, %v6659_v42  ;;  %vm3104_vm15 = vcmp.eq.s32.totalorder %v8432_v61, %v6675_v22 }
 0x1f9   :  { %4603 = vmatpush.msk.msrb.mxu3 %vm3121_vm1, %v8410_v44  ;;  %vm2688_vm4 = vmor %vm2654_vm13, %vm2672_vm14  ;;  %v7209_v7 = vpop.f32.mrf.mxu3  ;;  %v1232_v17 = vpop.f32.mrf.mxu1  ;;  %vm3069_vm13 = vcmp.eq.s32.totalorder %v8432_v61, %v6661_v58  ;;  %vm2653_vm1 = vcmp.eq.s32.totalorder %v8432_v61, %v6684_v9  ;;  %v7244_v9 = vld [vmem:[#allocation2 + $0xe] ss:$0 sm:$0xff]  ;;  %v3264_v39 = vadd.s32 41, %v4802_v12  ;;  %v7343_v12 = vld [vmem:[#allocation2 + $0x12] ss:$0 sm:$0xff] }
 0x1fa   :  { %8433 = vst [vmem:[#allocation17_spill] sm:$0xff] %v7209_v7  ;;  %vm2723_vm6 = vmor %vm2688_vm4, %vm2707_vm0  ;;  %v1254_v19 = vmax.f32 %v1055_v52, %v1232_v17  ;;  %v1431_v46 = vpop.f32.mrf.mxu2  ;;  %v8435_v17 = vld [vmem:[#allocation19_spill] sm:$0xff]  ;;  %vm2706_vm4 = vcmp.eq.s32.totalorder %v8432_v61, %v6697_v0 }
 0x1fb   :  { %4539 = vmatpush.msk.msrb.mxu1 %vm2723_vm6, %v8410_v44  ;;  %vm2886_vm9 = vmor %vm2852_vm2, %vm2870_vm3  ;;  %vm2671_vm2 = vcmp.eq.s32.totalorder %v8432_v61, %v6686_v10  ;;  %v8437_v11 = vmax.f32 %v8435_v17, %v8436_v50  ;;  %v7257_v17 = vld [vmem:[#allocation2 + $0xc] ss:$0 sm:$0xff]  ;;  %v7282_v61 = vld [vmem:[#allocation2 + $0xd] ss:$0 sm:$0xff]  ;;  %v7370_v29 = vperm.slane %v3264_v39, 0 }
 0x1fc   :  { %vm2921_vm11 = vmor %vm2886_vm9, %vm2905_vm5  ;;  %2027 = vmatmul.f32.gmra.mxu1 %v4795_v55  ;;  %v7226_v52 = vmax.f32 %v1254_v19, %v1431_v46  ;;  %v4796_v46 = vld [vmem:[#allocation5 + $0x70] sm:$0xff]  ;;  %v7391_v39 = vld [vmem:[#allocation2 + $0x13] ss:$0 sm:$0xff] }
 0x1fd   :  { %4572 = vmatpush.msk.msrb.mxu2 %vm2921_vm11, %v8410_v44  ;;  %vm2488_vm14 = vmor %vm2454_vm7, %vm2472_vm8  ;;  %v1036_v27 = vpop.f32.mrf.mxu0 }
 0x1fe   :  { %8434 = vst [vmem:[#allocation18_spill] sm:$0xff] %v7226_v52  ;;  %2425 = vmatmul.f32.gmra.mxu3 %v4795_v55  ;;  %vm2523_vm0 = vmor %vm2488_vm14, %vm2507_vm10  ;;  %v1056_v19 = vmax.f32 %v8437_v11, %v1036_v27  ;;  %2229 = vmatmul.f32.gmra.mxu2 %v4796_v46  ;;  %v8438_v55 = vld [vmem:[#allocation14_spill] sm:$0xff] }
 0x1ff   :  { %4508 = vmatpush.msk.msrb.mxu0 %vm2523_vm0, %v8410_v44  ;;  %vm3085_vm3 = vmor %vm3051_vm12, %vm3069_vm13  ;;  %vm2851_vm6 = vcmp.eq.s32.totalorder %v8438_v55, %v7244_v9  ;;  %vm2869_vm7 = vcmp.eq.s32.totalorder %v8438_v55, %v6615_v56  ;;  %vm2904_vm9 = vcmp.eq.s32.totalorder %v8438_v55, %v6627_v62  ;;  %vm2453_vm11 = vcmp.eq.s32.totalorder %v8438_v55, %v7257_v17  ;;  %v3696_v52 = vld [vmem:[#allocation2 + $0x14] sm:$0x1] }
 0x200   :  { %vm3120_vm5 = vmor %vm3085_vm3, %vm3104_vm15  ;;  %1831 = vmatmul.f32.gmra.mxu0 %v4796_v46  ;;  %vm2471_vm12 = vcmp.eq.s32.totalorder %v8438_v55, %v6639_v41  ;;  %vm2506_vm14 = vcmp.eq.s32.totalorder %v8438_v55, %v6649_v54  ;;  %vm3103_vm3 = vcmp.eq.s32.totalorder %v8438_v55, %v6675_v22 }
 0x201   :  { %4604 = vmatpush.msk.msrb.mxu3 %vm3120_vm5, %v8410_v44  ;;  %vm2687_vm8 = vmor %vm2653_vm1, %vm2671_vm2  ;;  %v7251_v11 = vpop.f32.mrf.mxu3  ;;  %v1235_v42 = vpop.f32.mrf.mxu1  ;;  %vm3068_vm1 = vcmp.eq.s32.totalorder %v8438_v55, %v6661_v58  ;;  %vm2652_vm5 = vcmp.eq.s32.totalorder %v8438_v55, %v7282_v61 }
 0x202   :  { %8439 = vst [vmem:[#allocation19_spill] sm:$0xff] %v7251_v11  ;;  %vm2722_vm10 = vmor %vm2687_vm8, %vm2706_vm4  ;;  %v1255_v27 = vmax.f32 %v1056_v19, %v1235_v42  ;;  %v1434_v57 = vpop.f32.mrf.mxu2  ;;  %v7269_v19 = vld [vmem:[#allocation2 + $0xf] ss:$0 sm:$0xff]  ;;  %v4801_v11 = vld [vmem:[#allocation5 + $0x78] sm:$0xff]  ;;  %vm2705_vm8 = vcmp.eq.s32.totalorder %v8438_v55, %v6697_v0 }
 0x203   :  { %4540 = vmatpush.msk.msrb.mxu1 %vm2722_vm10, %v8410_v44  ;;  %vm2885_vm13 = vmor %vm2851_vm6, %vm2869_vm7  ;;  %vm3050_vm0 = vcmp.eq.s32.totalorder %v8438_v55, %v7269_v19  ;;  %vm2670_vm6 = vcmp.eq.s32.totalorder %v8438_v55, %v6686_v10  ;;  %vm2850_vm10 = vcmp.eq.s32.totalorder %v4938_v1, %v7244_v9 }
 0x204   :  { %vm2920_vm15 = vmor %vm2885_vm13, %vm2904_vm9  ;;  %2030 = vmatmul.f32.gmra.mxu1 %v4796_v46  ;;  %v7275_v42 = vmax.f32 %v1255_v27, %v1434_v57  ;;  %v8440_v57 = vmax.f32 %v6611_v24, %v6669_v60  ;;  %v3298_v24 = vld [vmem:[#allocation2 + $0x12] sm:$0x1]  ;;  %v3662_v60 = vadd.s32 41, %v7280_v63  ;;  %vm2903_vm13 = vcmp.eq.s32.totalorder %v4938_v1, %v6627_v62 }
 0x205   :  { %4573 = vmatpush.msk.msrb.mxu2 %vm2920_vm15, %v8410_v44  ;;  %vm2487_vm2 = vmor %vm2453_vm11, %vm2471_vm12  ;;  %v1039_v50 = vpop.f32.mrf.mxu0  ;;  %vm2868_vm11 = vcmp.eq.s32.totalorder %v4938_v1, %v6615_v56 }
 0x206   :  { %2428 = vmatmul.f32.gmra.mxu3 %v4796_v46  ;;  %vm2522_vm4 = vmor %vm2487_vm2, %vm2506_vm14  ;;  %v1057_v27 = vmax.f32 %v8440_v57, %v1039_v50  ;;  %2232 = vmatmul.f32.gmra.mxu2 %v4801_v11  ;;  %vm2452_vm14 = vcmp.eq.s32.totalorder %v4938_v1, %v7257_v17  ;;  %v3697_v57 = vadd.s32 82, %v3696_v52  ;;  %vm2505_vm2 = vcmp.eq.s32.totalorder %v4938_v1, %v6649_v54 }
 0x207   :  { %4509 = vmatpush.msk.msrb.mxu0 %vm2522_vm4, %v8410_v44  ;;  %vm3084_vm7 = vmor %vm3050_vm0, %vm3068_vm1  ;;  %vm2470_vm0 = vcmp.eq.s32.totalorder %v4938_v1, %v6639_v41  ;;  %v7345_v9 = vperm.slane %v3662_v60, 0  ;;  %v8441_v41 = vmax.f32 %v6703_v18, %v6729_v13  ;;  %v4803_v60 = vld [vmem:[#allocation5] sm:$0xff]  ;;  %v3498_v18 = vadd.s32 82, %v7280_v63 }
 0x208   :  { %vm3119_vm9 = vmor %vm3084_vm7, %vm3103_vm3  ;;  %1834 = vmatmul.f32.gmra.mxu0 %v4801_v11  ;;  %vm3049_vm3 = vcmp.eq.s32.totalorder %v4938_v1, %v7269_v19  ;;  %vm3102_vm7 = vcmp.eq.s32.totalorder %v4938_v1, %v6675_v22 }
 0x209   :  { %4605 = vmatpush.msk.msrb.mxu3 %vm3119_vm9, %v8410_v44  ;;  %vm2686_vm12 = vmor %vm2652_vm5, %vm2670_vm6  ;;  %v7315_v46 = vpop.f32.mrf.mxu3  ;;  %v1238_v50 = vpop.f32.mrf.mxu1  ;;  %vm3067_vm5 = vcmp.eq.s32.totalorder %v4938_v1, %v6661_v58 }
 0x20a   :  { %vm2721_vm15 = vmor %vm2686_vm12, %vm2705_vm8  ;;  %v1256_v7 = vmax.f32 %v1057_v27, %v1238_v50  ;;  %v1437_v55 = vpop.f32.mrf.mxu2  ;;  %v3299_v27 = vadd.s32 82, %v3298_v24  ;;  %v3861_v50 = vadd.s32 41, %v3696_v52  ;;  %vm2651_vm8 = vcmp.eq.s32.totalorder %v4938_v1, %v7282_v61 }
 0x20b   :  { %4541 = vmatpush.msk.msrb.mxu1 %vm2721_vm15, %v8410_v44  ;;  %vm2884_vm1 = vmor %vm2850_vm10, %vm2868_vm11  ;;  %v3896_v52 = vadd.s32 82, %v3895_v16  ;;  %vm2669_vm10 = vcmp.eq.s32.totalorder %v4938_v1, %v6686_v10  ;;  %vm2704_vm12 = vcmp.eq.s32.totalorder %v4938_v1, %v6697_v0  ;;  %vm3679_vm15 = vcmp.eq.s32.totalorder %v4941_v2, %v7345_v9 }
 0x20c   :  { %vm2919_vm4 = vmor %vm2884_vm1, %vm2903_vm13  ;;  %2033 = vmatmul.f32.gmra.mxu1 %v4801_v11  ;;  %v7341_v56 = vmax.f32 %v1256_v7, %v1437_v55  ;;  %v7358_v7 = vperm.slane %v3697_v57, 0  ;;  %v7360_v55 = vld [vmem:[#allocation2 + $0x10] ss:$0 sm:$0xff]  ;;  %v3463_v57 = vadd.s32 41, %v3298_v24  ;;  %v7381_v54 = vperm.slane %v3299_v27, 0 }
 0x20d   :  { %4574 = vmatpush.msk.msrb.mxu2 %vm2919_vm4, %v8410_v44  ;;  %vm2486_vm6 = vmor %vm2452_vm14, %vm2470_vm0  ;;  %v1790_v62 = vpop.f32.mrf.mxu0  ;;  %vm3661_vm14 = vcmp.eq.s32.totalorder %v4941_v2, %v7343_v12  ;;  %v7393_v58 = vperm.slane %v3861_v50, 0  ;;  %v7408_v13 = vperm.slane %v3896_v52, 0  ;;  %vm3281_vm4 = vcmp.eq.s32.totalorder %v4941_v2, %v7370_v29  ;;  %v4804_v52 = vld [vmem:[#allocation5 + $0x8] sm:$0xff] }
 0x20e   :  { %2431 = vmatmul.f32.gmra.mxu3 %v4801_v11  ;;  %vm2521_vm9 = vmor %vm2486_vm6, %vm2505_vm2  ;;  %v1838_v17 = vmax.f32 %v8441_v41, %v1790_v62  ;;  %2983 = vmatmul.f32.vlgmr.msrb.gmra.mxu2 %v4803_v60  ;;  %vm3714_vm1 = vcmp.eq.s32.totalorder %v4941_v2, %v7358_v7  ;;  %vm3263_vm2 = vcmp.eq.s32.totalorder %v4941_v2, %v7360_v55  ;;  %v7417_v11 = vld [vmem:[#allocation2 + $0x11] ss:$0 sm:$0xff]  ;;  %v7419_v19 = vperm.slane %v3463_v57, 0 }
 0x20f   :  { %4510 = vmatpush.msk.msrb.mxu0 %vm2521_vm9, %v8410_v44  ;;  %vm3083_vm11 = vmor %vm3049_vm3, %vm3067_vm5  ;;  %vm3316_vm6 = vcmp.eq.s32.totalorder %v4941_v2, %v7381_v54  ;;  %v7430_v0 = vperm.slane %v3498_v18, 0  ;;  %vm3878_vm9 = vcmp.eq.s32.totalorder %v4941_v2, %v7393_v58  ;;  %v8442_v50 = vmax.f32 %v6746_v53, %v6769_v21 }
 0x210   :  { %vm3118_vm13 = vmor %vm3083_vm11, %vm3102_vm7  ;;  %2585 = vmatmul.f32.vlgmr.msrb.gmra.mxu0 %v4803_v60  ;;  %vm3913_vm11 = vcmp.eq.s32.totalorder %v4941_v2, %v7408_v13  ;;  %v8443_v18 = vmax.f32 %v6786_v23, %v6809_v43 }
 0x211   :  { %4606 = vmatpush.msk.msrb.mxu3 %vm3118_vm13, %v8410_v44  ;;  %vm2685_vm0 = vmor %vm2651_vm8, %vm2669_vm10  ;;  %v7402_v22 = vpop.f32.mrf.mxu3  ;;  %v1989_v63 = vpop.f32.mrf.mxu1  ;;  %vm3860_vm8 = vcmp.eq.s32.totalorder %v4941_v2, %v7391_v39  ;;  %vm3462_vm13 = vcmp.eq.s32.totalorder %v4941_v2, %v7417_v11 }
 0x212   :  { %vm2720_vm3 = vmor %vm2685_vm0, %vm2704_vm12  ;;  %v1654_v10 = vmax.f32 %v7341_v56, %v7402_v22  ;;  %v2037_v16 = vmax.f32 %v1838_v17, %v1989_v63  ;;  %v2188_v61 = vpop.f32.mrf.mxu2  ;;  %vm3515_vm0 = vcmp.eq.s32.totalorder %v4941_v2, %v7430_v0 }
 0x213   :  { %4542 = vmatpush.msk.msrb.mxu1 %vm2720_vm3, %v8410_v44  ;;  %vm3695_vm5 = vmor %vm3661_vm14, %vm3679_vm15  ;;  %vm3480_vm14 = vcmp.eq.s32.totalorder %v4941_v2, %v7419_v19  ;;  %vm3678_vm3 = vcmp.eq.s32.totalorder %v4946_v8, %v7345_v9 }
 0x214   :  { %vm3730_vm7 = vmor %vm3695_vm5, %vm3714_vm1  ;;  %2784 = vmatmul.f32.vlgmr.msrb.gmra.mxu1 %v4803_v60  ;;  %v7436_v24 = vmax.f32 %v2037_v16, %v2188_v61  ;;  %vm3713_vm5 = vcmp.eq.s32.totalorder %v4946_v8, %v7358_v7  ;;  %v4805_v16 = vld [vmem:[#allocation5 + $0x10] sm:$0xff] }
 0x215   :  { %4687 = vmatpush.msk.msra.mxu2 %vm3730_vm7, %v8410_v44  ;;  %vm3297_vm10 = vmor %vm3263_vm2, %vm3281_vm4  ;;  %v1793_v27 = vpop.f32.mrf.mxu0  ;;  %vm3660_vm2 = vcmp.eq.s32.totalorder %v4946_v8, %v7343_v12  ;;  %vm3262_vm7 = vcmp.eq.s32.totalorder %v4946_v8, %v7360_v55 }
 0x216   :  { %3182 = vmatmul.f32.vlgmr.msrb.gmra.mxu3 %v4803_v60  ;;  %vm3332_vm12 = vmor %vm3297_vm10, %vm3316_vm6  ;;  %v1839_v62 = vmax.f32 %v8442_v50, %v1793_v27  ;;  %2986 = vmatmul.f32.gmra.mxu2 %v4804_v52  ;;  %vm3315_vm10 = vcmp.eq.s32.totalorder %v4946_v8, %v7381_v54 }
 0x217   :  { %4623 = vmatpush.msk.msra.mxu0 %vm3332_vm12, %v8410_v44  ;;  %vm3894_vm15 = vmor %vm3860_vm8, %vm3878_vm9  ;;  %vm3280_vm8 = vcmp.eq.s32.totalorder %v4946_v8, %v7370_v29  ;;  %vm3859_vm12 = vcmp.eq.s32.totalorder %v4946_v8, %v7391_v39 }
 0x218   :  { %vm3929_vm1 = vmor %vm3894_vm15, %vm3913_vm11  ;;  %2588 = vmatmul.f32.gmra.mxu0 %v4804_v52  ;;  %vm3912_vm15 = vcmp.eq.s32.totalorder %v4946_v8, %v7408_v13 }
 0x219   :  { %4719 = vmatpush.msk.msra.mxu3 %vm3929_vm1, %v8410_v44  ;;  %vm3496_vm4 = vmor %vm3462_vm13, %vm3480_vm14  ;;  %v7462_v53 = vpop.f32.mrf.mxu3  ;;  %v1992_v21 = vpop.f32.mrf.mxu1  ;;  %vm3877_vm13 = vcmp.eq.s32.totalorder %v4946_v8, %v7393_v58  ;;  %vm3461_vm1 = vcmp.eq.s32.totalorder %v4946_v8, %v7417_v11 }
 0x21a   :  { %vm3531_vm6 = vmor %vm3496_vm4, %vm3515_vm0  ;;  %v2435_v2 = vmax.f32 %v7436_v24, %v7462_v53  ;;  %v2038_v41 = vmax.f32 %v1839_v62, %v1992_v21  ;;  %v2191_v17 = vpop.f32.mrf.mxu2  ;;  %vm3514_vm4 = vcmp.eq.s32.totalorder %v4946_v8, %v7430_v0 }
 0x21b   :  { %4655 = vmatpush.msk.msra.mxu1 %vm3531_vm6, %v8410_v44  ;;  %vm3694_vm9 = vmor %vm3660_vm2, %vm3678_vm3  ;;  %vm3479_vm2 = vcmp.eq.s32.totalorder %v4946_v8, %v7419_v19  ;;  %vm3659_vm6 = vcmp.eq.s32.totalorder %v5010_v30, %v7343_v12 }
 0x21c   :  { %vm3729_vm11 = vmor %vm3694_vm9, %vm3713_vm5  ;;  %2787 = vmatmul.f32.gmra.mxu1 %v4804_v52  ;;  %v7479_v60 = vmax.f32 %v2038_v41, %v2191_v17  ;;  %vm3712_vm9 = vcmp.eq.s32.totalorder %v5010_v30, %v7358_v7  ;;  %v4806_v41 = vld [vmem:[#allocation5 + $0x18] sm:$0xff] }
 0x21d   :  { %4688 = vmatpush.msk.msra.mxu2 %vm3729_vm11, %v8410_v44  ;;  %vm3296_vm14 = vmor %vm3262_vm7, %vm3280_vm8  ;;  %v1796_v57 = vpop.f32.mrf.mxu0  ;;  %vm3677_vm7 = vcmp.eq.s32.totalorder %v5010_v30, %v7345_v9  ;;  %vm3261_vm11 = vcmp.eq.s32.totalorder %v5010_v30, %v7360_v55 }
 0x21e   :  { %3185 = vmatmul.f32.gmra.mxu3 %v4804_v52  ;;  %vm3331_vm0 = vmor %vm3296_vm14, %vm3315_vm10  ;;  %v1840_v63 = vmax.f32 %v8443_v18, %v1796_v57  ;;  %2989 = vmatmul.f32.gmra.mxu2 %v4805_v16  ;;  %vm3314_vm14 = vcmp.eq.s32.totalorder %v5010_v30, %v7381_v54  ;;  %v8444_v52 = vmax.f32 %v6826_v25, %v6849_v59 }
 0x21f   :  { %4624 = vmatpush.msk.msra.mxu0 %vm3331_vm0, %v8410_v44  ;;  %vm3893_vm3 = vmor %vm3859_vm12, %vm3877_vm13  ;;  %vm3279_vm12 = vcmp.eq.s32.totalorder %v5010_v30, %v7370_v29  ;;  %vm3858_vm0 = vcmp.eq.s32.totalorder %v5010_v30, %v7391_v39 }
 0x220   :  { %vm3928_vm5 = vmor %vm3893_vm3, %vm3912_vm15  ;;  %2591 = vmatmul.f32.gmra.mxu0 %v4805_v16  ;;  %vm3911_vm3 = vcmp.eq.s32.totalorder %v5010_v30, %v7408_v13 }
 0x221   :  { %4720 = vmatpush.msk.msra.mxu3 %vm3928_vm5, %v8410_v44  ;;  %vm3495_vm8 = vmor %vm3461_vm1, %vm3479_vm2  ;;  %v7502_v23 = vpop.f32.mrf.mxu3  ;;  %v1995_v43 = vpop.f32.mrf.mxu1  ;;  %vm3876_vm1 = vcmp.eq.s32.totalorder %v5010_v30, %v7393_v58  ;;  %vm3460_vm5 = vcmp.eq.s32.totalorder %v5010_v30, %v7417_v11 }
 0x222   :  { %vm3530_vm10 = vmor %vm3495_vm8, %vm3514_vm4  ;;  %v2436_v8 = vmax.f32 %v7479_v60, %v7502_v23  ;;  %v2039_v61 = vmax.f32 %v1840_v63, %v1995_v43  ;;  %v2194_v27 = vpop.f32.mrf.mxu2  ;;  %vm3513_vm8 = vcmp.eq.s32.totalorder %v5010_v30, %v7430_v0  ;;  %v4825_v23 = vld [vmem:[#allocation5 + $0x10] sm:$0xff] }
 0x223   :  { %4656 = vmatpush.msk.msra.mxu1 %vm3530_vm10, %v8410_v44  ;;  %vm3693_vm13 = vmor %vm3659_vm6, %vm3677_vm7  ;;  %vm3478_vm6 = vcmp.eq.s32.totalorder %v5010_v30, %v7419_v19  ;;  %vm3658_vm10 = vcmp.eq.s32.totalorder %v5041_v31, %v7343_v12 }
 0x224   :  { %vm3728_vm15 = vmor %vm3693_vm13, %vm3712_vm9  ;;  %2790 = vmatmul.f32.gmra.mxu1 %v4805_v16  ;;  %v7519_v50 = vmax.f32 %v2039_v61, %v2194_v27  ;;  %vm3711_vm13 = vcmp.eq.s32.totalorder %v5041_v31, %v7358_v7  ;;  %v7571_v61 = vld [vmem:[#allocation5 + $0x20] sm:$0xff] }
 0x225   :  { %4689 = vmatpush.msk.msra.mxu2 %vm3728_vm15, %v8410_v44  ;;  %vm3295_vm2 = vmor %vm3261_vm11, %vm3279_vm12  ;;  %v1799_v62 = vpop.f32.mrf.mxu0  ;;  %vm3676_vm11 = vcmp.eq.s32.totalorder %v5041_v31, %v7345_v9  ;;  %vm3260_vm15 = vcmp.eq.s32.totalorder %v5041_v31, %v7360_v55 }
 0x226   :  { %3188 = vmatmul.f32.gmra.mxu3 %v4805_v16  ;;  %vm3330_vm4 = vmor %vm3295_vm2, %vm3314_vm14  ;;  %v1841_v21 = vmax.f32 %v8444_v52, %v1799_v62  ;;  %2992 = vmatmul.f32.gmra.mxu2 %v4806_v41  ;;  %vm3313_vm2 = vcmp.eq.s32.totalorder %v5041_v31, %v7381_v54  ;;  %v8445_v16 = vmax.f32 %v6866_v51, %v6889_v14 }
 0x227   :  { %4625 = vmatpush.msk.msra.mxu0 %vm3330_vm4, %v8410_v44  ;;  %vm3892_vm7 = vmor %vm3858_vm0, %vm3876_vm1  ;;  %vm3278_vm0 = vcmp.eq.s32.totalorder %v5041_v31, %v7370_v29  ;;  %vm3857_vm4 = vcmp.eq.s32.totalorder %v5041_v31, %v7391_v39 }
 0x228   :  { %vm3927_vm9 = vmor %vm3892_vm7, %vm3911_vm3  ;;  %2594 = vmatmul.f32.gmra.mxu0 %v4806_v41  ;;  %vm3910_vm7 = vcmp.eq.s32.totalorder %v5041_v31, %v7408_v13 }
 0x229   :  { %4721 = vmatpush.msk.msra.mxu3 %vm3927_vm9, %v8410_v44  ;;  %vm3494_vm12 = vmor %vm3460_vm5, %vm3478_vm6  ;;  %v7542_v25 = vpop.f32.mrf.mxu3  ;;  %v1998_v59 = vpop.f32.mrf.mxu1  ;;  %vm3875_vm5 = vcmp.eq.s32.totalorder %v5041_v31, %v7393_v58  ;;  %vm3459_vm9 = vcmp.eq.s32.totalorder %v5041_v31, %v7417_v11 }
 0x22a   :  { %vm3529_vm14 = vmor %vm3494_vm12, %vm3513_vm8  ;;  %v2437_v30 = vmax.f32 %v7519_v50, %v7542_v25  ;;  %v2040_v17 = vmax.f32 %v1841_v21, %v1998_v59  ;;  %v2197_v57 = vpop.f32.mrf.mxu2  ;;  %vm3512_vm12 = vcmp.eq.s32.totalorder %v5041_v31, %v7430_v0 }
 0x22b   :  { %4657 = vmatpush.msk.msra.mxu1 %vm3529_vm14, %v8410_v44  ;;  %vm3692_vm1 = vmor %vm3658_vm10, %vm3676_vm11  ;;  %vm3477_vm10 = vcmp.eq.s32.totalorder %v5041_v31, %v7419_v19  ;;  %vm3657_vm14 = vcmp.eq.s32.totalorder %v5072_v32, %v7343_v12  ;;  %v8462_v31 = vld [vmem:[#allocation13_spill] sm:$0xff] }
 0x22c   :  { %vm3727_vm3 = vmor %vm3692_vm1, %vm3711_vm13  ;;  %2793 = vmatmul.f32.gmra.mxu1 %v4806_v41  ;;  %v7559_v18 = vmax.f32 %v2040_v17, %v2197_v57  ;;  %vm3710_vm1 = vcmp.eq.s32.totalorder %v5072_v32, %v7358_v7  ;;  %v7617_v17 = vld [vmem:[#allocation5 + $0x28] sm:$0xff] }
 0x22d   :  { %4690 = vmatpush.msk.msra.mxu2 %vm3727_vm3, %v8410_v44  ;;  %vm3294_vm6 = vmor %vm3260_vm15, %vm3278_vm0  ;;  %v1802_v63 = vpop.f32.mrf.mxu0  ;;  %vm3675_vm15 = vcmp.eq.s32.totalorder %v5072_v32, %v7345_v9  ;;  %vm3259_vm3 = vcmp.eq.s32.totalorder %v5072_v32, %v7360_v55 }
 0x22e   :  { %3191 = vmatmul.f32.gmra.mxu3 %v4806_v41  ;;  %vm3329_vm8 = vmor %vm3294_vm6, %vm3313_vm2  ;;  %v1842_v43 = vmax.f32 %v8445_v16, %v1802_v63  ;;  %2995 = vmatmul.f32.gmra.mxu2 %v7571_v61  ;;  %vm3312_vm6 = vcmp.eq.s32.totalorder %v5072_v32, %v7381_v54  ;;  %v8446_v41 = vmax.f32 %v6906_v49, %v6929_v28 }
 0x22f   :  { %4626 = vmatpush.msk.msra.mxu0 %vm3329_vm8, %v8410_v44  ;;  %vm3891_vm11 = vmor %vm3857_vm4, %vm3875_vm5  ;;  %vm3277_vm4 = vcmp.eq.s32.totalorder %v5072_v32, %v7370_v29  ;;  %vm3856_vm8 = vcmp.eq.s32.totalorder %v5072_v32, %v7391_v39 }
 0x230   :  { %vm3926_vm13 = vmor %vm3891_vm11, %vm3910_vm7  ;;  %2597 = vmatmul.f32.gmra.mxu0 %v7571_v61  ;;  %vm3909_vm11 = vcmp.eq.s32.totalorder %v5072_v32, %v7408_v13 }
 0x231   :  { %4722 = vmatpush.msk.msra.mxu3 %vm3926_vm13, %v8410_v44  ;;  %vm3493_vm0 = vmor %vm3459_vm9, %vm3477_vm10  ;;  %v7586_v51 = vpop.f32.mrf.mxu3  ;;  %v2001_v14 = vpop.f32.mrf.mxu1  ;;  %vm3874_vm9 = vcmp.eq.s32.totalorder %v5072_v32, %v7393_v58  ;;  %vm3458_vm13 = vcmp.eq.s32.totalorder %v5072_v32, %v7417_v11 }
 0x232   :  { %vm3528_vm2 = vmor %vm3493_vm0, %vm3512_vm12  ;;  %v2041_v27 = vmax.f32 %v1842_v43, %v2001_v14  ;;  %v2200_v62 = vpop.f32.mrf.mxu2  ;;  %vm3511_vm0 = vcmp.eq.s32.totalorder %v5072_v32, %v7430_v0  ;;  %v8447_v14 = vmax.f32 %v6946_v45, %v6969_v3  ;;  %v8465_v50 = vmax.f32 %v7559_v18, %v7586_v51 }
 0x233   :  { %4658 = vmatpush.msk.msra.mxu1 %vm3528_vm2, %v8410_v44  ;;  %vm3691_vm5 = vmor %vm3657_vm14, %vm3675_vm15  ;;  %vm3476_vm14 = vcmp.eq.s32.totalorder %v5072_v32, %v7419_v19  ;;  %vm3656_vm2 = vcmp.eq.s32.totalorder %v5103_v33, %v7343_v12  ;;  %v7985_v32 = vld [vmem:[#allocation5 + $0x68] sm:$0xff] }
 0x234   :  { %vm3726_vm7 = vmor %vm3691_vm5, %vm3710_vm1  ;;  %2796 = vmatmul.f32.gmra.mxu1 %v7571_v61  ;;  %v7604_v52 = vmax.f32 %v2041_v27, %v2200_v62  ;;  %vm3709_vm5 = vcmp.eq.s32.totalorder %v5103_v33, %v7358_v7  ;;  %v7663_v62 = vld [vmem:[#allocation5 + $0x30] sm:$0xff] }
 0x235   :  { %4691 = vmatpush.msk.msra.mxu2 %vm3726_vm7, %v8410_v44  ;;  %vm3293_vm10 = vmor %vm3259_vm3, %vm3277_vm4  ;;  %v1805_v21 = vpop.f32.mrf.mxu0  ;;  %vm3674_vm3 = vcmp.eq.s32.totalorder %v5103_v33, %v7345_v9  ;;  %vm3258_vm7 = vcmp.eq.s32.totalorder %v5103_v33, %v7360_v55 }
 0x236   :  { %3194 = vmatmul.f32.gmra.mxu3 %v7571_v61  ;;  %vm3328_vm12 = vmor %vm3293_vm10, %vm3312_vm6  ;;  %v1843_v59 = vmax.f32 %v8446_v41, %v1805_v21  ;;  %2998 = vmatmul.f32.gmra.mxu2 %v7617_v17  ;;  %vm3311_vm10 = vcmp.eq.s32.totalorder %v5103_v33, %v7381_v54 }
 0x237   :  { %4627 = vmatpush.msk.msra.mxu0 %vm3328_vm12, %v8410_v44  ;;  %vm3890_vm15 = vmor %vm3856_vm8, %vm3874_vm9  ;;  %vm3276_vm8 = vcmp.eq.s32.totalorder %v5103_v33, %v7370_v29  ;;  %vm3855_vm12 = vcmp.eq.s32.totalorder %v5103_v33, %v7391_v39 }
 0x238   :  { %vm3925_vm1 = vmor %vm3890_vm15, %vm3909_vm11  ;;  %2600 = vmatmul.f32.gmra.mxu0 %v7617_v17  ;;  %vm3908_vm15 = vcmp.eq.s32.totalorder %v5103_v33, %v7408_v13 }
 0x239   :  { %4723 = vmatpush.msk.msra.mxu3 %vm3925_vm1, %v8410_v44  ;;  %vm3492_vm4 = vmor %vm3458_vm13, %vm3476_vm14  ;;  %v7632_v49 = vpop.f32.mrf.mxu3  ;;  %v2004_v28 = vpop.f32.mrf.mxu1  ;;  %vm3873_vm13 = vcmp.eq.s32.totalorder %v5103_v33, %v7393_v58  ;;  %vm3457_vm1 = vcmp.eq.s32.totalorder %v5103_v33, %v7417_v11 }
 0x23a   :  { %vm3527_vm6 = vmor %vm3492_vm4, %vm3511_vm0  ;;  %v2042_v57 = vmax.f32 %v1843_v59, %v2004_v28  ;;  %v2203_v63 = vpop.f32.mrf.mxu2  ;;  %vm3510_vm4 = vcmp.eq.s32.totalorder %v5103_v33, %v7430_v0  ;;  %v8466_v18 = vmax.f32 %v7604_v52, %v7632_v49 }
 0x23b   :  { %4659 = vmatpush.msk.msra.mxu1 %vm3527_vm6, %v8410_v44  ;;  %vm3690_vm9 = vmor %vm3656_vm2, %vm3674_vm3  ;;  %vm3475_vm2 = vcmp.eq.s32.totalorder %v5103_v33, %v7419_v19  ;;  %vm3655_vm6 = vcmp.eq.s32.totalorder %v5134_v34, %v7343_v12  ;;  %v8460_v33 = vld [vmem:[#allocation19_spill] sm:$0xff] }
 0x23c   :  { %vm3725_vm11 = vmor %vm3690_vm9, %vm3709_vm5  ;;  %2799 = vmatmul.f32.gmra.mxu1 %v7617_v17  ;;  %v7650_v16 = vmax.f32 %v2042_v57, %v2203_v63  ;;  %vm3708_vm9 = vcmp.eq.s32.totalorder %v5134_v34, %v7358_v7  ;;  %v8448_v57 = vmax.f32 %v6986_v40, %v7009_v26 }
 0x23d   :  { %4692 = vmatpush.msk.msra.mxu2 %vm3725_vm11, %v8410_v44  ;;  %vm3292_vm14 = vmor %vm3258_vm7, %vm3276_vm8  ;;  %v1808_v43 = vpop.f32.mrf.mxu0  ;;  %vm3673_vm7 = vcmp.eq.s32.totalorder %v5134_v34, %v7345_v9  ;;  %vm3257_vm11 = vcmp.eq.s32.totalorder %v5134_v34, %v7360_v55 }
 0x23e   :  { %3197 = vmatmul.f32.gmra.mxu3 %v7617_v17  ;;  %vm3327_vm0 = vmor %vm3292_vm14, %vm3311_vm10  ;;  %v1844_v27 = vmax.f32 %v8447_v14, %v1808_v43  ;;  %3001 = vmatmul.f32.gmra.mxu2 %v7663_v62  ;;  %vm3310_vm14 = vcmp.eq.s32.totalorder %v5134_v34, %v7381_v54  ;;  %v7709_v43 = vld [vmem:[#allocation5 + $0x38] sm:$0xff] }
 0x23f   :  { %4628 = vmatpush.msk.msra.mxu0 %vm3327_vm0, %v8410_v44  ;;  %vm3889_vm3 = vmor %vm3855_vm12, %vm3873_vm13  ;;  %vm3275_vm12 = vcmp.eq.s32.totalorder %v5134_v34, %v7370_v29  ;;  %vm3854_vm0 = vcmp.eq.s32.totalorder %v5134_v34, %v7391_v39 }
 0x240   :  { %vm3924_vm5 = vmor %vm3889_vm3, %vm3908_vm15  ;;  %2603 = vmatmul.f32.gmra.mxu0 %v7663_v62  ;;  %vm3907_vm3 = vcmp.eq.s32.totalorder %v5134_v34, %v7408_v13 }
 0x241   :  { %4724 = vmatpush.msk.msra.mxu3 %vm3924_vm5, %v8410_v44  ;;  %vm3491_vm8 = vmor %vm3457_vm1, %vm3475_vm2  ;;  %v7678_v45 = vpop.f32.mrf.mxu3  ;;  %v2007_v3 = vpop.f32.mrf.mxu1  ;;  %vm3872_vm1 = vcmp.eq.s32.totalorder %v5134_v34, %v7393_v58  ;;  %vm3456_vm5 = vcmp.eq.s32.totalorder %v5134_v34, %v7417_v11 }
 0x242   :  { %vm3526_vm10 = vmor %vm3491_vm8, %vm3510_vm4  ;;  %v2043_v21 = vmax.f32 %v1844_v27, %v2007_v3  ;;  %v2206_v41 = vpop.f32.mrf.mxu2  ;;  %vm3509_vm8 = vcmp.eq.s32.totalorder %v5134_v34, %v7430_v0  ;;  %v8467_v52 = vmax.f32 %v7650_v16, %v7678_v45 }
 0x243   :  { %4660 = vmatpush.msk.msra.mxu1 %vm3526_vm10, %v8410_v44  ;;  %vm3689_vm13 = vmor %vm3655_vm6, %vm3673_vm7  ;;  %vm3474_vm6 = vcmp.eq.s32.totalorder %v5134_v34, %v7419_v19  ;;  %vm3654_vm10 = vcmp.eq.s32.totalorder %v5165_v35, %v7343_v12  ;;  %v8458_v34 = vld [vmem:[#allocation12_spill] sm:$0xff] }
 0x244   :  { %vm3724_vm15 = vmor %vm3689_vm13, %vm3708_vm9  ;;  %2802 = vmatmul.f32.gmra.mxu1 %v7663_v62  ;;  %v7696_v59 = vmax.f32 %v2043_v21, %v2206_v41  ;;  %vm3707_vm13 = vcmp.eq.s32.totalorder %v5165_v35, %v7358_v7  ;;  %v8449_v41 = vmax.f32 %v7026_v4, %v7049_v20 }
 0x245   :  { %4693 = vmatpush.msk.msra.mxu2 %vm3724_vm15, %v8410_v44  ;;  %vm3291_vm2 = vmor %vm3257_vm11, %vm3275_vm12  ;;  %v1811_v28 = vpop.f32.mrf.mxu0  ;;  %vm3672_vm11 = vcmp.eq.s32.totalorder %v5165_v35, %v7345_v9  ;;  %vm3256_vm15 = vcmp.eq.s32.totalorder %v5165_v35, %v7360_v55 }
 0x246   :  { %3200 = vmatmul.f32.gmra.mxu3 %v7663_v62  ;;  %vm3326_vm4 = vmor %vm3291_vm2, %vm3310_vm14  ;;  %v1845_v63 = vmax.f32 %v8448_v57, %v1811_v28  ;;  %3004 = vmatmul.f32.gmra.mxu2 %v7709_v43  ;;  %vm3309_vm2 = vcmp.eq.s32.totalorder %v5165_v35, %v7381_v54  ;;  %v7755_v57 = vld [vmem:[#allocation5 + $0x40] sm:$0xff] }
 0x247   :  { %4629 = vmatpush.msk.msra.mxu0 %vm3326_vm4, %v8410_v44  ;;  %vm3888_vm7 = vmor %vm3854_vm0, %vm3872_vm1  ;;  %vm3274_vm0 = vcmp.eq.s32.totalorder %v5165_v35, %v7370_v29  ;;  %vm3853_vm4 = vcmp.eq.s32.totalorder %v5165_v35, %v7391_v39 }
 0x248   :  { %vm3923_vm9 = vmor %vm3888_vm7, %vm3907_vm3  ;;  %2606 = vmatmul.f32.gmra.mxu0 %v7709_v43  ;;  %vm3906_vm7 = vcmp.eq.s32.totalorder %v5165_v35, %v7408_v13 }
 0x249   :  { %4725 = vmatpush.msk.msra.mxu3 %vm3923_vm9, %v8410_v44  ;;  %vm3490_vm12 = vmor %vm3456_vm5, %vm3474_vm6  ;;  %v7724_v40 = vpop.f32.mrf.mxu3  ;;  %v2010_v26 = vpop.f32.mrf.mxu1  ;;  %vm3871_vm5 = vcmp.eq.s32.totalorder %v5165_v35, %v7393_v58  ;;  %vm3455_vm9 = vcmp.eq.s32.totalorder %v5165_v35, %v7417_v11 }
 0x24a   :  { %vm3525_vm14 = vmor %vm3490_vm12, %vm3509_vm8  ;;  %v2044_v14 = vmax.f32 %v1845_v63, %v2010_v26  ;;  %v2209_v27 = vpop.f32.mrf.mxu2  ;;  %vm3508_vm12 = vcmp.eq.s32.totalorder %v5165_v35, %v7430_v0  ;;  %v8468_v16 = vmax.f32 %v7696_v59, %v7724_v40 }
 0x24b   :  { %4661 = vmatpush.msk.msra.mxu1 %vm3525_vm14, %v8410_v44  ;;  %vm3688_vm1 = vmor %vm3654_vm10, %vm3672_vm11  ;;  %vm3473_vm10 = vcmp.eq.s32.totalorder %v5165_v35, %v7419_v19  ;;  %vm3653_vm14 = vcmp.eq.s32.totalorder %v5196_v36, %v7343_v12  ;;  %v7939_v35 = vld [vmem:[#allocation5 + $0x60] sm:$0xff] }
 0x24c   :  { %vm3723_vm3 = vmor %vm3688_vm1, %vm3707_vm13  ;;  %2805 = vmatmul.f32.gmra.mxu1 %v7709_v43  ;;  %v7742_v3 = vmax.f32 %v2044_v14, %v2209_v27  ;;  %vm3706_vm1 = vcmp.eq.s32.totalorder %v5196_v36, %v7358_v7 }
 0x24d   :  { %4694 = vmatpush.msk.msra.mxu2 %vm3723_vm3, %v8410_v44  ;;  %vm3290_vm6 = vmor %vm3256_vm15, %vm3274_vm0  ;;  %v1814_v21 = vpop.f32.mrf.mxu0  ;;  %vm3671_vm15 = vcmp.eq.s32.totalorder %v5196_v36, %v7345_v9  ;;  %vm3255_vm3 = vcmp.eq.s32.totalorder %v5196_v36, %v7360_v55 }
 0x24e   :  { %3203 = vmatmul.f32.gmra.mxu3 %v7709_v43  ;;  %vm3325_vm8 = vmor %vm3290_vm6, %vm3309_vm2  ;;  %v1846_v28 = vmax.f32 %v8449_v41, %v1814_v21  ;;  %3007 = vmatmul.f32.gmra.mxu2 %v7755_v57  ;;  %vm3308_vm6 = vcmp.eq.s32.totalorder %v5196_v36, %v7381_v54  ;;  %v8450_v21 = vmax.f32 %v7066_v47, %v7089_v6 }
 0x24f   :  { %4630 = vmatpush.msk.msra.mxu0 %vm3325_vm8, %v8410_v44  ;;  %vm3887_vm11 = vmor %vm3853_vm4, %vm3871_vm5  ;;  %vm3273_vm4 = vcmp.eq.s32.totalorder %v5196_v36, %v7370_v29  ;;  %vm3852_vm8 = vcmp.eq.s32.totalorder %v5196_v36, %v7391_v39 }
 0x250   :  { %vm3922_vm13 = vmor %vm3887_vm11, %vm3906_vm7  ;;  %2609 = vmatmul.f32.gmra.mxu0 %v7755_v57  ;;  %vm3905_vm11 = vcmp.eq.s32.totalorder %v5196_v36, %v7408_v13 }
 0x251   :  { %4726 = vmatpush.msk.msra.mxu3 %vm3922_vm13, %v8410_v44  ;;  %vm3489_vm0 = vmor %vm3455_vm9, %vm3473_vm10  ;;  %v7770_v4 = vpop.f32.mrf.mxu3  ;;  %v2013_v20 = vpop.f32.mrf.mxu1  ;;  %vm3870_vm9 = vcmp.eq.s32.totalorder %v5196_v36, %v7393_v58  ;;  %vm3454_vm13 = vcmp.eq.s32.totalorder %v5196_v36, %v7417_v11 }
 0x252   :  { %vm3524_vm2 = vmor %vm3489_vm0, %vm3508_vm12  ;;  %v2045_v63 = vmax.f32 %v1846_v28, %v2013_v20  ;;  %v2212_v26 = vpop.f32.mrf.mxu2  ;;  %v7801_v28 = vld [vmem:[#allocation5 + $0x48] sm:$0xff]  ;;  %vm3507_vm0 = vcmp.eq.s32.totalorder %v5196_v36, %v7430_v0  ;;  %v8469_v59 = vmax.f32 %v7742_v3, %v7770_v4 }
 0x253   :  { %4662 = vmatpush.msk.msra.mxu1 %vm3524_vm2, %v8410_v44  ;;  %vm3687_vm5 = vmor %vm3653_vm14, %vm3671_vm15  ;;  %vm3472_vm14 = vcmp.eq.s32.totalorder %v5196_v36, %v7419_v19  ;;  %vm3652_vm2 = vcmp.eq.s32.totalorder %v5227_v37, %v7343_v12  ;;  %v8456_v36 = vld [vmem:[#allocation17_spill] sm:$0xff] }
 0x254   :  { %vm3722_vm7 = vmor %vm3687_vm5, %vm3706_vm1  ;;  %2808 = vmatmul.f32.gmra.mxu1 %v7755_v57  ;;  %v7788_v14 = vmax.f32 %v2045_v63, %v2212_v26  ;;  %vm3705_vm5 = vcmp.eq.s32.totalorder %v5227_v37, %v7358_v7 }
 0x255   :  { %4695 = vmatpush.msk.msra.mxu2 %vm3722_vm7, %v8410_v44  ;;  %vm3289_vm10 = vmor %vm3255_vm3, %vm3273_vm4  ;;  %v1817_v27 = vpop.f32.mrf.mxu0  ;;  %vm3670_vm3 = vcmp.eq.s32.totalorder %v5227_v37, %v7345_v9  ;;  %vm3254_vm7 = vcmp.eq.s32.totalorder %v5227_v37, %v7360_v55 }
 0x256   :  { %3206 = vmatmul.f32.gmra.mxu3 %v7755_v57  ;;  %vm3324_vm12 = vmor %vm3289_vm10, %vm3308_vm6  ;;  %v1847_v41 = vmax.f32 %v8450_v21, %v1817_v27  ;;  %3010 = vmatmul.f32.gmra.mxu2 %v7801_v28  ;;  %vm3307_vm10 = vcmp.eq.s32.totalorder %v5227_v37, %v7381_v54  ;;  %v8451_v21 = vmax.f32 %v7106_v5, %v7129_v15 }
 0x257   :  { %4631 = vmatpush.msk.msra.mxu0 %vm3324_vm12, %v8410_v44  ;;  %vm3886_vm15 = vmor %vm3852_vm8, %vm3870_vm9  ;;  %vm3272_vm8 = vcmp.eq.s32.totalorder %v5227_v37, %v7370_v29  ;;  %vm3851_vm12 = vcmp.eq.s32.totalorder %v5227_v37, %v7391_v39 }
 0x258   :  { %vm3921_vm1 = vmor %vm3886_vm15, %vm3905_vm11  ;;  %2612 = vmatmul.f32.gmra.mxu0 %v7801_v28  ;;  %vm3904_vm15 = vcmp.eq.s32.totalorder %v5227_v37, %v7408_v13 }
 0x259   :  { %4727 = vmatpush.msk.msra.mxu3 %vm3921_vm1, %v8410_v44  ;;  %vm3488_vm4 = vmor %vm3454_vm13, %vm3472_vm14  ;;  %v7816_v47 = vpop.f32.mrf.mxu3  ;;  %v2016_v6 = vpop.f32.mrf.mxu1  ;;  %vm3869_vm13 = vcmp.eq.s32.totalorder %v5227_v37, %v7393_v58  ;;  %vm3453_vm1 = vcmp.eq.s32.totalorder %v5227_v37, %v7417_v11 }
 0x25a   :  { %vm3523_vm6 = vmor %vm3488_vm4, %vm3507_vm0  ;;  %v2046_v20 = vmax.f32 %v1847_v41, %v2016_v6  ;;  %v2215_v63 = vpop.f32.mrf.mxu2  ;;  %v7847_v6 = vld [vmem:[#allocation5 + $0x50] sm:$0xff]  ;;  %vm3506_vm4 = vcmp.eq.s32.totalorder %v5227_v37, %v7430_v0  ;;  %v8470_v3 = vmax.f32 %v7788_v14, %v7816_v47 }
 0x25b   :  { %4663 = vmatpush.msk.msra.mxu1 %vm3523_vm6, %v8410_v44  ;;  %vm3686_vm9 = vmor %vm3652_vm2, %vm3670_vm3  ;;  %vm3471_vm2 = vcmp.eq.s32.totalorder %v5227_v37, %v7419_v19  ;;  %vm3651_vm6 = vcmp.eq.s32.totalorder %v5258_v38, %v7343_v12  ;;  %v8454_v37 = vld [vmem:[#allocation11_spill] sm:$0xff] }
 0x25c   :  { %vm3721_vm11 = vmor %vm3686_vm9, %vm3705_vm5  ;;  %2811 = vmatmul.f32.gmra.mxu1 %v7801_v28  ;;  %v7834_v26 = vmax.f32 %v2046_v20, %v2215_v63  ;;  %vm3704_vm9 = vcmp.eq.s32.totalorder %v5258_v38, %v7358_v7 }
 0x25d   :  { %4696 = vmatpush.msk.msra.mxu2 %vm3721_vm11, %v8410_v44  ;;  %vm3288_vm14 = vmor %vm3254_vm7, %vm3272_vm8  ;;  %v1820_v27 = vpop.f32.mrf.mxu0  ;;  %vm3669_vm7 = vcmp.eq.s32.totalorder %v5258_v38, %v7345_v9  ;;  %vm3253_vm11 = vcmp.eq.s32.totalorder %v5258_v38, %v7360_v55 }
 0x25e   :  { %3209 = vmatmul.f32.gmra.mxu3 %v7801_v28  ;;  %vm3323_vm0 = vmor %vm3288_vm14, %vm3307_vm10  ;;  %v1848_v41 = vmax.f32 %v8451_v21, %v1820_v27  ;;  %3013 = vmatmul.f32.gmra.mxu2 %v7847_v6  ;;  %vm3306_vm14 = vcmp.eq.s32.totalorder %v5258_v38, %v7381_v54 }
 0x25f   :  { %4632 = vmatpush.msk.msra.mxu0 %vm3323_vm0, %v8410_v44  ;;  %vm3885_vm3 = vmor %vm3851_vm12, %vm3869_vm13  ;;  %vm3271_vm12 = vcmp.eq.s32.totalorder %v5258_v38, %v7370_v29  ;;  %vm3850_vm0 = vcmp.eq.s32.totalorder %v5258_v38, %v7391_v39 }
 0x260   :  { %vm3920_vm5 = vmor %vm3885_vm3, %vm3904_vm15  ;;  %2615 = vmatmul.f32.gmra.mxu0 %v7847_v6  ;;  %vm3903_vm3 = vcmp.eq.s32.totalorder %v5258_v38, %v7408_v13 }
 0x261   :  { %4728 = vmatpush.msk.msra.mxu3 %vm3920_vm5, %v8410_v44  ;;  %vm3487_vm8 = vmor %vm3453_vm1, %vm3471_vm2  ;;  %v7862_v5 = vpop.f32.mrf.mxu3  ;;  %v2019_v15 = vpop.f32.mrf.mxu1  ;;  %vm3868_vm1 = vcmp.eq.s32.totalorder %v5258_v38, %v7393_v58  ;;  %vm3452_vm5 = vcmp.eq.s32.totalorder %v5258_v38, %v7417_v11 }
 0x262   :  { %vm3522_vm10 = vmor %vm3487_vm8, %vm3506_vm4  ;;  %v2047_v20 = vmax.f32 %v1848_v41, %v2019_v15  ;;  %v2218_v63 = vpop.f32.mrf.mxu2  ;;  %v8452_v41 = vld [vmem:[#allocation15_spill] sm:$0xff]  ;;  %vm3505_vm8 = vcmp.eq.s32.totalorder %v5258_v38, %v7430_v0  ;;  %v8471_v14 = vmax.f32 %v7834_v26, %v7862_v5 }
 0x263   :  { %4664 = vmatpush.msk.msra.mxu1 %vm3522_vm10, %v8410_v44  ;;  %vm3685_vm13 = vmor %vm3651_vm6, %vm3669_vm7  ;;  %vm3470_vm6 = vcmp.eq.s32.totalorder %v5258_v38, %v7419_v19  ;;  %v8453_v15 = vmax.f32 %v7146_v48, %v8452_v41  ;;  %vm3650_vm10 = vcmp.eq.s32.totalorder %v8454_v37, %v7343_v12  ;;  %v8455_v38 = vld [vmem:[#allocation16_spill] sm:$0xff] }
 0x264   :  { %vm3720_vm15 = vmor %vm3685_vm13, %vm3704_vm9  ;;  %2814 = vmatmul.f32.gmra.mxu1 %v7847_v6  ;;  %v7880_v27 = vmax.f32 %v2047_v20, %v2218_v63  ;;  %v7893_v63 = vld [vmem:[#allocation5 + $0x58] sm:$0xff]  ;;  %vm3703_vm13 = vcmp.eq.s32.totalorder %v8454_v37, %v7358_v7 }
 0x265   :  { %4697 = vmatpush.msk.msra.mxu2 %vm3720_vm15, %v8410_v44  ;;  %vm3287_vm2 = vmor %vm3253_vm11, %vm3271_vm12  ;;  %v1823_v21 = vpop.f32.mrf.mxu0  ;;  %vm3668_vm11 = vcmp.eq.s32.totalorder %v8454_v37, %v7345_v9  ;;  %vm3252_vm15 = vcmp.eq.s32.totalorder %v8454_v37, %v7360_v55 }
 0x266   :  { %3212 = vmatmul.f32.gmra.mxu3 %v7847_v6  ;;  %vm3322_vm4 = vmor %vm3287_vm2, %vm3306_vm14  ;;  %v1849_v20 = vmax.f32 %v8453_v15, %v1823_v21  ;;  %3016 = vmatmul.f32.gmra.mxu2 %v7893_v63  ;;  %vm3305_vm2 = vcmp.eq.s32.totalorder %v8454_v37, %v7381_v54 }
 0x267   :  { %4633 = vmatpush.msk.msra.mxu0 %vm3322_vm4, %v8410_v44  ;;  %vm3884_vm7 = vmor %vm3850_vm0, %vm3868_vm1  ;;  %vm3270_vm0 = vcmp.eq.s32.totalorder %v8454_v37, %v7370_v29  ;;  %vm3849_vm4 = vcmp.eq.s32.totalorder %v8454_v37, %v7391_v39 }
 0x268   :  { %vm3919_vm9 = vmor %vm3884_vm7, %vm3903_vm3  ;;  %2618 = vmatmul.f32.gmra.mxu0 %v7893_v63  ;;  %vm3902_vm7 = vcmp.eq.s32.totalorder %v8454_v37, %v7408_v13 }
 0x269   :  { %4729 = vmatpush.msk.msra.mxu3 %vm3919_vm9, %v8410_v44  ;;  %vm3486_vm12 = vmor %vm3452_vm5, %vm3470_vm6  ;;  %v7908_v48 = vpop.f32.mrf.mxu3  ;;  %v2022_v21 = vpop.f32.mrf.mxu1  ;;  %vm3867_vm5 = vcmp.eq.s32.totalorder %v8454_v37, %v7393_v58  ;;  %vm3451_vm9 = vcmp.eq.s32.totalorder %v8454_v37, %v7417_v11 }
 0x26a   :  { %vm3521_vm14 = vmor %vm3486_vm12, %vm3505_vm8  ;;  %v2048_v41 = vmax.f32 %v1849_v20, %v2022_v21  ;;  %v2221_v15 = vpop.f32.mrf.mxu2  ;;  %vm3504_vm12 = vcmp.eq.s32.totalorder %v8454_v37, %v7430_v0  ;;  %v8472_v26 = vmax.f32 %v7880_v27, %v7908_v48 }
 0x26b   :  { %4665 = vmatpush.msk.msra.mxu1 %vm3521_vm14, %v8410_v44  ;;  %vm3684_vm1 = vmor %vm3650_vm10, %vm3668_vm11  ;;  %vm3469_vm10 = vcmp.eq.s32.totalorder %v8454_v37, %v7419_v19  ;;  %vm3649_vm14 = vcmp.eq.s32.totalorder %v8458_v34, %v7343_v12  ;;  %v8459_v37 = vld [vmem:[#allocation18_spill] sm:$0xff] }
 0x26c   :  { %vm3719_vm3 = vmor %vm3684_vm1, %vm3703_vm13  ;;  %2817 = vmatmul.f32.gmra.mxu1 %v7893_v63  ;;  %v7926_v20 = vmax.f32 %v2048_v41, %v2221_v15  ;;  %v8457_v41 = vmax.f32 %v8455_v38, %v8456_v36  ;;  %vm3702_vm1 = vcmp.eq.s32.totalorder %v8458_v34, %v7358_v7 }
 0x26d   :  { %4698 = vmatpush.msk.msra.mxu2 %vm3719_vm3, %v8410_v44  ;;  %vm3286_vm6 = vmor %vm3252_vm15, %vm3270_vm0  ;;  %v1826_v21 = vpop.f32.mrf.mxu0  ;;  %vm3667_vm15 = vcmp.eq.s32.totalorder %v8458_v34, %v7345_v9  ;;  %vm3251_vm3 = vcmp.eq.s32.totalorder %v8458_v34, %v7360_v55 }
 0x26e   :  { %3215 = vmatmul.f32.gmra.mxu3 %v7893_v63  ;;  %vm3321_vm8 = vmor %vm3286_vm6, %vm3305_vm2  ;;  %v1850_v15 = vmax.f32 %v8457_v41, %v1826_v21  ;;  %3019 = vmatmul.f32.gmra.mxu2 %v7939_v35  ;;  %vm3304_vm6 = vcmp.eq.s32.totalorder %v8458_v34, %v7381_v54 }
 0x26f   :  { %4634 = vmatpush.msk.msra.mxu0 %vm3321_vm8, %v8410_v44  ;;  %vm3883_vm11 = vmor %vm3849_vm4, %vm3867_vm5  ;;  %vm3269_vm4 = vcmp.eq.s32.totalorder %v8458_v34, %v7370_v29  ;;  %vm3848_vm8 = vcmp.eq.s32.totalorder %v8458_v34, %v7391_v39 }
 0x270   :  { %vm3918_vm13 = vmor %vm3883_vm11, %vm3902_vm7  ;;  %2621 = vmatmul.f32.gmra.mxu0 %v7939_v35  ;;  %vm3901_vm11 = vcmp.eq.s32.totalorder %v8458_v34, %v7408_v13 }
 0x271   :  { %4730 = vmatpush.msk.msra.mxu3 %vm3918_vm13, %v8410_v44  ;;  %vm3485_vm0 = vmor %vm3451_vm9, %vm3469_vm10  ;;  %v7954_v36 = vpop.f32.mrf.mxu3  ;;  %v2025_v38 = vpop.f32.mrf.mxu1  ;;  %vm3866_vm9 = vcmp.eq.s32.totalorder %v8458_v34, %v7393_v58  ;;  %vm3450_vm13 = vcmp.eq.s32.totalorder %v8458_v34, %v7417_v11 }
 0x272   :  { %vm3520_vm2 = vmor %vm3485_vm0, %vm3504_vm12  ;;  %v2049_v21 = vmax.f32 %v1850_v15, %v2025_v38  ;;  %v2224_v41 = vpop.f32.mrf.mxu2  ;;  %vm3503_vm0 = vcmp.eq.s32.totalorder %v8458_v34, %v7430_v0  ;;  %v8473_v27 = vmax.f32 %v7926_v20, %v7954_v36 }
 0x273   :  { %4666 = vmatpush.msk.msra.mxu1 %vm3520_vm2, %v8410_v44  ;;  %vm3683_vm5 = vmor %vm3649_vm14, %vm3667_vm15  ;;  %vm3468_vm14 = vcmp.eq.s32.totalorder %v8458_v34, %v7419_v19  ;;  %vm3648_vm2 = vcmp.eq.s32.totalorder %v8462_v31, %v7343_v12  ;;  %v4821_v34 = vld [vmem:[#allocation2 + $0x11] ss:$0 sm:$0xff] }
 0x274   :  { %vm3718_vm7 = vmor %vm3683_vm5, %vm3702_vm1  ;;  %2820 = vmatmul.f32.gmra.mxu1 %v7939_v35  ;;  %v7972_v15 = vmax.f32 %v2049_v21, %v2224_v41  ;;  %v8461_v21 = vmax.f32 %v8459_v37, %v8460_v33  ;;  %vm3701_vm5 = vcmp.eq.s32.totalorder %v8462_v31, %v7358_v7 }
 0x275   :  { %4699 = vmatpush.msk.msra.mxu2 %vm3718_vm7, %v8410_v44  ;;  %vm3285_vm10 = vmor %vm3251_vm3, %vm3269_vm4  ;;  %v1829_v38 = vpop.f32.mrf.mxu0  ;;  %vm3666_vm3 = vcmp.eq.s32.totalorder %v8462_v31, %v7345_v9  ;;  %vm3250_vm7 = vcmp.eq.s32.totalorder %v8462_v31, %v7360_v55 }
 0x276   :  { %3218 = vmatmul.f32.gmra.mxu3 %v7939_v35  ;;  %vm3320_vm12 = vmor %vm3285_vm10, %vm3304_vm6  ;;  %v1851_v41 = vmax.f32 %v8461_v21, %v1829_v38  ;;  %3022 = vmatmul.f32.gmra.mxu2 %v7985_v32  ;;  %vm3303_vm10 = vcmp.eq.s32.totalorder %v8462_v31, %v7381_v54 }
 0x277   :  { %4635 = vmatpush.msk.msra.mxu0 %vm3320_vm12, %v8410_v44  ;;  %vm3882_vm15 = vmor %vm3848_vm8, %vm3866_vm9  ;;  %vm3268_vm8 = vcmp.eq.s32.totalorder %v8462_v31, %v7370_v29  ;;  %vm3847_vm12 = vcmp.eq.s32.totalorder %v8462_v31, %v7391_v39  ;;  %v4820_v39 = vld [vmem:[#allocation2 + $0x13] ss:$0 sm:$0xff] }
 0x278   :  { %vm3917_vm1 = vmor %vm3882_vm15, %vm3901_vm11  ;;  %2624 = vmatmul.f32.gmra.mxu0 %v7985_v32  ;;  %vm3900_vm15 = vcmp.eq.s32.totalorder %v8462_v31, %v7408_v13 }
 0x279   :  { %4731 = vmatpush.msk.msra.mxu3 %vm3917_vm1, %v8410_v44  ;;  %vm3484_vm4 = vmor %vm3450_vm13, %vm3468_vm14  ;;  %v8000_v33 = vpop.f32.mrf.mxu3  ;;  %v2028_v37 = vpop.f32.mrf.mxu1  ;;  %vm3865_vm13 = vcmp.eq.s32.totalorder %v8462_v31, %v7393_v58  ;;  %vm3449_vm1 = vcmp.eq.s32.totalorder %v8462_v31, %v7417_v11  ;;  %v4818_v11 = vld [vmem:[#allocation2 + $0x12] ss:$0 sm:$0xff] }
 0x27a   :  { %vm3519_vm6 = vmor %vm3484_vm4, %vm3503_vm0  ;;  %v2050_v38 = vmax.f32 %v1851_v41, %v2028_v37  ;;  %v2227_v12 = vpop.f32.mrf.mxu2  ;;  %v8463_v41 = vmax.f32 %v7275_v42, %v7315_v46  ;;  %vm3502_vm4 = vcmp.eq.s32.totalorder %v8462_v31, %v7430_v0  ;;  %v8474_v20 = vmax.f32 %v7972_v15, %v8000_v33 }
 0x27b   :  { %4667 = vmatpush.msk.msra.mxu1 %vm3519_vm6, %v8410_v44  ;;  %vm3682_vm9 = vmor %vm3648_vm2, %vm3666_vm3  ;;  %vm3467_vm2 = vcmp.eq.s32.totalorder %v8462_v31, %v7419_v19 }
 0x27c   :  { %vm3717_vm11 = vmor %vm3682_vm9, %vm3701_vm5  ;;  %2823 = vmatmul.f32.gmra.mxu1 %v7985_v32  ;;  %v8018_v55 = vmax.f32 %v2050_v38, %v2227_v12  ;;  %v8031_v38 = vld [vmem:[#allocation5 + $0x70] sm:$0xff]  ;;  %v8464_v12 = vld [vmem:[#allocation14_spill] sm:$0xff] }
 0x27d   :  { %4700 = vmatpush.msk.msra.mxu2 %vm3717_vm11, %v8410_v44  ;;  %vm3284_vm14 = vmor %vm3250_vm7, %vm3268_vm8  ;;  %v1832_v21 = vpop.f32.mrf.mxu0  ;;  %vm3647_vm6 = vcmp.eq.s32.totalorder %v8464_v12, %v4818_v11  ;;  %vm3665_vm7 = vcmp.eq.s32.totalorder %v8464_v12, %v7345_v9  ;;  %vm3700_vm9 = vcmp.eq.s32.totalorder %v8464_v12, %v7358_v7 }
 0x27e   :  { %3221 = vmatmul.f32.gmra.mxu3 %v7985_v32  ;;  %vm3319_vm0 = vmor %vm3284_vm14, %vm3303_vm10  ;;  %v1852_v37 = vmax.f32 %v8463_v41, %v1832_v21  ;;  %3025 = vmatmul.f32.gmra.mxu2 %v8031_v38  ;;  %v4819_v21 = vld [vmem:[#allocation2 + $0x10] ss:$0 sm:$0xff]  ;;  %vm3302_vm14 = vcmp.eq.s32.totalorder %v8464_v12, %v7381_v54 }
 0x27f   :  { %4636 = vmatpush.msk.msra.mxu0 %vm3319_vm0, %v8410_v44  ;;  %vm3881_vm3 = vmor %vm3847_vm12, %vm3865_vm13  ;;  %vm3249_vm11 = vcmp.eq.s32.totalorder %v8464_v12, %v4819_v21  ;;  %vm3267_vm12 = vcmp.eq.s32.totalorder %v8464_v12, %v7370_v29  ;;  %vm3846_vm0 = vcmp.eq.s32.totalorder %v8464_v12, %v4820_v39 }
 0x280   :  { %vm3916_vm5 = vmor %vm3881_vm3, %vm3900_vm15  ;;  %2627 = vmatmul.f32.gmra.mxu0 %v8031_v38  ;;  %vm3899_vm3 = vcmp.eq.s32.totalorder %v8464_v12, %v7408_v13 }
 0x281   :  { %4732 = vmatpush.msk.msra.mxu3 %vm3916_vm5, %v8410_v44  ;;  %vm3483_vm8 = vmor %vm3449_vm1, %vm3467_vm2  ;;  %v8045_v42 = vpop.f32.mrf.mxu3  ;;  %v2031_v46 = vpop.f32.mrf.mxu1  ;;  %vm3864_vm1 = vcmp.eq.s32.totalorder %v8464_v12, %v7393_v58  ;;  %vm3448_vm5 = vcmp.eq.s32.totalorder %v8464_v12, %v4821_v34 }
 0x282   :  { %vm3518_vm10 = vmor %vm3483_vm8, %vm3502_vm4  ;;  %v2051_v31 = vmax.f32 %v1852_v37, %v2031_v46  ;;  %v2230_v41 = vpop.f32.mrf.mxu2  ;;  %vm3501_vm8 = vcmp.eq.s32.totalorder %v8464_v12, %v7430_v0  ;;  %v8475_v15 = vmax.f32 %v8018_v55, %v8045_v42 }
 0x283   :  { %4668 = vmatpush.msk.msra.mxu1 %vm3518_vm10, %v8410_v44  ;;  %vm3681_vm13 = vmor %vm3647_vm6, %vm3665_vm7  ;;  %vm3466_vm6 = vcmp.eq.s32.totalorder %v8464_v12, %v7419_v19  ;;  %vm3646_vm10 = vcmp.eq.s32.totalorder %v4938_v1, %v4818_v11  ;;  %v4824_v11 = vld [vmem:[#allocation5 + $0x8] sm:$0xff] }
 0x284   :  { %vm3716_vm15 = vmor %vm3681_vm13, %vm3700_vm9  ;;  %2826 = vmatmul.f32.gmra.mxu1 %v8031_v38  ;;  %v8063_v37 = vmax.f32 %v2051_v31, %v2230_v41  ;;  %v8075_v41 = vld [vmem:[#allocation5 + $0x78] sm:$0xff]  ;;  %vm3699_vm13 = vcmp.eq.s32.totalorder %v4938_v1, %v7358_v7 }
 0x285   :  { %4701 = vmatpush.msk.msra.mxu2 %vm3716_vm15, %v8410_v44  ;;  %vm3283_vm2 = vmor %vm3249_vm11, %vm3267_vm12  ;;  %v1835_v46 = vpop.f32.mrf.mxu0  ;;  %vm3664_vm11 = vcmp.eq.s32.totalorder %v4938_v1, %v7345_v9  ;;  %vm3248_vm15 = vcmp.eq.s32.totalorder %v4938_v1, %v4819_v21 }
 0x286   :  { %3224 = vmatmul.f32.gmra.mxu3 %v8031_v38  ;;  %vm3318_vm4 = vmor %vm3283_vm2, %vm3302_vm14  ;;  %v1853_v31 = vmax.f32 %v1654_v10, %v1835_v46  ;;  %3028 = vmatmul.f32.gmra.mxu2 %v8075_v41  ;;  %vm3301_vm2 = vcmp.eq.s32.totalorder %v4938_v1, %v7381_v54 }
 0x287   :  { %4637 = vmatpush.msk.msra.mxu0 %vm3318_vm4, %v8410_v44  ;;  %vm3880_vm7 = vmor %vm3846_vm0, %vm3864_vm1  ;;  %vm3266_vm0 = vcmp.eq.s32.totalorder %v4938_v1, %v7370_v29  ;;  %vm3845_vm4 = vcmp.eq.s32.totalorder %v4938_v1, %v4820_v39 }
 0x288   :  { %vm3915_vm9 = vmor %vm3880_vm7, %vm3899_vm3  ;;  %2630 = vmatmul.f32.gmra.mxu0 %v8075_v41  ;;  %vm3898_vm7 = vcmp.eq.s32.totalorder %v4938_v1, %v7408_v13 }
 0x289   :  { %4733 = vmatpush.msk.msra.mxu3 %vm3915_vm9, %v8410_v44  ;;  %vm3482_vm12 = vmor %vm3448_vm5, %vm3466_vm6  ;;  %v8091_v56 = vpop.f32.mrf.mxu3  ;;  %v2034_v22 = vpop.f32.mrf.mxu1  ;;  %vm3863_vm5 = vcmp.eq.s32.totalorder %v4938_v1, %v7393_v58  ;;  %vm3447_vm9 = vcmp.eq.s32.totalorder %v4938_v1, %v4821_v34  ;;  %v4823_v58 = vld [vmem:[#allocation5] sm:$0xff] }
 0x28a   :  { %vm3517_vm14 = vmor %vm3482_vm12, %vm3501_vm8  ;;  %v2449_v10 = vmax.f32 %v8063_v37, %v8091_v56  ;;  %v2052_v12 = vmax.f32 %v1853_v31, %v2034_v22  ;;  %v2233_v9 = vpop.f32.mrf.mxu2  ;;  %vm3500_vm12 = vcmp.eq.s32.totalorder %v4938_v1, %v7430_v0 }
 0x28b   :  { %4669 = vmatpush.msk.msra.mxu1 %vm3517_vm14, %v8410_v44  ;;  %vm3680_vm1 = vmor %vm3646_vm10, %vm3664_vm11  ;;  %vm3465_vm10 = vcmp.eq.s32.totalorder %v4938_v1, %v7419_v19 }
 0x28c   :  { %vm3715_vm3 = vmor %vm3680_vm1, %vm3699_vm13  ;;  %2829 = vmatmul.f32.gmra.mxu1 %v8075_v41  ;;  %v8107_v7 = vmax.f32 %v2052_v12, %v2233_v9 }
 0x28d   :  { %4702 = vmatpush.msk.msra.mxu2 %vm3715_vm3, %v8410_v44  ;;  %vm3282_vm6 = vmor %vm3248_vm15, %vm3266_vm0  ;;  %v2586_v29 = vpop.f32.mrf.mxu0 }
 0x28e   :  { %3227 = vmatmul.f32.gmra.mxu3 %v8075_v41  ;;  %vm3317_vm8 = vmor %vm3282_vm6, %vm3301_vm2  ;;  %v2634_v54 = vmax.f32 %v2435_v2, %v2586_v29  ;;  %3779 = vmatmul.f32.vlgmr.msra.gmra.mxu2 %v4823_v58 }
 0x28f   :  { %4638 = vmatpush.msk.msra.mxu0 %vm3317_vm8, %v8410_v44  ;;  %vm3879_vm11 = vmor %vm3845_vm4, %vm3863_vm5 }
 0x290   :  { %vm3914_vm13 = vmor %vm3879_vm11, %vm3898_vm7  ;;  %3381 = vmatmul.f32.vlgmr.msra.gmra.mxu0 %v4823_v58 }
 0x291   :  { %4734 = vmatpush.msk.msra.mxu3 %vm3914_vm13, %v8410_v44  ;;  %vm3481_vm14 = vmor %vm3447_vm9, %vm3465_vm10  ;;  %v8125_v13 = vpop.f32.mrf.mxu3  ;;  %v2785_v19 = vpop.f32.mrf.mxu1 }
 0x292   :  { %vm3516_vm15 = vmor %vm3481_vm14, %vm3500_vm12  ;;  %v2450_v24 = vmax.f32 %v8107_v7, %v8125_v13  ;;  %v2833_v53 = vmax.f32 %v2634_v54, %v2785_v19  ;;  %v2984_v2 = vpop.f32.mrf.mxu2 }
 0x293   :  { %4670 = vmatpush.msk.msra.mxu1 %vm3516_vm15, %v8410_v44 }
 0x294   :  { %3580 = vmatmul.f32.vlgmr.msra.gmra.mxu1 %v4823_v58  ;;  %v8130_v34 = vmax.f32 %v2833_v53, %v2984_v2 }
 0x295   :  { %v2589_v1 = vpop.f32.mrf.mxu0 }
 0x296   :  { %3978 = vmatmul.f32.vlgmr.msra.gmra.mxu3 %v4823_v58  ;;  %v2635_v0 = vmax.f32 %v2436_v8, %v2589_v1  ;;  %3782 = vmatmul.f32.gmra.mxu2 %v4824_v11 }
 0x298   :  { %3384 = vmatmul.f32.gmra.mxu0 %v4824_v11 }
 0x299   :  { %v8135_v39 = vpop.f32.mrf.mxu3  ;;  %v2788_v21 = vpop.f32.mrf.mxu1 }
 0x29a   :  { %v3231_v46 = vmax.f32 %v8130_v34, %v8135_v39  ;;  %v2834_v31 = vmax.f32 %v2635_v0, %v2788_v21  ;;  %v2987_v44 = vpop.f32.mrf.mxu2 }
 0x29c   :  { %3583 = vmatmul.f32.gmra.mxu1 %v4824_v11  ;;  %v8139_v22 = vmax.f32 %v2834_v31, %v2987_v44 }
 0x29d   :  { %v2592_v12 = vpop.f32.mrf.mxu0 }
 0x29e   :  { %3981 = vmatmul.f32.gmra.mxu3 %v4824_v11  ;;  %v2636_v60 = vmax.f32 %v2437_v30, %v2592_v12  ;;  %3785 = vmatmul.f32.gmra.mxu2 %v4825_v23  ;;  %v4826_v30 = vld [vmem:[#allocation5 + $0x18] sm:$0xff] }
 0x2a0   :  { %3387 = vmatmul.f32.gmra.mxu0 %v4825_v23 }
 0x2a1   :  { %v8144_v8 = vpop.f32.mrf.mxu3  ;;  %v2791_v9 = vpop.f32.mrf.mxu1 }
 0x2a2   :  { %v3232_v29 = vmax.f32 %v8139_v22, %v8144_v8  ;;  %v2835_v54 = vmax.f32 %v2636_v60, %v2791_v9  ;;  %v2990_v58 = vpop.f32.mrf.mxu2 }
 0x2a4   :  { %3586 = vmatmul.f32.gmra.mxu1 %v4825_v23  ;;  %v8148_v19 = vmax.f32 %v2835_v54, %v2990_v58 }
 0x2a5   :  { %v2595_v53 = vpop.f32.mrf.mxu0 }
 0x2a6   :  { %3984 = vmatmul.f32.gmra.mxu3 %v4825_v23  ;;  %v2637_v25 = vmax.f32 %v8465_v50, %v2595_v53  ;;  %3788 = vmatmul.f32.gmra.mxu2 %v4826_v30 }
 0x2a8   :  { %3390 = vmatmul.f32.gmra.mxu0 %v4826_v30 }
 0x2a9   :  { %v8153_v2 = vpop.f32.mrf.mxu3  ;;  %v2794_v1 = vpop.f32.mrf.mxu1 }
 0x2aa   :  { %v3233_v0 = vmax.f32 %v8148_v19, %v8153_v2  ;;  %v2836_v11 = vmax.f32 %v2637_v25, %v2794_v1  ;;  %v2993_v21 = vpop.f32.mrf.mxu2 }
 0x2ac   :  { %3589 = vmatmul.f32.gmra.mxu1 %v4826_v30  ;;  %v8157_v31 = vmax.f32 %v2836_v11, %v2993_v21 }
 0x2ad   :  { %v2598_v44 = vpop.f32.mrf.mxu0 }
 0x2ae   :  { %3987 = vmatmul.f32.gmra.mxu3 %v4826_v30  ;;  %v2638_v51 = vmax.f32 %v8466_v18, %v2598_v44  ;;  %3791 = vmatmul.f32.gmra.mxu2 %v7571_v61 }
 0x2b0   :  { %3393 = vmatmul.f32.gmra.mxu0 %v7571_v61 }
 0x2b1   :  { %v8164_v12 = vpop.f32.mrf.mxu3  ;;  %v2797_v60 = vpop.f32.mrf.mxu1 }
 0x2b2   :  { %v3234_v23 = vmax.f32 %v8157_v31, %v8164_v12  ;;  %v2837_v9 = vmax.f32 %v2638_v51, %v2797_v60  ;;  %v2996_v54 = vpop.f32.mrf.mxu2 }
 0x2b4   :  { %3592 = vmatmul.f32.gmra.mxu1 %v7571_v61  ;;  %v8169_v58 = vmax.f32 %v2837_v9, %v2996_v54 }
 0x2b5   :  { %v2601_v53 = vpop.f32.mrf.mxu0 }
 0x2b6   :  { %3990 = vmatmul.f32.gmra.mxu3 %v7571_v61  ;;  %v2639_v49 = vmax.f32 %v8467_v52, %v2601_v53  ;;  %3794 = vmatmul.f32.gmra.mxu2 %v7617_v17 }
 0x2b8   :  { %3396 = vmatmul.f32.gmra.mxu0 %v7617_v17 }
 0x2b9   :  { %v8177_v50 = vpop.f32.mrf.mxu3  ;;  %v2800_v25 = vpop.f32.mrf.mxu1 }
 0x2ba   :  { %v3235_v30 = vmax.f32 %v8169_v58, %v8177_v50  ;;  %v2838_v1 = vmax.f32 %v2639_v49, %v2800_v25  ;;  %v2999_v11 = vpop.f32.mrf.mxu2 }
 0x2bc   :  { %3595 = vmatmul.f32.gmra.mxu1 %v7617_v17  ;;  %v8182_v21 = vmax.f32 %v2838_v1, %v2999_v11 }
 0x2bd   :  { %v2604_v61 = vpop.f32.mrf.mxu0 }
 0x2be   :  { %3993 = vmatmul.f32.gmra.mxu3 %v7617_v17  ;;  %v2640_v45 = vmax.f32 %v8468_v16, %v2604_v61  ;;  %3797 = vmatmul.f32.gmra.mxu2 %v7663_v62 }
 0x2c0   :  { %3399 = vmatmul.f32.gmra.mxu0 %v7663_v62 }
 0x2c1   :  { %v8190_v44 = vpop.f32.mrf.mxu3  ;;  %v2803_v18 = vpop.f32.mrf.mxu1 }
 0x2c2   :  { %v3236_v51 = vmax.f32 %v8182_v21, %v8190_v44  ;;  %v2839_v60 = vmax.f32 %v2640_v45, %v2803_v18  ;;  %v3002_v9 = vpop.f32.mrf.mxu2 }
 0x2c4   :  { %3598 = vmatmul.f32.gmra.mxu1 %v7663_v62  ;;  %v8195_v54 = vmax.f32 %v2839_v60, %v3002_v9 }
 0x2c5   :  { %v2607_v17 = vpop.f32.mrf.mxu0 }
 0x2c6   :  { %3996 = vmatmul.f32.gmra.mxu3 %v7663_v62  ;;  %v2641_v40 = vmax.f32 %v8469_v59, %v2607_v17  ;;  %3800 = vmatmul.f32.gmra.mxu2 %v7709_v43 }
 0x2c8   :  { %3402 = vmatmul.f32.gmra.mxu0 %v7709_v43 }
 0x2c9   :  { %v8203_v53 = vpop.f32.mrf.mxu3  ;;  %v2806_v52 = vpop.f32.mrf.mxu1 }
 0x2ca   :  { %v3237_v49 = vmax.f32 %v8195_v54, %v8203_v53  ;;  %v2840_v25 = vmax.f32 %v2641_v40, %v2806_v52  ;;  %v3005_v1 = vpop.f32.mrf.mxu2 }
 0x2cc   :  { %3601 = vmatmul.f32.gmra.mxu1 %v7709_v43  ;;  %v8208_v11 = vmax.f32 %v2840_v25, %v3005_v1 }
 0x2cd   :  { %v2610_v62 = vpop.f32.mrf.mxu0 }
 0x2ce   :  { %3999 = vmatmul.f32.gmra.mxu3 %v7709_v43  ;;  %v2642_v4 = vmax.f32 %v8470_v3, %v2610_v62  ;;  %3803 = vmatmul.f32.gmra.mxu2 %v7755_v57 }
 0x2d0   :  { %3405 = vmatmul.f32.gmra.mxu0 %v7755_v57 }
 0x2d1   :  { %v8216_v61 = vpop.f32.mrf.mxu3  ;;  %v2809_v16 = vpop.f32.mrf.mxu1 }
 0x2d2   :  { %v3238_v45 = vmax.f32 %v8208_v11, %v8216_v61  ;;  %v2841_v18 = vmax.f32 %v2642_v4, %v2809_v16  ;;  %v3008_v60 = vpop.f32.mrf.mxu2 }
 0x2d4   :  { %3604 = vmatmul.f32.gmra.mxu1 %v7755_v57  ;;  %v8221_v9 = vmax.f32 %v2841_v18, %v3008_v60 }
 0x2d5   :  { %v2613_v43 = vpop.f32.mrf.mxu0 }
 0x2d6   :  { %4002 = vmatmul.f32.gmra.mxu3 %v7755_v57  ;;  %v2643_v47 = vmax.f32 %v8471_v14, %v2613_v43  ;;  %3806 = vmatmul.f32.gmra.mxu2 %v7801_v28 }
 0x2d8   :  { %3408 = vmatmul.f32.gmra.mxu0 %v7801_v28 }
 0x2d9   :  { %v8229_v17 = vpop.f32.mrf.mxu3  ;;  %v2812_v59 = vpop.f32.mrf.mxu1 }
 0x2da   :  { %v3239_v40 = vmax.f32 %v8221_v9, %v8229_v17  ;;  %v2842_v52 = vmax.f32 %v2643_v47, %v2812_v59  ;;  %v3011_v25 = vpop.f32.mrf.mxu2 }
 0x2dc   :  { %3607 = vmatmul.f32.gmra.mxu1 %v7801_v28  ;;  %v8234_v1 = vmax.f32 %v2842_v52, %v3011_v25 }
 0x2dd   :  { %v2616_v57 = vpop.f32.mrf.mxu0 }
 0x2de   :  { %4005 = vmatmul.f32.gmra.mxu3 %v7801_v28  ;;  %v2644_v5 = vmax.f32 %v8472_v26, %v2616_v57  ;;  %3809 = vmatmul.f32.gmra.mxu2 %v7847_v6 }
 0x2e0   :  { %3411 = vmatmul.f32.gmra.mxu0 %v7847_v6 }
 0x2e1   :  { %v8242_v62 = vpop.f32.mrf.mxu3  ;;  %v2815_v3 = vpop.f32.mrf.mxu1 }
 0x2e2   :  { %v3240_v4 = vmax.f32 %v8234_v1, %v8242_v62  ;;  %v2843_v16 = vmax.f32 %v2644_v5, %v2815_v3  ;;  %v3014_v18 = vpop.f32.mrf.mxu2 }
 0x2e4   :  { %3610 = vmatmul.f32.gmra.mxu1 %v7847_v6  ;;  %v8247_v60 = vmax.f32 %v2843_v16, %v3014_v18 }
 0x2e5   :  { %v2619_v28 = vpop.f32.mrf.mxu0 }
 0x2e6   :  { %4008 = vmatmul.f32.gmra.mxu3 %v7847_v6  ;;  %v2645_v48 = vmax.f32 %v8473_v27, %v2619_v28  ;;  %3812 = vmatmul.f32.gmra.mxu2 %v7893_v63 }
 0x2e8   :  { %3414 = vmatmul.f32.gmra.mxu0 %v7893_v63 }
 0x2e9   :  { %v8255_v43 = vpop.f32.mrf.mxu3  ;;  %v2818_v14 = vpop.f32.mrf.mxu1 }
 0x2ea   :  { %v3241_v47 = vmax.f32 %v8247_v60, %v8255_v43  ;;  %v2844_v59 = vmax.f32 %v2645_v48, %v2818_v14  ;;  %v3017_v52 = vpop.f32.mrf.mxu2 }
 0x2ec   :  { %3613 = vmatmul.f32.gmra.mxu1 %v7893_v63  ;;  %v8260_v25 = vmax.f32 %v2844_v59, %v3017_v52 }
 0x2ed   :  { %v2622_v6 = vpop.f32.mrf.mxu0 }
 0x2ee   :  { %4011 = vmatmul.f32.gmra.mxu3 %v7893_v63  ;;  %v2646_v36 = vmax.f32 %v8474_v20, %v2622_v6  ;;  %3815 = vmatmul.f32.gmra.mxu2 %v7939_v35 }
 0x2f0   :  { %3417 = vmatmul.f32.gmra.mxu0 %v7939_v35 }
 0x2f1   :  { %v8268_v57 = vpop.f32.mrf.mxu3  ;;  %v2821_v26 = vpop.f32.mrf.mxu1 }
 0x2f2   :  { %v3242_v5 = vmax.f32 %v8260_v25, %v8268_v57  ;;  %v2845_v3 = vmax.f32 %v2646_v36, %v2821_v26  ;;  %v3020_v16 = vpop.f32.mrf.mxu2 }
 0x2f4   :  { %3616 = vmatmul.f32.gmra.mxu1 %v7939_v35  ;;  %v8273_v18 = vmax.f32 %v2845_v3, %v3020_v16 }
 0x2f5   :  { %v2625_v63 = vpop.f32.mrf.mxu0 }
 0x2f6   :  { %4014 = vmatmul.f32.gmra.mxu3 %v7939_v35  ;;  %v2647_v33 = vmax.f32 %v8475_v15, %v2625_v63  ;;  %3818 = vmatmul.f32.gmra.mxu2 %v7985_v32 }
 0x2f8   :  { %3420 = vmatmul.f32.gmra.mxu0 %v7985_v32 }
 0x2f9   :  { %v8281_v28 = vpop.f32.mrf.mxu3  ;;  %v2824_v27 = vpop.f32.mrf.mxu1 }
 0x2fa   :  { %v3243_v48 = vmax.f32 %v8273_v18, %v8281_v28  ;;  %v2846_v14 = vmax.f32 %v2647_v33, %v2824_v27  ;;  %v3023_v59 = vpop.f32.mrf.mxu2 }
 0x2fc   :  { %3619 = vmatmul.f32.gmra.mxu1 %v7985_v32  ;;  %v8286_v52 = vmax.f32 %v2846_v14, %v3023_v59 }
 0x2fd   :  { %v2628_v35 = vpop.f32.mrf.mxu0 }
 0x2fe   :  { %4017 = vmatmul.f32.gmra.mxu3 %v7985_v32  ;;  %v2648_v55 = vmax.f32 %v2449_v10, %v2628_v35  ;;  %3821 = vmatmul.f32.gmra.mxu2 %v8031_v38 }
 0x300   :  { %3423 = vmatmul.f32.gmra.mxu0 %v8031_v38 }
 0x301   :  { %v8294_v42 = vpop.f32.mrf.mxu3  ;;  %v2827_v6 = vpop.f32.mrf.mxu1 }
 0x302   :  { %v3244_v20 = vmax.f32 %v8286_v52, %v8294_v42  ;;  %v2847_v36 = vmax.f32 %v2648_v55, %v2827_v6  ;;  %v3026_v26 = vpop.f32.mrf.mxu2 }
 0x304   :  { %3622 = vmatmul.f32.gmra.mxu1 %v8031_v38  ;;  %v8299_v3 = vmax.f32 %v2847_v36, %v3026_v26 }
 0x305   :  { %v2631_v32 = vpop.f32.mrf.mxu0 }
 0x306   :  { %4020 = vmatmul.f32.gmra.mxu3 %v8031_v38  ;;  %v2649_v37 = vmax.f32 %v2450_v24, %v2631_v32  ;;  %3824 = vmatmul.f32.gmra.mxu2 %v8075_v41 }
 0x308   :  { %3426 = vmatmul.f32.gmra.mxu0 %v8075_v41 }
 0x309   :  { %v8307_v56 = vpop.f32.mrf.mxu3  ;;  %v2830_v10 = vpop.f32.mrf.mxu1 }
 0x30a   :  { %v3245_v16 = vmax.f32 %v8299_v3, %v8307_v56  ;;  %v2848_v63 = vmax.f32 %v2649_v37, %v2830_v10  ;;  %v3029_v15 = vpop.f32.mrf.mxu2 }
 0x30c   :  { %3625 = vmatmul.f32.gmra.mxu1 %v8075_v41  ;;  %v8312_v33 = vmax.f32 %v2848_v63, %v3029_v15 }
 0x30d   :  { %v3382_v38 = vpop.f32.mrf.mxu0 }
 0x30e   :  { %4023 = vmatmul.f32.gmra.mxu3 %v8075_v41  ;;  %v3430_v7 = vmax.f32 %v3231_v46, %v3382_v38 }
 0x311   :  { %v8318_v13 = vpop.f32.mrf.mxu3  ;;  %v3581_v24 = vpop.f32.mrf.mxu1 }
 0x312   :  { %v3246_v27 = vmax.f32 %v8312_v33, %v8318_v13  ;;  %v3780_v14 = vpop.f32.mrf.mxu2  ;;  %v3629_v59 = vmax.f32 %v3430_v7, %v3581_v24 }
 0x314   :  { %v3828_v55 = vmax.f32 %v3629_v59, %v3780_v14 }
 0x315   :  { %v3385_v35 = vpop.f32.mrf.mxu0 }
 0x316   :  { %v3431_v6 = vmax.f32 %v3232_v29, %v3385_v35 }
 0x319   :  { %v3979_v36 = vpop.f32.mrf.mxu3  ;;  %v3584_v41 = vpop.f32.mrf.mxu1 }
 0x31a   :  { %v4027_v26 = vmax.f32 %v3828_v55, %v3979_v36  ;;  %v3783_v32 = vpop.f32.mrf.mxu2  ;;  %v3630_v39 = vmax.f32 %v3431_v6, %v3584_v41 }
 0x31c   :  { %v4043_v34 = vmax.f32 %v4027_v26, 0.0  ;;  %v3829_v37 = vmax.f32 %v3630_v39, %v3783_v32 }
 0x31d   :  { %v3388_v46 = vpop.f32.mrf.mxu0 }
 0x31e   :  { %4059 = vst [vmem:[#allocation7] sm:$0xff] %v4043_v34  ;;  %v3432_v10 = vmax.f32 %v3233_v0, %v3388_v46 }
 0x321   :  { %v3982_v63 = vpop.f32.mrf.mxu3  ;;  %v3587_v15 = vpop.f32.mrf.mxu1 }
 0x322   :  { %v4028_v38 = vmax.f32 %v3829_v37, %v3982_v63  ;;  %v3786_v7 = vpop.f32.mrf.mxu2  ;;  %v3631_v22 = vmax.f32 %v3432_v10, %v3587_v15 }
 0x324   :  { %v4044_v24 = vmax.f32 %v4028_v38, 0.0  ;;  %v3830_v29 = vmax.f32 %v3631_v22, %v3786_v7 }
 0x325   :  { %v3391_v8 = vpop.f32.mrf.mxu0 }
 0x326   :  { %4060 = vst [vmem:[#allocation7 + $0x8] sm:$0xff] %v4044_v24  ;;  %v3433_v14 = vmax.f32 %v3234_v23, %v3391_v8 }
 0x329   :  { %v3985_v59 = vpop.f32.mrf.mxu3  ;;  %v3590_v35 = vpop.f32.mrf.mxu1 }
 0x32a   :  { %v4029_v55 = vmax.f32 %v3830_v29, %v3985_v59  ;;  %v3789_v6 = vpop.f32.mrf.mxu2  ;;  %v3632_v19 = vmax.f32 %v3433_v14, %v3590_v35 }
 0x32c   :  { %v4045_v36 = vmax.f32 %v4029_v55, 0.0  ;;  %v3831_v0 = vmax.f32 %v3632_v19, %v3789_v6 }
 0x32d   :  { %v3394_v2 = vpop.f32.mrf.mxu0 }
 0x32e   :  { %4061 = vst [vmem:[#allocation7 + $0x10] sm:$0xff] %v4045_v36  ;;  %v3434_v41 = vmax.f32 %v3235_v30, %v3394_v2 }
 0x331   :  { %v3988_v26 = vpop.f32.mrf.mxu3  ;;  %v3593_v32 = vpop.f32.mrf.mxu1 }
 0x332   :  { %v4030_v34 = vmax.f32 %v3831_v0, %v3988_v26  ;;  %v3792_v39 = vpop.f32.mrf.mxu2  ;;  %v3633_v31 = vmax.f32 %v3434_v41, %v3593_v32 }
 0x334   :  { %v4046_v46 = vmax.f32 %v4030_v34, 0.0  ;;  %v3832_v23 = vmax.f32 %v3633_v31, %v3792_v39 }
 0x335   :  { %v3397_v12 = vpop.f32.mrf.mxu0 }
 0x336   :  { %4062 = vst [vmem:[#allocation7 + $0x18] sm:$0xff] %v4046_v46  ;;  %v3435_v37 = vmax.f32 %v3236_v51, %v3397_v12 }
 0x339   :  { %v3991_v10 = vpop.f32.mrf.mxu3  ;;  %v3596_v63 = vpop.f32.mrf.mxu1 }
 0x33a   :  { %v4031_v15 = vmax.f32 %v3832_v23, %v3991_v10  ;;  %v3795_v38 = vpop.f32.mrf.mxu2  ;;  %v3634_v58 = vmax.f32 %v3435_v37, %v3596_v63 }
 0x33c   :  { %v4047_v7 = vmax.f32 %v4031_v15, 0.0  ;;  %v3833_v30 = vmax.f32 %v3634_v58, %v3795_v38 }
 0x33d   :  { %v3400_v50 = vpop.f32.mrf.mxu0 }
 0x33e   :  { %4063 = vst [vmem:[#allocation7 + $0x20] sm:$0xff] %v4047_v7  ;;  %v3436_v24 = vmax.f32 %v3237_v49, %v3400_v50 }
 0x341   :  { %v3994_v22 = vpop.f32.mrf.mxu3  ;;  %v3599_v8 = vpop.f32.mrf.mxu1 }
 0x342   :  { %v4032_v29 = vmax.f32 %v3833_v30, %v3994_v22  ;;  %v3798_v14 = vpop.f32.mrf.mxu2  ;;  %v3635_v21 = vmax.f32 %v3436_v24, %v3599_v8 }
 0x344   :  { %v4048_v59 = vmax.f32 %v4032_v29, 0.0  ;;  %v3834_v51 = vmax.f32 %v3635_v21, %v3798_v14 }
 0x345   :  { %v3403_v44 = vpop.f32.mrf.mxu0 }
 0x346   :  { %4064 = vst [vmem:[#allocation7 + $0x28] sm:$0xff] %v4048_v59  ;;  %v3437_v35 = vmax.f32 %v3238_v45, %v3403_v44 }
 0x349   :  { %v3997_v55 = vpop.f32.mrf.mxu3  ;;  %v3602_v6 = vpop.f32.mrf.mxu1 }
 0x34a   :  { %v4033_v36 = vmax.f32 %v3834_v51, %v3997_v55  ;;  %v3801_v19 = vpop.f32.mrf.mxu2  ;;  %v3636_v54 = vmax.f32 %v3437_v35, %v3602_v6 }
 0x34c   :  { %v4049_v2 = vmax.f32 %v4033_v36, 0.0  ;;  %v3835_v49 = vmax.f32 %v3636_v54, %v3801_v19 }
 0x34d   :  { %v3406_v53 = vpop.f32.mrf.mxu0 }
 0x34e   :  { %4065 = vst [vmem:[#allocation7 + $0x30] sm:$0xff] %v4049_v2  ;;  %v3438_v0 = vmax.f32 %v3239_v40, %v3406_v53 }
 0x351   :  { %v4000_v41 = vpop.f32.mrf.mxu3  ;;  %v3605_v26 = vpop.f32.mrf.mxu1 }
 0x352   :  { %v4034_v32 = vmax.f32 %v3835_v49, %v4000_v41  ;;  %v3804_v34 = vpop.f32.mrf.mxu2  ;;  %v3637_v11 = vmax.f32 %v3438_v0, %v3605_v26 }
 0x354   :  { %v4050_v39 = vmax.f32 %v4034_v32, 0.0  ;;  %v3836_v45 = vmax.f32 %v3637_v11, %v3804_v34 }
 0x355   :  { %v3409_v61 = vpop.f32.mrf.mxu0 }
 0x356   :  { %4066 = vst [vmem:[#allocation7 + $0x38] sm:$0xff] %v4050_v39  ;;  %v3439_v46 = vmax.f32 %v3240_v4, %v3409_v61 }
 0x359   :  { %v4003_v31 = vpop.f32.mrf.mxu3  ;;  %v3608_v12 = vpop.f32.mrf.mxu1 }
 0x35a   :  { %v4035_v23 = vmax.f32 %v3836_v45, %v4003_v31  ;;  %v3807_v37 = vpop.f32.mrf.mxu2  ;;  %v3638_v9 = vmax.f32 %v3439_v46, %v3608_v12 }
 0x35c   :  { %v4051_v10 = vmax.f32 %v4035_v23, 0.0  ;;  %v3837_v40 = vmax.f32 %v3638_v9, %v3807_v37 }
 0x35d   :  { %v3412_v17 = vpop.f32.mrf.mxu0 }
 0x35e   :  { %4067 = vst [vmem:[#allocation7 + $0x40] sm:$0xff] %v4051_v10  ;;  %v3440_v63 = vmax.f32 %v3241_v47, %v3412_v17 }
 0x361   :  { %v4006_v15 = vpop.f32.mrf.mxu3  ;;  %v3611_v38 = vpop.f32.mrf.mxu1 }
 0x362   :  { %v4036_v7 = vmax.f32 %v3837_v40, %v4006_v15  ;;  %v3810_v58 = vpop.f32.mrf.mxu2  ;;  %v3639_v1 = vmax.f32 %v3440_v63, %v3611_v38 }
 0x364   :  { %v4052_v50 = vmax.f32 %v4036_v7, 0.0  ;;  %v3838_v4 = vmax.f32 %v3639_v1, %v3810_v58 }
 0x365   :  { %v3415_v62 = vpop.f32.mrf.mxu0 }
 0x366   :  { %4068 = vst [vmem:[#allocation7 + $0x48] sm:$0xff] %v4052_v50  ;;  %v3441_v30 = vmax.f32 %v3242_v5, %v3415_v62 }
 0x369   :  { %v4009_v24 = vpop.f32.mrf.mxu3  ;;  %v3614_v22 = vpop.f32.mrf.mxu1 }
 0x36a   :  { %v4037_v8 = vmax.f32 %v3838_v4, %v4009_v24  ;;  %v3813_v29 = vpop.f32.mrf.mxu2  ;;  %v3640_v60 = vmax.f32 %v3441_v30, %v3614_v22 }
 0x36c   :  { %v4053_v14 = vmax.f32 %v4037_v8, 0.0  ;;  %v3839_v47 = vmax.f32 %v3640_v60, %v3813_v29 }
 0x36d   :  { %v3418_v43 = vpop.f32.mrf.mxu0 }
 0x36e   :  { %4069 = vst [vmem:[#allocation7 + $0x50] sm:$0xff] %v4053_v14  ;;  %v3442_v59 = vmax.f32 %v3243_v48, %v3418_v43 }
 0x371   :  { %v4012_v21 = vpop.f32.mrf.mxu3  ;;  %v3617_v44 = vpop.f32.mrf.mxu1 }
 0x372   :  { %v4038_v51 = vmax.f32 %v3839_v47, %v4012_v21  ;;  %v3816_v35 = vpop.f32.mrf.mxu2  ;;  %v3641_v25 = vmax.f32 %v3442_v59, %v3617_v44 }
 0x374   :  { %v4054_v55 = vmax.f32 %v4038_v51, 0.0  ;;  %v3840_v5 = vmax.f32 %v3641_v25, %v3816_v35 }
 0x375   :  { %v3421_v57 = vpop.f32.mrf.mxu0 }
 0x376   :  { %4070 = vst [vmem:[#allocation7 + $0x58] sm:$0xff] %v4054_v55  ;;  %v3443_v6 = vmax.f32 %v3244_v20, %v3421_v57 }
 0x379   :  { %v4015_v36 = vpop.f32.mrf.mxu3  ;;  %v3620_v19 = vpop.f32.mrf.mxu1 }
 0x37a   :  { %v4039_v2 = vmax.f32 %v3840_v5, %v4015_v36  ;;  %v3819_v54 = vpop.f32.mrf.mxu2  ;;  %v3642_v18 = vmax.f32 %v3443_v6, %v3620_v19 }
 0x37c   :  { %v4055_v53 = vmax.f32 %v4039_v2, 0.0  ;;  %v3841_v48 = vmax.f32 %v3642_v18, %v3819_v54 }
 0x37d   :  { %v3424_v28 = vpop.f32.mrf.mxu0 }
 0x37e   :  { %4071 = vst [vmem:[#allocation7 + $0x60] sm:$0xff] %v4055_v53  ;;  %v3444_v49 = vmax.f32 %v3245_v16, %v3424_v28 }
 0x381   :  { %v4018_v0 = vpop.f32.mrf.mxu3  ;;  %v3623_v41 = vpop.f32.mrf.mxu1 }
 0x382   :  { %v4040_v26 = vmax.f32 %v3841_v48, %v4018_v0  ;;  %v3822_v32 = vpop.f32.mrf.mxu2  ;;  %v3643_v52 = vmax.f32 %v3444_v49, %v3623_v41 }
 0x384   :  { %v4056_v34 = vmax.f32 %v4040_v26, 0.0  ;;  %v3842_v20 = vmax.f32 %v3643_v52, %v3822_v32 }
 0x385   :  { %v3427_v42 = vpop.f32.mrf.mxu0 }
 0x386   :  { %4072 = vst [vmem:[#allocation7 + $0x68] sm:$0xff] %v4056_v34  ;;  %v3445_v39 = vmax.f32 %v3246_v27, %v3427_v42 }
 0x389   :  { %v4021_v11 = vpop.f32.mrf.mxu3  ;;  %v3626_v61 = vpop.f32.mrf.mxu1 }
 0x38a   :  { %v4041_v45 = vmax.f32 %v3842_v20, %v4021_v11  ;;  %v3825_v46 = vpop.f32.mrf.mxu2  ;;  %v3644_v3 = vmax.f32 %v3445_v39, %v3626_v61 }
 0x38c   :  { %v4057_v31 = vmax.f32 %v4041_v45, 0.0  ;;  %v3843_v56 = vmax.f32 %v3644_v3, %v3825_v46 }
 0x38e   :  { %4073 = vst [vmem:[#allocation7 + $0x70] sm:$0xff] %v4057_v31 }
 0x391   :  { %v4024_v16 = vpop.f32.mrf.mxu3 }
 0x392   :  { %v4042_v12 = vmax.f32 %v3843_v56, %v4024_v16 }
 0x394   :  { %v4058_v23 = vmax.f32 %v4042_v12, 0.0 }
 0x396   :  { %4074 = vst [vmem:[#allocation7 + $0x78] sm:$0xff] %v4058_v23 }
 0x397   :  { %4087 = dma.vmem_to_hbm [thread:$0]  %s4080_s1, 2048, %s4082_s23, [#allocation4], %s4906_s17, %s4906_s17, %s4907_s18  }
 0x398   :  { %4903 = dma.done.wait [#allocation4], 2048  }
 0x399   :  { %4904 = vsyncadd [#allocation4], 4294965248 }
 0x39a   :  { %4092 = vsyncpa [#allocation3], 1 }
 0x39b   :  { %4093 = vsyncpa [#allocation6], 1 }
 0x39c   :  { %4094 = vsyncpa [#allocation4], 1 }

</bundles_post_ra>
